<compile_context>
chip_gen: v7x
topology: tpu7x:2x2x1
jax: 0.10.0
libtpu: 0.0.40
codegen_flags: <defaults>
</compile_context>

<pallas_src>
import functools

import jax
import jax.numpy as jnp
from jax.experimental import pallas as pl
from jax.experimental.pallas import tpu as pltpu


def _celu(x):
    # CELU with alpha=1 (PyTorch F.celu default): x if x > 0 else exp(x) - 1.
    return jnp.where(x > 0, x, jnp.exp(jnp.minimum(x, 0.0)) - 1.0)


# ------------------------------ fused kernel --------------------------------

def _block_kernel(p1_ref, w1_ref, b1_ref, w2_ref, b2_ref, wsc_ref, bsc_ref,
                  o_ref, h1pad_ref, *, OH, OW, cin, planes, has_sc_conv):
    M = OH * OW

    # conv1 (3x3, stride folded into the im2col patches) + folded BN1 + CELU
    h1 = jnp.dot(p1_ref[...], w1_ref[...], preferred_element_type=jnp.float32)
    h1 = _celu(h1 + b1_ref[...])                              # (M, planes) f32

    # stage into a zero-padded VMEM scratch (bf16) for the in-kernel conv2
    h1pad_ref[...] = jnp.zeros_like(h1pad_ref)
    h1pad_ref[1:OH + 1, 1:OW + 1, :] = (
        h1.reshape(OH, OW, planes).astype(h1pad_ref.dtype))

    # conv2 (3x3, stride 1, pad 1) + folded BN2: nine shifted-slab MXU matmuls
    acc = jnp.zeros((M, planes), jnp.float32)
    for ki in range(3):
        for kj in range(3):
            t = ki * 3 + kj
            slab = h1pad_ref[ki:ki + OH, kj:kj + OW, :].reshape(M, planes)
            acc = acc + jnp.dot(slab, w2_ref[t],
                                preferred_element_type=jnp.float32)
    h2 = acc + b2_ref[...]

    # shortcut: the center tap of conv1's patches == x subsampled by stride
    center = p1_ref[:, 4 * cin:5 * cin]                       # (M, cin) bf16
    if has_sc_conv:
        sc = jnp.dot(center, wsc_ref[...],
                     preferred_element_type=jnp.float32) + bsc_ref[...]
    else:
        sc = center.astype(jnp.float32)                       # identity path

    o_ref[...] = _celu(h2 + sc).astype(o_ref.dtype)


# ------------------------------- wrapper -------------------------------------

def block_forward(x, params, stride, has_sc_conv):
    """x: (B, Cin, H, W) f32 NCHW -> (B, planes, OH, OW) f32 NCHW."""
    B, Cin, H, W = x.shape
    planes = params['w1'].shape[1]
    OH = (H + 2 - 3) // stride + 1
    OW = (W + 2 - 3) // stride + 1
    M = OH * OW

    # Glue: NHWC + pad=1, extract the nine 3x3 taps once (shared by conv1 and
    # the shortcut, which only needs the center tap). Cast to bf16 for the MXU.
    xh = jnp.transpose(x, (0, 2, 3, 1))
    xp = jnp.pad(xh, ((0, 0), (1, 1), (1, 1), (0, 0)))
    taps = [xp[:, ki:ki + stride * OH:stride, kj:kj + stride * OW:stride, :]
            for ki in range(3) for kj in range(3)]
    p1 = jnp.stack(taps, axis=3).reshape(B, M, 9 * Cin).astype(jnp.bfloat16)

    kern = functools.partial(_block_kernel, OH=OH, OW=OW, cin=Cin,
                             planes=planes, has_sc_conv=has_sc_conv)
    out = pl.pallas_call(
        kern,
        out_shape=jax.ShapeDtypeStruct((B, M, planes), jnp.float32),
        grid=(B,),
        in_specs=[
            pl.BlockSpec((None, M, 9 * Cin), lambda b: (b, 0, 0)),   # patches
            pl.BlockSpec((9 * Cin, planes), lambda b: (0, 0)),       # w1
            pl.BlockSpec((1, planes), lambda b: (0, 0)),             # b1
            pl.BlockSpec((9, planes, planes), lambda b: (0, 0, 0)),  # w2
            pl.BlockSpec((1, planes), lambda b: (0, 0)),             # b2
            pl.BlockSpec((Cin, planes), lambda b: (0, 0)),           # wsc
            pl.BlockSpec((1, planes), lambda b: (0, 0)),             # bsc
        ],
        out_specs=pl.BlockSpec((None, M, planes), lambda b: (b, 0, 0)),
        scratch_shapes=[pltpu.VMEM((OH + 2, OW + 2, planes), jnp.bfloat16)],
        compiler_params=pltpu.CompilerParams(
            dimension_semantics=("parallel",)),
    )(p1, params['w1'], params['b1'], params['w2'], params['b2'],
      params['wsc'], params['bsc'])

    return jnp.transpose(out.reshape(B, OH, OW, planes), (0, 3, 1, 2))


# --------------------------- params: init + prep ----------------------------

def init_block_raw(key, in_planes, planes, stride):
    ks = iter(jax.random.split(key, 16))

    def conv_w(cout, cin, k):
        s = (cin * k * k) ** -0.5
        return jax.random.uniform(next(ks), (cout, cin, k, k), jnp.float32, -s, s)

    def bn(c):
        gamma = jax.random.uniform(next(ks), (c,), jnp.float32, 0.5, 1.5)
        beta = jax.random.uniform(next(ks), (c,), jnp.float32, -0.2, 0.2)
        mean = 0.1 * jax.random.normal(next(ks), (c,), jnp.float32)
        var = jax.random.uniform(next(ks), (c,), jnp.float32, 0.5, 1.5)
        return gamma, beta, mean, var

    raw = {'conv1_w': conv_w(planes, in_planes, 3), 'bn1': bn(planes),
           'conv2_w': conv_w(planes, planes, 3), 'bn2': bn(planes)}
    if stride != 1 or in_planes != planes:
        raw['convsc_w'] = conv_w(planes, in_planes, 1)
        raw['bnsc'] = bn(planes)
    return raw


def prepare_block_params(raw, in_planes, planes, eps=1e-5):
    """Fold inference-mode BN into the convs; pre-reshape to GEMM layouts."""
    def fold(gamma, beta, mean, var):
        scale = gamma / jnp.sqrt(var + eps)
        return scale, beta - mean * scale

    s1, b1 = fold(*raw['bn1'])
    w1 = raw['conv1_w'] * s1[:, None, None, None]
    w1 = jnp.transpose(w1, (2, 3, 1, 0)).reshape(9 * in_planes, planes)

    s2, b2 = fold(*raw['bn2'])
    w2 = raw['conv2_w'] * s2[:, None, None, None]
    w2 = jnp.transpose(w2, (2, 3, 1, 0)).reshape(9, planes, planes)

    if 'convsc_w' in raw:
        ssc, bsc = fold(*raw['bnsc'])
        wsc = (raw['convsc_w'] * ssc[:, None, None, None]
               ).reshape(planes, in_planes).T
    else:  # identity shortcut: placeholders, never read by the kernel
        wsc = jnp.eye(in_planes, planes, dtype=jnp.float32)
        bsc = jnp.zeros((planes,), jnp.float32)

    return {'w1': w1.astype(jnp.bfloat16),
            'b1': b1.reshape(1, planes).astype(jnp.float32),
            'w2': w2.astype(jnp.bfloat16),
            'b2': b2.reshape(1, planes).astype(jnp.float32),
            'wsc': wsc.astype(jnp.bfloat16),
            'bsc': bsc.reshape(1, planes).astype(jnp.float32)}


# ------------------------- pure-JAX reference (f32) --------------------------

def reference_block(x, raw, stride, eps=1e-5):
    def conv(y, w, s, p):
        return jax.lax.conv_general_dilated(
            y, w, (s, s), ((p, p), (p, p)),
            dimension_numbers=('NCHW', 'OIHW', 'NCHW'))

    def bn(y, stats):
        gamma, beta, mean, var = stats
        inv = gamma / jnp.sqrt(var + eps)
        return ((y - mean[None, :, None, None]) * inv[None, :, None, None]
                + beta[None, :, None, None])

    out = jax.nn.celu(bn(conv(x, raw['conv1_w'], stride, 1), raw['bn1']))
    out = bn(conv(out, raw['conv2_w'], 1, 1), raw['bn2'])
    sc = bn(conv(x, raw['convsc_w'], stride, 0), raw['bnsc']) \
        if 'convsc_w' in raw else x
    return jax.nn.celu(out + sc)


# ---------------------------------- main -------------------------------------

if __name__ == "__main__":
    root = jax.random.PRNGKey(0)
    kx, k1, k2 = jax.random.split(root, 3)

    B, Cin, H, W = 2, 16, 16, 16
    planes = 32

    raw1 = init_block_raw(k1, Cin, planes, stride=2)      # conv-shortcut path
    raw2 = init_block_raw(k2, planes, planes, stride=1)   # identity shortcut
    kp1 = prepare_block_params(raw1, Cin, planes)
    kp2 = prepare_block_params(raw2, planes, planes)

    x = jax.random.normal(kx, (B, Cin, H, W), jnp.float32)

    @jax.jit
    def fwd(x, p1, p2):
        y = block_forward(x, p1, stride=2, has_sc_conv=True)
        return block_forward(y, p2, stride=1, has_sc_conv=False)

    out = fwd(x, kp1, kp2)
    jax.block_until_ready(out)
    assert out.shape == (B, planes, H // 2, W // 2) and out.dtype == jnp.float32

    ref = reference_block(reference_block(x, raw1, 2), raw2, 1)
    err = float(jnp.max(jnp.abs(out - ref)))
    assert err < 1e-1, f"max abs err vs f32 reference: {err}"

    print("KERNEL_OK")
</pallas_src>

<mosaic_0001>
module attributes {stable_mosaic.version = 11 : i64} {
  func.func @_block_kernel(%arg0: i32, %arg1: memref<1x64x144xbf16, #tpu.memory_space<vmem>>, %arg2: memref<144x32xbf16, #tpu.memory_space<vmem>>, %arg3: memref<1x32xf32, #tpu.memory_space<vmem>>, %arg4: memref<9x32x32xbf16, #tpu.memory_space<vmem>>, %arg5: memref<1x32xf32, #tpu.memory_space<vmem>>, %arg6: memref<16x32xbf16, #tpu.memory_space<vmem>>, %arg7: memref<1x32xf32, #tpu.memory_space<vmem>>, %arg8: memref<1x64x32xf32, #tpu.memory_space<vmem>>, %arg9: memref<10x10x32xbf16, #tpu.memory_space<vmem>>) attributes {dimension_semantics = [#tpu.dimension_semantics<parallel>], iteration_bounds = array<i64: 2>, scalar_prefetch = 0 : i64, scratch_operands = 1 : i64, tpu.core_type = #tpu.core_type<tc>, window_params = [{transform_indices = @transform_0, window_bounds = array<i64: 1, 64, 144>}, {pipeline_mode = #tpu.pipeline_mode<synchronous>, transform_indices = @transform_1, window_bounds = array<i64: 144, 32>}, {pipeline_mode = #tpu.pipeline_mode<synchronous>, transform_indices = @transform_2, window_bounds = array<i64: 1, 32>}, {pipeline_mode = #tpu.pipeline_mode<synchronous>, transform_indices = @transform_3, window_bounds = array<i64: 9, 32, 32>}, {pipeline_mode = #tpu.pipeline_mode<synchronous>, transform_indices = @transform_4, window_bounds = array<i64: 1, 32>}, {pipeline_mode = #tpu.pipeline_mode<synchronous>, transform_indices = @transform_5, window_bounds = array<i64: 16, 32>}, {pipeline_mode = #tpu.pipeline_mode<synchronous>, transform_indices = @transform_6, window_bounds = array<i64: 1, 32>}, {transform_indices = @transform_7, window_bounds = array<i64: 1, 64, 32>}]} {
    %c0 = arith.constant 0 : index
    %c0_0 = arith.constant 0 : index
    %c0_1 = arith.constant 0 : index
    %0 = vector.load %arg1[%c0, %c0_0, %c0_1] : memref<1x64x144xbf16, #tpu.memory_space<vmem>>, vector<1x64x144xbf16>
    %1 = vector.shape_cast %0 : vector<1x64x144xbf16> to vector<64x144xbf16>
    %c0_2 = arith.constant 0 : index
    %c0_3 = arith.constant 0 : index
    %2 = vector.load %arg2[%c0_2, %c0_3] : memref<144x32xbf16, #tpu.memory_space<vmem>>, vector<144x32xbf16>
    %cst = arith.constant dense<0.000000e+00> : vector<64x32xf32>
    %3 = tpu.matmul %1, %2, %cst {dimension_numbers = #tpu.dot_dimension_numbers<[1], [0], [0], [1], [0, 0, 1, 1], [], []>} : vector<64x144xbf16>, vector<144x32xbf16>, vector<64x32xf32> -> vector<64x32xf32>
    %c0_4 = arith.constant 0 : index
    %c0_5 = arith.constant 0 : index
    %4 = vector.load %arg3[%c0_4, %c0_5] : memref<1x32xf32, #tpu.memory_space<vmem>>, vector<1x32xf32>
    %5 = vector.broadcast %4 : vector<1x32xf32> to vector<64x32xf32>
    %6 = arith.addf %3, %5 : vector<64x32xf32>
    %cst_6 = arith.constant 0.000000e+00 : f32
    %7 = vector.broadcast %cst_6 : f32 to vector<64x32xf32>
    %8 = arith.cmpf ogt, %6, %7 : vector<64x32xf32>
    %cst_7 = arith.constant 0.000000e+00 : f32
    %9 = vector.broadcast %cst_7 : f32 to vector<64x32xf32>
    %10 = arith.minimumf %6, %9 : vector<64x32xf32>
    %11 = math.exp %10 : vector<64x32xf32>
    %cst_8 = arith.constant 1.000000e+00 : f32
    %12 = vector.broadcast %cst_8 : f32 to vector<64x32xf32>
    %13 = arith.subf %11, %12 : vector<64x32xf32>
    %14 = arith.select %8, %6, %13 : vector<64x32xi1>, vector<64x32xf32>
    %cst_9 = arith.constant 0.000000e+00 : bf16
    %15 = vector.broadcast %cst_9 : bf16 to vector<10x10x32xbf16>
    %c0_10 = arith.constant 0 : index
    %c0_11 = arith.constant 0 : index
    %c0_12 = arith.constant 0 : index
    %16 = vector.load %arg9[%c0_10, %c0_11, %c0_12] : memref<10x10x32xbf16, #tpu.memory_space<vmem>>, vector<10x10x32xbf16>
    tpu.vector_store %arg9[%c0_10, %c0_11, %c0_12], %15 {strides = array<i32>} : memref<10x10x32xbf16, #tpu.memory_space<vmem>>, vector<10x10x32xbf16>,
    %17 = vector.shape_cast %14 : vector<64x32xf32> to vector<8x8x32xf32>
    %18 = arith.truncf %17 : vector<8x8x32xf32> to vector<8x8x32xbf16>
    %c1 = arith.constant 1 : index
    %c1_13 = arith.constant 1 : index
    %c0_14 = arith.constant 0 : index
    %19 = vector.load %arg9[%c1, %c1_13, %c0_14] : memref<10x10x32xbf16, #tpu.memory_space<vmem>>, vector<8x8x32xbf16>
    tpu.vector_store %arg9[%c1, %c1_13, %c0_14], %18 {strides = array<i32>} : memref<10x10x32xbf16, #tpu.memory_space<vmem>>, vector<8x8x32xbf16>,
    %cst_15 = arith.constant 0.000000e+00 : f32
    %20 = vector.broadcast %cst_15 : f32 to vector<64x32xf32>
    %c0_16 = arith.constant 0 : index
    %c0_17 = arith.constant 0 : index
    %c0_18 = arith.constant 0 : index
    %21 = vector.load %arg9[%c0_16, %c0_17, %c0_18] : memref<10x10x32xbf16, #tpu.memory_space<vmem>>, vector<8x8x32xbf16>
    %22 = vector.shape_cast %21 : vector<8x8x32xbf16> to vector<64x32xbf16>
    %c0_19 = arith.constant 0 : index
    %c0_20 = arith.constant 0 : index
    %c0_21 = arith.constant 0 : index
    %23 = vector.load %arg4[%c0_19, %c0_20, %c0_21] : memref<9x32x32xbf16, #tpu.memory_space<vmem>>, vector<1x32x32xbf16>
    %24 = vector.shape_cast %23 : vector<1x32x32xbf16> to vector<32x32xbf16>
    %cst_22 = arith.constant dense<0.000000e+00> : vector<64x32xf32>
    %25 = tpu.matmul %22, %24, %cst_22 {dimension_numbers = #tpu.dot_dimension_numbers<[1], [0], [0], [1], [0, 0, 1, 1], [], []>} : vector<64x32xbf16>, vector<32x32xbf16>, vector<64x32xf32> -> vector<64x32xf32>
    %26 = arith.addf %20, %25 : vector<64x32xf32>
    %c0_23 = arith.constant 0 : index
    %c1_24 = arith.constant 1 : index
    %c0_25 = arith.constant 0 : index
    %27 = vector.load %arg9[%c0_23, %c1_24, %c0_25] : memref<10x10x32xbf16, #tpu.memory_space<vmem>>, vector<8x8x32xbf16>
    %28 = vector.shape_cast %27 : vector<8x8x32xbf16> to vector<64x32xbf16>
    %c1_26 = arith.constant 1 : index
    %c0_27 = arith.constant 0 : index
    %c0_28 = arith.constant 0 : index
    %29 = vector.load %arg4[%c1_26, %c0_27, %c0_28] : memref<9x32x32xbf16, #tpu.memory_space<vmem>>, vector<1x32x32xbf16>
    %30 = vector.shape_cast %29 : vector<1x32x32xbf16> to vector<32x32xbf16>
    %cst_29 = arith.constant dense<0.000000e+00> : vector<64x32xf32>
    %31 = tpu.matmul %28, %30, %cst_29 {dimension_numbers = #tpu.dot_dimension_numbers<[1], [0], [0], [1], [0, 0, 1, 1], [], []>} : vector<64x32xbf16>, vector<32x32xbf16>, vector<64x32xf32> -> vector<64x32xf32>
    %32 = arith.addf %26, %31 : vector<64x32xf32>
    %c0_30 = arith.constant 0 : index
    %c2 = arith.constant 2 : index
    %c0_31 = arith.constant 0 : index
    %33 = vector.load %arg9[%c0_30, %c2, %c0_31] : memref<10x10x32xbf16, #tpu.memory_space<vmem>>, vector<8x8x32xbf16>
    %34 = vector.shape_cast %33 : vector<8x8x32xbf16> to vector<64x32xbf16>
    %c2_32 = arith.constant 2 : index
    %c0_33 = arith.constant 0 : index
    %c0_34 = arith.constant 0 : index
    %35 = vector.load %arg4[%c2_32, %c0_33, %c0_34] : memref<9x32x32xbf16, #tpu.memory_space<vmem>>, vector<1x32x32xbf16>
    %36 = vector.shape_cast %35 : vector<1x32x32xbf16> to vector<32x32xbf16>
    %cst_35 = arith.constant dense<0.000000e+00> : vector<64x32xf32>
    %37 = tpu.matmul %34, %36, %cst_35 {dimension_numbers = #tpu.dot_dimension_numbers<[1], [0], [0], [1], [0, 0, 1, 1], [], []>} : vector<64x32xbf16>, vector<32x32xbf16>, vector<64x32xf32> -> vector<64x32xf32>
    %38 = arith.addf %32, %37 : vector<64x32xf32>
    %c1_36 = arith.constant 1 : index
    %c0_37 = arith.constant 0 : index
    %c0_38 = arith.constant 0 : index
    %39 = vector.load %arg9[%c1_36, %c0_37, %c0_38] : memref<10x10x32xbf16, #tpu.memory_space<vmem>>, vector<8x8x32xbf16>
    %40 = vector.shape_cast %39 : vector<8x8x32xbf16> to vector<64x32xbf16>
    %c3 = arith.constant 3 : index
    %c0_39 = arith.constant 0 : index
    %c0_40 = arith.constant 0 : index
    %41 = vector.load %arg4[%c3, %c0_39, %c0_40] : memref<9x32x32xbf16, #tpu.memory_space<vmem>>, vector<1x32x32xbf16>
    %42 = vector.shape_cast %41 : vector<1x32x32xbf16> to vector<32x32xbf16>
    %cst_41 = arith.constant dense<0.000000e+00> : vector<64x32xf32>
    %43 = tpu.matmul %40, %42, %cst_41 {dimension_numbers = #tpu.dot_dimension_numbers<[1], [0], [0], [1], [0, 0, 1, 1], [], []>} : vector<64x32xbf16>, vector<32x32xbf16>, vector<64x32xf32> -> vector<64x32xf32>
    %44 = arith.addf %38, %43 : vector<64x32xf32>
    %c1_42 = arith.constant 1 : index
    %c1_43 = arith.constant 1 : index
    %c0_44 = arith.constant 0 : index
    %45 = vector.load %arg9[%c1_42, %c1_43, %c0_44] : memref<10x10x32xbf16, #tpu.memory_space<vmem>>, vector<8x8x32xbf16>
    %46 = vector.shape_cast %45 : vector<8x8x32xbf16> to vector<64x32xbf16>
    %c4 = arith.constant 4 : index
    %c0_45 = arith.constant 0 : index
    %c0_46 = arith.constant 0 : index
    %47 = vector.load %arg4[%c4, %c0_45, %c0_46] : memref<9x32x32xbf16, #tpu.memory_space<vmem>>, vector<1x32x32xbf16>
    %48 = vector.shape_cast %47 : vector<1x32x32xbf16> to vector<32x32xbf16>
    %cst_47 = arith.constant dense<0.000000e+00> : vector<64x32xf32>
    %49 = tpu.matmul %46, %48, %cst_47 {dimension_numbers = #tpu.dot_dimension_numbers<[1], [0], [0], [1], [0, 0, 1, 1], [], []>} : vector<64x32xbf16>, vector<32x32xbf16>, vector<64x32xf32> -> vector<64x32xf32>
    %50 = arith.addf %44, %49 : vector<64x32xf32>
    %c1_48 = arith.constant 1 : index
    %c2_49 = arith.constant 2 : index
    %c0_50 = arith.constant 0 : index
    %51 = vector.load %arg9[%c1_48, %c2_49, %c0_50] : memref<10x10x32xbf16, #tpu.memory_space<vmem>>, vector<8x8x32xbf16>
    %52 = vector.shape_cast %51 : vector<8x8x32xbf16> to vector<64x32xbf16>
    %c5 = arith.constant 5 : index
    %c0_51 = arith.constant 0 : index
    %c0_52 = arith.constant 0 : index
    %53 = vector.load %arg4[%c5, %c0_51, %c0_52] : memref<9x32x32xbf16, #tpu.memory_space<vmem>>, vector<1x32x32xbf16>
    %54 = vector.shape_cast %53 : vector<1x32x32xbf16> to vector<32x32xbf16>
    %cst_53 = arith.constant dense<0.000000e+00> : vector<64x32xf32>
    %55 = tpu.matmul %52, %54, %cst_53 {dimension_numbers = #tpu.dot_dimension_numbers<[1], [0], [0], [1], [0, 0, 1, 1], [], []>} : vector<64x32xbf16>, vector<32x32xbf16>, vector<64x32xf32> -> vector<64x32xf32>
    %56 = arith.addf %50, %55 : vector<64x32xf32>
    %c2_54 = arith.constant 2 : index
    %c0_55 = arith.constant 0 : index
    %c0_56 = arith.constant 0 : index
    %57 = vector.load %arg9[%c2_54, %c0_55, %c0_56] : memref<10x10x32xbf16, #tpu.memory_space<vmem>>, vector<8x8x32xbf16>
    %58 = vector.shape_cast %57 : vector<8x8x32xbf16> to vector<64x32xbf16>
    %c6 = arith.constant 6 : index
    %c0_57 = arith.constant 0 : index
    %c0_58 = arith.constant 0 : index
    %59 = vector.load %arg4[%c6, %c0_57, %c0_58] : memref<9x32x32xbf16, #tpu.memory_space<vmem>>, vector<1x32x32xbf16>
    %60 = vector.shape_cast %59 : vector<1x32x32xbf16> to vector<32x32xbf16>
    %cst_59 = arith.constant dense<0.000000e+00> : vector<64x32xf32>
    %61 = tpu.matmul %58, %60, %cst_59 {dimension_numbers = #tpu.dot_dimension_numbers<[1], [0], [0], [1], [0, 0, 1, 1], [], []>} : vector<64x32xbf16>, vector<32x32xbf16>, vector<64x32xf32> -> vector<64x32xf32>
    %62 = arith.addf %56, %61 : vector<64x32xf32>
    %c2_60 = arith.constant 2 : index
    %c1_61 = arith.constant 1 : index
    %c0_62 = arith.constant 0 : index
    %63 = vector.load %arg9[%c2_60, %c1_61, %c0_62] : memref<10x10x32xbf16, #tpu.memory_space<vmem>>, vector<8x8x32xbf16>
    %64 = vector.shape_cast %63 : vector<8x8x32xbf16> to vector<64x32xbf16>
    %c7 = arith.constant 7 : index
    %c0_63 = arith.constant 0 : index
    %c0_64 = arith.constant 0 : index
    %65 = vector.load %arg4[%c7, %c0_63, %c0_64] : memref<9x32x32xbf16, #tpu.memory_space<vmem>>, vector<1x32x32xbf16>
    %66 = vector.shape_cast %65 : vector<1x32x32xbf16> to vector<32x32xbf16>
    %cst_65 = arith.constant dense<0.000000e+00> : vector<64x32xf32>
    %67 = tpu.matmul %64, %66, %cst_65 {dimension_numbers = #tpu.dot_dimension_numbers<[1], [0], [0], [1], [0, 0, 1, 1], [], []>} : vector<64x32xbf16>, vector<32x32xbf16>, vector<64x32xf32> -> vector<64x32xf32>
    %68 = arith.addf %62, %67 : vector<64x32xf32>
    %c2_66 = arith.constant 2 : index
    %c2_67 = arith.constant 2 : index
    %c0_68 = arith.constant 0 : index
    %69 = vector.load %arg9[%c2_66, %c2_67, %c0_68] : memref<10x10x32xbf16, #tpu.memory_space<vmem>>, vector<8x8x32xbf16>
    %70 = vector.shape_cast %69 : vector<8x8x32xbf16> to vector<64x32xbf16>
    %c8 = arith.constant 8 : index
    %c0_69 = arith.constant 0 : index
    %c0_70 = arith.constant 0 : index
    %71 = vector.load %arg4[%c8, %c0_69, %c0_70] : memref<9x32x32xbf16, #tpu.memory_space<vmem>>, vector<1x32x32xbf16>
    %72 = vector.shape_cast %71 : vector<1x32x32xbf16> to vector<32x32xbf16>
    %cst_71 = arith.constant dense<0.000000e+00> : vector<64x32xf32>
    %73 = tpu.matmul %70, %72, %cst_71 {dimension_numbers = #tpu.dot_dimension_numbers<[1], [0], [0], [1], [0, 0, 1, 1], [], []>} : vector<64x32xbf16>, vector<32x32xbf16>, vector<64x32xf32> -> vector<64x32xf32>
    %74 = arith.addf %68, %73 : vector<64x32xf32>
    %c0_72 = arith.constant 0 : index
    %c0_73 = arith.constant 0 : index
    %75 = vector.load %arg5[%c0_72, %c0_73] : memref<1x32xf32, #tpu.memory_space<vmem>>, vector<1x32xf32>
    %76 = vector.broadcast %75 : vector<1x32xf32> to vector<64x32xf32>
    %77 = arith.addf %74, %76 : vector<64x32xf32>
    %c0_74 = arith.constant 0 : index
    %c0_75 = arith.constant 0 : index
    %c64 = arith.constant 64 : index
    %78 = vector.load %arg1[%c0_74, %c0_75, %c64] : memref<1x64x144xbf16, #tpu.memory_space<vmem>>, vector<1x64x16xbf16>
    %79 = vector.shape_cast %78 : vector<1x64x16xbf16> to vector<64x16xbf16>
    %c0_76 = arith.constant 0 : index
    %c0_77 = arith.constant 0 : index
    %80 = vector.load %arg6[%c0_76, %c0_77] : memref<16x32xbf16, #tpu.memory_space<vmem>>, vector<16x32xbf16>
    %cst_78 = arith.constant dense<0.000000e+00> : vector<64x32xf32>
    %81 = tpu.matmul %79, %80, %cst_78 {dimension_numbers = #tpu.dot_dimension_numbers<[1], [0], [0], [1], [0, 0, 1, 1], [], []>} : vector<64x16xbf16>, vector<16x32xbf16>, vector<64x32xf32> -> vector<64x32xf32>
    %c0_79 = arith.constant 0 : index
    %c0_80 = arith.constant 0 : index
    %82 = vector.load %arg7[%c0_79, %c0_80] : memref<1x32xf32, #tpu.memory_space<vmem>>, vector<1x32xf32>
    %83 = vector.broadcast %82 : vector<1x32xf32> to vector<64x32xf32>
    %84 = arith.addf %81, %83 : vector<64x32xf32>
    %85 = arith.addf %77, %84 : vector<64x32xf32>
    %cst_81 = arith.constant 0.000000e+00 : f32
    %86 = vector.broadcast %cst_81 : f32 to vector<64x32xf32>
    %87 = arith.cmpf ogt, %85, %86 : vector<64x32xf32>
    %cst_82 = arith.constant 0.000000e+00 : f32
    %88 = vector.broadcast %cst_82 : f32 to vector<64x32xf32>
    %89 = arith.minimumf %85, %88 : vector<64x32xf32>
    %90 = math.exp %89 : vector<64x32xf32>
    %cst_83 = arith.constant 1.000000e+00 : f32
    %91 = vector.broadcast %cst_83 : f32 to vector<64x32xf32>
    %92 = arith.subf %90, %91 : vector<64x32xf32>
    %93 = arith.select %87, %85, %92 : vector<64x32xi1>, vector<64x32xf32>
    %c0_84 = arith.constant 0 : index
    %c0_85 = arith.constant 0 : index
    %c0_86 = arith.constant 0 : index
    %94 = vector.load %arg8[%c0_84, %c0_85, %c0_86] : memref<1x64x32xf32, #tpu.memory_space<vmem>>, vector<1x64x32xf32>
    %95 = vector.shape_cast %94 : vector<1x64x32xf32> to vector<64x32xf32>
    %96 = vector.shape_cast %93 : vector<64x32xf32> to vector<1x64x32xf32>
    tpu.vector_store %arg8[%c0_84, %c0_85, %c0_86], %96 {strides = array<i32>} : memref<1x64x32xf32, #tpu.memory_space<vmem>>, vector<1x64x32xf32>,
    return
  }
  func.func @transform_0(%arg0: i32) -> (i32, i32, i32) {
    %c0_i32 = arith.constant 0 : i32
    %c0_i32_0 = arith.constant 0 : i32
    %c0_i32_1 = arith.constant 0 : i32
    return %arg0, %c0_i32, %c0_i32_0 : i32, i32, i32
  }
  func.func @transform_1(%arg0: i32) -> (i32, i32) {
    %c0_i32 = arith.constant 0 : i32
    %c0_i32_0 = arith.constant 0 : i32
    %c0_i32_1 = arith.constant 0 : i32
    return %c0_i32, %c0_i32_0 : i32, i32
  }
  func.func @transform_2(%arg0: i32) -> (i32, i32) {
    %c0_i32 = arith.constant 0 : i32
    %c0_i32_0 = arith.constant 0 : i32
    %c0_i32_1 = arith.constant 0 : i32
    return %c0_i32, %c0_i32_0 : i32, i32
  }
  func.func @transform_3(%arg0: i32) -> (i32, i32, i32) {
    %c0_i32 = arith.constant 0 : i32
    %c0_i32_0 = arith.constant 0 : i32
    %c0_i32_1 = arith.constant 0 : i32
    %c0_i32_2 = arith.constant 0 : i32
    return %c0_i32, %c0_i32_0, %c0_i32_1 : i32, i32, i32
  }
  func.func @transform_4(%arg0: i32) -> (i32, i32) {
    %c0_i32 = arith.constant 0 : i32
    %c0_i32_0 = arith.constant 0 : i32
    %c0_i32_1 = arith.constant 0 : i32
    return %c0_i32, %c0_i32_0 : i32, i32
  }
  func.func @transform_5(%arg0: i32) -> (i32, i32) {
    %c0_i32 = arith.constant 0 : i32
    %c0_i32_0 = arith.constant 0 : i32
    %c0_i32_1 = arith.constant 0 : i32
    return %c0_i32, %c0_i32_0 : i32, i32
  }
  func.func @transform_6(%arg0: i32) -> (i32, i32) {
    %c0_i32 = arith.constant 0 : i32
    %c0_i32_0 = arith.constant 0 : i32
    %c0_i32_1 = arith.constant 0 : i32
    return %c0_i32, %c0_i32_0 : i32, i32
  }
  func.func @transform_7(%arg0: i32) -> (i32, i32, i32) {
    %c0_i32 = arith.constant 0 : i32
    %c0_i32_0 = arith.constant 0 : i32
    %c0_i32_1 = arith.constant 0 : i32
    return %arg0, %c0_i32, %c0_i32_0 : i32, i32, i32
  }
}

module attributes {stable_mosaic.version = 11 : i64} {
  func.func @_block_kernel(%arg0: i32, %arg1: memref<1x64x288xbf16, #tpu.memory_space<vmem>>, %arg2: memref<288x32xbf16, #tpu.memory_space<vmem>>, %arg3: memref<1x32xf32, #tpu.memory_space<vmem>>, %arg4: memref<9x32x32xbf16, #tpu.memory_space<vmem>>, %arg5: memref<1x32xf32, #tpu.memory_space<vmem>>, %arg6: memref<32x32xbf16, #tpu.memory_space<vmem>>, %arg7: memref<1x32xf32, #tpu.memory_space<vmem>>, %arg8: memref<1x64x32xf32, #tpu.memory_space<vmem>>, %arg9: memref<10x10x32xbf16, #tpu.memory_space<vmem>>) attributes {dimension_semantics = [#tpu.dimension_semantics<parallel>], iteration_bounds = array<i64: 2>, scalar_prefetch = 0 : i64, scratch_operands = 1 : i64, tpu.core_type = #tpu.core_type<tc>, window_params = [{transform_indices = @transform_0, window_bounds = array<i64: 1, 64, 288>}, {pipeline_mode = #tpu.pipeline_mode<synchronous>, transform_indices = @transform_1, window_bounds = array<i64: 288, 32>}, {pipeline_mode = #tpu.pipeline_mode<synchronous>, transform_indices = @transform_2, window_bounds = array<i64: 1, 32>}, {pipeline_mode = #tpu.pipeline_mode<synchronous>, transform_indices = @transform_3, window_bounds = array<i64: 9, 32, 32>}, {pipeline_mode = #tpu.pipeline_mode<synchronous>, transform_indices = @transform_4, window_bounds = array<i64: 1, 32>}, {pipeline_mode = #tpu.pipeline_mode<synchronous>, transform_indices = @transform_5, window_bounds = array<i64: 32, 32>}, {pipeline_mode = #tpu.pipeline_mode<synchronous>, transform_indices = @transform_6, window_bounds = array<i64: 1, 32>}, {transform_indices = @transform_7, window_bounds = array<i64: 1, 64, 32>}]} {
    %c0 = arith.constant 0 : index
    %c0_0 = arith.constant 0 : index
    %c0_1 = arith.constant 0 : index
    %0 = vector.load %arg1[%c0, %c0_0, %c0_1] : memref<1x64x288xbf16, #tpu.memory_space<vmem>>, vector<1x64x288xbf16>
    %1 = vector.shape_cast %0 : vector<1x64x288xbf16> to vector<64x288xbf16>
    %c0_2 = arith.constant 0 : index
    %c0_3 = arith.constant 0 : index
    %2 = vector.load %arg2[%c0_2, %c0_3] : memref<288x32xbf16, #tpu.memory_space<vmem>>, vector<288x32xbf16>
    %cst = arith.constant dense<0.000000e+00> : vector<64x32xf32>
    %3 = tpu.matmul %1, %2, %cst {dimension_numbers = #tpu.dot_dimension_numbers<[1], [0], [0], [1], [0, 0, 1, 1], [], []>} : vector<64x288xbf16>, vector<288x32xbf16>, vector<64x32xf32> -> vector<64x32xf32>
    %c0_4 = arith.constant 0 : index
    %c0_5 = arith.constant 0 : index
    %4 = vector.load %arg3[%c0_4, %c0_5] : memref<1x32xf32, #tpu.memory_space<vmem>>, vector<1x32xf32>
    %5 = vector.broadcast %4 : vector<1x32xf32> to vector<64x32xf32>
    %6 = arith.addf %3, %5 : vector<64x32xf32>
    %cst_6 = arith.constant 0.000000e+00 : f32
    %7 = vector.broadcast %cst_6 : f32 to vector<64x32xf32>
    %8 = arith.cmpf ogt, %6, %7 : vector<64x32xf32>
    %cst_7 = arith.constant 0.000000e+00 : f32
    %9 = vector.broadcast %cst_7 : f32 to vector<64x32xf32>
    %10 = arith.minimumf %6, %9 : vector<64x32xf32>
    %11 = math.exp %10 : vector<64x32xf32>
    %cst_8 = arith.constant 1.000000e+00 : f32
    %12 = vector.broadcast %cst_8 : f32 to vector<64x32xf32>
    %13 = arith.subf %11, %12 : vector<64x32xf32>
    %14 = arith.select %8, %6, %13 : vector<64x32xi1>, vector<64x32xf32>
    %cst_9 = arith.constant 0.000000e+00 : bf16
    %15 = vector.broadcast %cst_9 : bf16 to vector<10x10x32xbf16>
    %c0_10 = arith.constant 0 : index
    %c0_11 = arith.constant 0 : index
    %c0_12 = arith.constant 0 : index
    %16 = vector.load %arg9[%c0_10, %c0_11, %c0_12] : memref<10x10x32xbf16, #tpu.memory_space<vmem>>, vector<10x10x32xbf16>
    tpu.vector_store %arg9[%c0_10, %c0_11, %c0_12], %15 {strides = array<i32>} : memref<10x10x32xbf16, #tpu.memory_space<vmem>>, vector<10x10x32xbf16>,
    %17 = vector.shape_cast %14 : vector<64x32xf32> to vector<8x8x32xf32>
    %18 = arith.truncf %17 : vector<8x8x32xf32> to vector<8x8x32xbf16>
    %c1 = arith.constant 1 : index
    %c1_13 = arith.constant 1 : index
    %c0_14 = arith.constant 0 : index
    %19 = vector.load %arg9[%c1, %c1_13, %c0_14] : memref<10x10x32xbf16, #tpu.memory_space<vmem>>, vector<8x8x32xbf16>
    tpu.vector_store %arg9[%c1, %c1_13, %c0_14], %18 {strides = array<i32>} : memref<10x10x32xbf16, #tpu.memory_space<vmem>>, vector<8x8x32xbf16>,
    %cst_15 = arith.constant 0.000000e+00 : f32
    %20 = vector.broadcast %cst_15 : f32 to vector<64x32xf32>
    %c0_16 = arith.constant 0 : index
    %c0_17 = arith.constant 0 : index
    %c0_18 = arith.constant 0 : index
    %21 = vector.load %arg9[%c0_16, %c0_17, %c0_18] : memref<10x10x32xbf16, #tpu.memory_space<vmem>>, vector<8x8x32xbf16>
    %22 = vector.shape_cast %21 : vector<8x8x32xbf16> to vector<64x32xbf16>
    %c0_19 = arith.constant 0 : index
    %c0_20 = arith.constant 0 : index
    %c0_21 = arith.constant 0 : index
    %23 = vector.load %arg4[%c0_19, %c0_20, %c0_21] : memref<9x32x32xbf16, #tpu.memory_space<vmem>>, vector<1x32x32xbf16>
    %24 = vector.shape_cast %23 : vector<1x32x32xbf16> to vector<32x32xbf16>
    %cst_22 = arith.constant dense<0.000000e+00> : vector<64x32xf32>
    %25 = tpu.matmul %22, %24, %cst_22 {dimension_numbers = #tpu.dot_dimension_numbers<[1], [0], [0], [1], [0, 0, 1, 1], [], []>} : vector<64x32xbf16>, vector<32x32xbf16>, vector<64x32xf32> -> vector<64x32xf32>
    %26 = arith.addf %20, %25 : vector<64x32xf32>
    %c0_23 = arith.constant 0 : index
    %c1_24 = arith.constant 1 : index
    %c0_25 = arith.constant 0 : index
    %27 = vector.load %arg9[%c0_23, %c1_24, %c0_25] : memref<10x10x32xbf16, #tpu.memory_space<vmem>>, vector<8x8x32xbf16>
    %28 = vector.shape_cast %27 : vector<8x8x32xbf16> to vector<64x32xbf16>
    %c1_26 = arith.constant 1 : index
    %c0_27 = arith.constant 0 : index
    %c0_28 = arith.constant 0 : index
    %29 = vector.load %arg4[%c1_26, %c0_27, %c0_28] : memref<9x32x32xbf16, #tpu.memory_space<vmem>>, vector<1x32x32xbf16>
    %30 = vector.shape_cast %29 : vector<1x32x32xbf16> to vector<32x32xbf16>
    %cst_29 = arith.constant dense<0.000000e+00> : vector<64x32xf32>
    %31 = tpu.matmul %28, %30, %cst_29 {dimension_numbers = #tpu.dot_dimension_numbers<[1], [0], [0], [1], [0, 0, 1, 1], [], []>} : vector<64x32xbf16>, vector<32x32xbf16>, vector<64x32xf32> -> vector<64x32xf32>
    %32 = arith.addf %26, %31 : vector<64x32xf32>
    %c0_30 = arith.constant 0 : index
    %c2 = arith.constant 2 : index
    %c0_31 = arith.constant 0 : index
    %33 = vector.load %arg9[%c0_30, %c2, %c0_31] : memref<10x10x32xbf16, #tpu.memory_space<vmem>>, vector<8x8x32xbf16>
    %34 = vector.shape_cast %33 : vector<8x8x32xbf16> to vector<64x32xbf16>
    %c2_32 = arith.constant 2 : index
    %c0_33 = arith.constant 0 : index
    %c0_34 = arith.constant 0 : index
    %35 = vector.load %arg4[%c2_32, %c0_33, %c0_34] : memref<9x32x32xbf16, #tpu.memory_space<vmem>>, vector<1x32x32xbf16>
    %36 = vector.shape_cast %35 : vector<1x32x32xbf16> to vector<32x32xbf16>
    %cst_35 = arith.constant dense<0.000000e+00> : vector<64x32xf32>
    %37 = tpu.matmul %34, %36, %cst_35 {dimension_numbers = #tpu.dot_dimension_numbers<[1], [0], [0], [1], [0, 0, 1, 1], [], []>} : vector<64x32xbf16>, vector<32x32xbf16>, vector<64x32xf32> -> vector<64x32xf32>
    %38 = arith.addf %32, %37 : vector<64x32xf32>
    %c1_36 = arith.constant 1 : index
    %c0_37 = arith.constant 0 : index
    %c0_38 = arith.constant 0 : index
    %39 = vector.load %arg9[%c1_36, %c0_37, %c0_38] : memref<10x10x32xbf16, #tpu.memory_space<vmem>>, vector<8x8x32xbf16>
    %40 = vector.shape_cast %39 : vector<8x8x32xbf16> to vector<64x32xbf16>
    %c3 = arith.constant 3 : index
    %c0_39 = arith.constant 0 : index
    %c0_40 = arith.constant 0 : index
    %41 = vector.load %arg4[%c3, %c0_39, %c0_40] : memref<9x32x32xbf16, #tpu.memory_space<vmem>>, vector<1x32x32xbf16>
    %42 = vector.shape_cast %41 : vector<1x32x32xbf16> to vector<32x32xbf16>
    %cst_41 = arith.constant dense<0.000000e+00> : vector<64x32xf32>
    %43 = tpu.matmul %40, %42, %cst_41 {dimension_numbers = #tpu.dot_dimension_numbers<[1], [0], [0], [1], [0, 0, 1, 1], [], []>} : vector<64x32xbf16>, vector<32x32xbf16>, vector<64x32xf32> -> vector<64x32xf32>
    %44 = arith.addf %38, %43 : vector<64x32xf32>
    %c1_42 = arith.constant 1 : index
    %c1_43 = arith.constant 1 : index
    %c0_44 = arith.constant 0 : index
    %45 = vector.load %arg9[%c1_42, %c1_43, %c0_44] : memref<10x10x32xbf16, #tpu.memory_space<vmem>>, vector<8x8x32xbf16>
    %46 = vector.shape_cast %45 : vector<8x8x32xbf16> to vector<64x32xbf16>
    %c4 = arith.constant 4 : index
    %c0_45 = arith.constant 0 : index
    %c0_46 = arith.constant 0 : index
    %47 = vector.load %arg4[%c4, %c0_45, %c0_46] : memref<9x32x32xbf16, #tpu.memory_space<vmem>>, vector<1x32x32xbf16>
    %48 = vector.shape_cast %47 : vector<1x32x32xbf16> to vector<32x32xbf16>
    %cst_47 = arith.constant dense<0.000000e+00> : vector<64x32xf32>
    %49 = tpu.matmul %46, %48, %cst_47 {dimension_numbers = #tpu.dot_dimension_numbers<[1], [0], [0], [1], [0, 0, 1, 1], [], []>} : vector<64x32xbf16>, vector<32x32xbf16>, vector<64x32xf32> -> vector<64x32xf32>
    %50 = arith.addf %44, %49 : vector<64x32xf32>
    %c1_48 = arith.constant 1 : index
    %c2_49 = arith.constant 2 : index
    %c0_50 = arith.constant 0 : index
    %51 = vector.load %arg9[%c1_48, %c2_49, %c0_50] : memref<10x10x32xbf16, #tpu.memory_space<vmem>>, vector<8x8x32xbf16>
    %52 = vector.shape_cast %51 : vector<8x8x32xbf16> to vector<64x32xbf16>
    %c5 = arith.constant 5 : index
    %c0_51 = arith.constant 0 : index
    %c0_52 = arith.constant 0 : index
    %53 = vector.load %arg4[%c5, %c0_51, %c0_52] : memref<9x32x32xbf16, #tpu.memory_space<vmem>>, vector<1x32x32xbf16>
    %54 = vector.shape_cast %53 : vector<1x32x32xbf16> to vector<32x32xbf16>
    %cst_53 = arith.constant dense<0.000000e+00> : vector<64x32xf32>
    %55 = tpu.matmul %52, %54, %cst_53 {dimension_numbers = #tpu.dot_dimension_numbers<[1], [0], [0], [1], [0, 0, 1, 1], [], []>} : vector<64x32xbf16>, vector<32x32xbf16>, vector<64x32xf32> -> vector<64x32xf32>
    %56 = arith.addf %50, %55 : vector<64x32xf32>
    %c2_54 = arith.constant 2 : index
    %c0_55 = arith.constant 0 : index
    %c0_56 = arith.constant 0 : index
    %57 = vector.load %arg9[%c2_54, %c0_55, %c0_56] : memref<10x10x32xbf16, #tpu.memory_space<vmem>>, vector<8x8x32xbf16>
    %58 = vector.shape_cast %57 : vector<8x8x32xbf16> to vector<64x32xbf16>
    %c6 = arith.constant 6 : index
    %c0_57 = arith.constant 0 : index
    %c0_58 = arith.constant 0 : index
    %59 = vector.load %arg4[%c6, %c0_57, %c0_58] : memref<9x32x32xbf16, #tpu.memory_space<vmem>>, vector<1x32x32xbf16>
    %60 = vector.shape_cast %59 : vector<1x32x32xbf16> to vector<32x32xbf16>
    %cst_59 = arith.constant dense<0.000000e+00> : vector<64x32xf32>
    %61 = tpu.matmul %58, %60, %cst_59 {dimension_numbers = #tpu.dot_dimension_numbers<[1], [0], [0], [1], [0, 0, 1, 1], [], []>} : vector<64x32xbf16>, vector<32x32xbf16>, vector<64x32xf32> -> vector<64x32xf32>
    %62 = arith.addf %56, %61 : vector<64x32xf32>
    %c2_60 = arith.constant 2 : index
    %c1_61 = arith.constant 1 : index
    %c0_62 = arith.constant 0 : index
    %63 = vector.load %arg9[%c2_60, %c1_61, %c0_62] : memref<10x10x32xbf16, #tpu.memory_space<vmem>>, vector<8x8x32xbf16>
    %64 = vector.shape_cast %63 : vector<8x8x32xbf16> to vector<64x32xbf16>
    %c7 = arith.constant 7 : index
    %c0_63 = arith.constant 0 : index
    %c0_64 = arith.constant 0 : index
    %65 = vector.load %arg4[%c7, %c0_63, %c0_64] : memref<9x32x32xbf16, #tpu.memory_space<vmem>>, vector<1x32x32xbf16>
    %66 = vector.shape_cast %65 : vector<1x32x32xbf16> to vector<32x32xbf16>
    %cst_65 = arith.constant dense<0.000000e+00> : vector<64x32xf32>
    %67 = tpu.matmul %64, %66, %cst_65 {dimension_numbers = #tpu.dot_dimension_numbers<[1], [0], [0], [1], [0, 0, 1, 1], [], []>} : vector<64x32xbf16>, vector<32x32xbf16>, vector<64x32xf32> -> vector<64x32xf32>
    %68 = arith.addf %62, %67 : vector<64x32xf32>
    %c2_66 = arith.constant 2 : index
    %c2_67 = arith.constant 2 : index
    %c0_68 = arith.constant 0 : index
    %69 = vector.load %arg9[%c2_66, %c2_67, %c0_68] : memref<10x10x32xbf16, #tpu.memory_space<vmem>>, vector<8x8x32xbf16>
    %70 = vector.shape_cast %69 : vector<8x8x32xbf16> to vector<64x32xbf16>
    %c8 = arith.constant 8 : index
    %c0_69 = arith.constant 0 : index
    %c0_70 = arith.constant 0 : index
    %71 = vector.load %arg4[%c8, %c0_69, %c0_70] : memref<9x32x32xbf16, #tpu.memory_space<vmem>>, vector<1x32x32xbf16>
    %72 = vector.shape_cast %71 : vector<1x32x32xbf16> to vector<32x32xbf16>
    %cst_71 = arith.constant dense<0.000000e+00> : vector<64x32xf32>
    %73 = tpu.matmul %70, %72, %cst_71 {dimension_numbers = #tpu.dot_dimension_numbers<[1], [0], [0], [1], [0, 0, 1, 1], [], []>} : vector<64x32xbf16>, vector<32x32xbf16>, vector<64x32xf32> -> vector<64x32xf32>
    %74 = arith.addf %68, %73 : vector<64x32xf32>
    %c0_72 = arith.constant 0 : index
    %c0_73 = arith.constant 0 : index
    %75 = vector.load %arg5[%c0_72, %c0_73] : memref<1x32xf32, #tpu.memory_space<vmem>>, vector<1x32xf32>
    %76 = vector.broadcast %75 : vector<1x32xf32> to vector<64x32xf32>
    %77 = arith.addf %74, %76 : vector<64x32xf32>
    %c0_74 = arith.constant 0 : index
    %c0_75 = arith.constant 0 : index
    %c128 = arith.constant 128 : index
    %78 = vector.load %arg1[%c0_74, %c0_75, %c128] : memref<1x64x288xbf16, #tpu.memory_space<vmem>>, vector<1x64x32xbf16>
    %79 = vector.shape_cast %78 : vector<1x64x32xbf16> to vector<64x32xbf16>
    %80 = arith.extf %79 : vector<64x32xbf16> to vector<64x32xf32>
    %81 = arith.addf %77, %80 : vector<64x32xf32>
    %cst_76 = arith.constant 0.000000e+00 : f32
    %82 = vector.broadcast %cst_76 : f32 to vector<64x32xf32>
    %83 = arith.cmpf ogt, %81, %82 : vector<64x32xf32>
    %cst_77 = arith.constant 0.000000e+00 : f32
    %84 = vector.broadcast %cst_77 : f32 to vector<64x32xf32>
    %85 = arith.minimumf %81, %84 : vector<64x32xf32>
    %86 = math.exp %85 : vector<64x32xf32>
    %cst_78 = arith.constant 1.000000e+00 : f32
    %87 = vector.broadcast %cst_78 : f32 to vector<64x32xf32>
    %88 = arith.subf %86, %87 : vector<64x32xf32>
    %89 = arith.select %83, %81, %88 : vector<64x32xi1>, vector<64x32xf32>
    %c0_79 = arith.constant 0 : index
    %c0_80 = arith.constant 0 : index
    %c0_81 = arith.constant 0 : index
    %90 = vector.load %arg8[%c0_79, %c0_80, %c0_81] : memref<1x64x32xf32, #tpu.memory_space<vmem>>, vector<1x64x32xf32>
    %91 = vector.shape_cast %90 : vector<1x64x32xf32> to vector<64x32xf32>
    %92 = vector.shape_cast %89 : vector<64x32xf32> to vector<1x64x32xf32>
    tpu.vector_store %arg8[%c0_79, %c0_80, %c0_81], %92 {strides = array<i32>} : memref<1x64x32xf32, #tpu.memory_space<vmem>>, vector<1x64x32xf32>,
    return
  }
  func.func @transform_0(%arg0: i32) -> (i32, i32, i32) {
    %c0_i32 = arith.constant 0 : i32
    %c0_i32_0 = arith.constant 0 : i32
    %c0_i32_1 = arith.constant 0 : i32
    return %arg0, %c0_i32, %c0_i32_0 : i32, i32, i32
  }
  func.func @transform_1(%arg0: i32) -> (i32, i32) {
    %c0_i32 = arith.constant 0 : i32
    %c0_i32_0 = arith.constant 0 : i32
    %c0_i32_1 = arith.constant 0 : i32
    return %c0_i32, %c0_i32_0 : i32, i32
  }
  func.func @transform_2(%arg0: i32) -> (i32, i32) {
    %c0_i32 = arith.constant 0 : i32
    %c0_i32_0 = arith.constant 0 : i32
    %c0_i32_1 = arith.constant 0 : i32
    return %c0_i32, %c0_i32_0 : i32, i32
  }
  func.func @transform_3(%arg0: i32) -> (i32, i32, i32) {
    %c0_i32 = arith.constant 0 : i32
    %c0_i32_0 = arith.constant 0 : i32
    %c0_i32_1 = arith.constant 0 : i32
    %c0_i32_2 = arith.constant 0 : i32
    return %c0_i32, %c0_i32_0, %c0_i32_1 : i32, i32, i32
  }
  func.func @transform_4(%arg0: i32) -> (i32, i32) {
    %c0_i32 = arith.constant 0 : i32
    %c0_i32_0 = arith.constant 0 : i32
    %c0_i32_1 = arith.constant 0 : i32
    return %c0_i32, %c0_i32_0 : i32, i32
  }
  func.func @transform_5(%arg0: i32) -> (i32, i32) {
    %c0_i32 = arith.constant 0 : i32
    %c0_i32_0 = arith.constant 0 : i32
    %c0_i32_1 = arith.constant 0 : i32
    return %c0_i32, %c0_i32_0 : i32, i32
  }
  func.func @transform_6(%arg0: i32) -> (i32, i32) {
    %c0_i32 = arith.constant 0 : i32
    %c0_i32_0 = arith.constant 0 : i32
    %c0_i32_1 = arith.constant 0 : i32
    return %c0_i32, %c0_i32_0 : i32, i32
  }
  func.func @transform_7(%arg0: i32) -> (i32, i32, i32) {
    %c0_i32 = arith.constant 0 : i32
    %c0_i32_0 = arith.constant 0 : i32
    %c0_i32_1 = arith.constant 0 : i32
    return %arg0, %c0_i32, %c0_i32_0 : i32, i32, i32
  }
}

</mosaic_0001>

<bundles_post_ra>
// kernel: fwd.2
= control target key start
LH: loop header
LB: loop body
LE: loop exit
PB: predicated region body
PF: predicated region fallthrough
CT: control target
= control target key end

     0   :  { %s3226_s24 = smov 0   ;;  %s3846_s0 = inlined_call_operand.vmem [shape: bf16[2,64,144], index: 0, kind: input, shape index: {}]   ;;  %s3847_s1 = inlined_call_operand.vmem [shape: bf16[144,32], index: 1, kind: input, shape index: {}]   ;;  %s3848_s2 = inlined_call_operand.vmem [shape: f32[1,32], index: 2, kind: input, shape index: {}]   ;;  %s3849_s3 = inlined_call_operand.vmem [shape: bf16[9,32,32], index: 3, kind: input, shape index: {}]   ;;  %s3850_s4 = inlined_call_operand.vmem [shape: f32[1,32], index: 4, kind: input, shape index: {}]   ;;  %s3851_s5 = inlined_call_operand.vmem [shape: bf16[16,32], index: 5, kind: input, shape index: {}]   ;;  %s3852_s6 = inlined_call_operand.vmem [shape: f32[1,32], index: 6, kind: input, shape index: {}]   ;;  %s3853_s7 = inlined_call_operand.vmem [shape: f32[2,64,32], index: 7, kind: output, shape index: {}]  }
   0x1 LB: > { %s2589_s25 = sadd.s32 4294967295, %s3182_s24   ;;  %p2593_p0 = scmp.ge.s32.totalorder %s3182_s24, 1  ;;  %s3182_s24 = sphi %s3226_s24, %s17_s24  }
   0x2   : > { %p237_p1 = scmp.lt.s32.totalorder %s3182_s24, 3 }
   0x4   : > { %p238_p2 = pnand %p2593_p0, %p237_p1 }
   0x5   : > { %v3088_v0 = vld [vmem:[%s3847_s1] sm:$0xff] (!%p238_p2)   ;;  %v3184_v1 = vmov (!%p238_p2), 0   ;;  %p269_p3 = scmp.lt.s32.totalorder (!%p238_p2), %s2589_s25, 1  ;;  %v3089_v2 = vld [vmem:[%s3847_s1 + $0x8] sm:$0xff] (!%p238_p2)   ;;  %v3090_v3 = vld [vmem:[%s3847_s1 + $0x10] sm:$0xff] (!%p238_p2)   ;;  %vm403_vm0 = vcmask (!%p238_p2), 130048  }
   0x6   : > { %241 = sbr.rel (%p238_p2) target bundleno = 662 (0x296), region = 48  ;;  %416 = vmatprep.subr.bf16.mxu0 (!%p238_p2), %v3184_v1  ;;  %v3091_v4 = vld [vmem:[%s3847_s1 + $0x18] sm:$0xff] (!%p238_p2)   ;;  %v3092_v6 = vld [vmem:[%s3847_s1 + $0x20] sm:$0xff] (!%p238_p2)   ;;  %v3093_v7 = vld [vmem:[%s3847_s1 + $0x28] sm:$0xff] (!%p238_p2)   ;;  %vm529_vm1 = vcmask (!%p238_p2), 257024   ;;  %vm531_vm2 = vcmask (!%p238_p2), 253952  }
   0x7   : > { %417 = vmatpush1.bf16.msra.mxu0 (!%p238_p2), %v3088_v0  ;;  %v3094_v8 = vld [vmem:[%s3847_s1 + $0x30] sm:$0xff] (!%p238_p2)   ;;  %v3095_v9 = vld [vmem:[%s3847_s1 + $0x38] sm:$0xff] (!%p238_p2)   ;;  %v3096_v10 = vld [vmem:[%s3847_s1 + $0x40] sm:$0xff] (!%p238_p2)   ;;  %533 = vst.msk [vmem:[#allocation2 + $0x8] sm:$0xf] (!%p238_p2), %vm529_vm1, %v3184_v1  ;;  %s3185_s27 = smov (!%p238_p2), 64  }
   0x8   : > { %418 = vmatprep.subr.bf16.mxu0 (!%p238_p2), %v3184_v1  ;;  %534 = vst.msk [vmem:[#allocation2 + $0xc] sm:$0x1] (!%p238_p2), %vm531_vm2, %v3184_v1  ;;  %532 = vst.msk [vmem:[#allocation2 + $0x4] sm:$0x1] (!%p238_p2), %vm531_vm2, %v3184_v1  ;;  %v3111_v20 = vld [vmem:[%s3849_s3 + $0x30] sm:$0xff] (!%p238_p2)   ;;  %v3114_v22 = vld [vmem:[%s3849_s3 + $0x38] sm:$0xff] (!%p238_p2)  }
   0x9   : > { %530 = vst.msk [vmem:[#allocation2] sm:$0xf] (!%p238_p2), %vm529_vm1, %v3184_v1  ;;  %535 = vst.msk [vmem:[#allocation2 + $0x10] sm:$0xf] (!%p238_p2), %vm529_vm1, %v3184_v1  ;;  %2908 = vmatprep.subr.bf16.mxu1 (!%p238_p2), %v3111_v20  ;;  %v3116_v24 = vld [vmem:[%s3849_s3 + $0x10] sm:$0xff] (!%p238_p2)   ;;  %v3118_v25 = vld [vmem:[%s3849_s3 + $0x18] sm:$0xff] (!%p238_p2)  }
   0xa   : > { %536 = vst.msk [vmem:[#allocation2 + $0x14] sm:$0x1] (!%p238_p2), %vm531_vm2, %v3184_v1  ;;  %538 = vst.msk [vmem:[#allocation2 + $0x1c] sm:$0x1] (!%p238_p2), %vm531_vm2, %v3184_v1  ;;  %2909 = vmatpush3.bf16.msra.mxu1 (!%p238_p2), %v3111_v20  ;;  %v3351_v26 = vld [vmem:[%s3849_s3 + $0x40] sm:$0xff] (!%p238_p2)   ;;  %vm882_vm14 = vcmask (!%p238_p2), 261120  }
   0xb   : > { %419 = vmatpush1.bf16.msra.mxu0 (!%p238_p2), %v3089_v2  ;;  %537 = vst.msk [vmem:[#allocation2 + $0x18] sm:$0xf] (!%p238_p2), %vm529_vm1, %v3184_v1  ;;  %539 = vst.msk [vmem:[#allocation2 + $0x20] sm:$0xf] (!%p238_p2), %vm529_vm1, %v3184_v1  ;;  %2910 = vmatprep.subr.bf16.mxu1 (!%p238_p2), %v3114_v22  ;;  %v3357_v27 = vld [vmem:[%s3849_s3] sm:$0xff] (!%p238_p2)  }
   0xc   : > { %420 = vmatprep.subr.bf16.mxu0 (!%p238_p2), %v3184_v1  ;;  %540 = vst.msk [vmem:[#allocation2 + $0x24] sm:$0x1] (!%p238_p2), %vm531_vm2, %v3184_v1  ;;  %542 = vst.msk [vmem:[#allocation2 + $0x2c] sm:$0x1] (!%p238_p2), %vm531_vm2, %v3184_v1  ;;  %v3363_v28 = vld [vmem:[%s3848_s2] ss:$0 sm:$0xff] (!%p238_p2) }
   0xd   : > { %s3863_s25 = smov (!%p269_p3, %s2589_s25), 1  ;;  %541 = vst.msk [vmem:[#allocation2 + $0x28] sm:$0xf] %vm529_vm1, %v3184_v1  ;;  %543 = vst.msk [vmem:[#allocation2 + $0x30] sm:$0xf] %vm529_vm1, %v3184_v1 }
   0xe   : > { %s2803_s30 = sshll.u32 %s3863_s25, 6  ;;  %544 = vst.msk [vmem:[#allocation2 + $0x34] sm:$0x1] %vm531_vm2, %v3184_v1  ;;  %546 = vst.msk [vmem:[#allocation2 + $0x3c] sm:$0x1] %vm531_vm2, %v3184_v1  ;;  %2911 = vmatpush3.bf16.msra.mxu1 %v3114_v22 }
   0xf   : > { %s3254_s12 = scalar_lea.vmem %s3846_s0, %s2803_s30  ;;  %421 = vmatpush1.bf16.msra.mxu0 %v3090_v3  ;;  %545 = vst.msk [vmem:[#allocation2 + $0x38] sm:$0xf] %vm529_vm1, %v3184_v1  ;;  %547 = vst.msk [vmem:[#allocation2 + $0x40] sm:$0xf] %vm529_vm1, %v3184_v1  ;;  %2920 = vmatprep.subr.bf16.mxu1 %v3351_v26  ;;  %vm665_vm5 = vsmask.f32 7938  ;;  %s3825_s13 = scalar_lea.vmem %s3853_s7, %s2803_s30 }
  0x10   : > { %v3099_v5 = vld [vmem:[%s3254_s12 + $0x4] ss:$8 sps:$4 sm:$0xff]   ;;  %422 = vmatprep.subr.bf16.mxu0 %v3184_v1  ;;  %v3097_v11 = vld [vmem:[%s3254_s12] ss:$8 sps:$4 sm:$0xff]   ;;  %v3100_v12 = vld [vmem:[%s3254_s12 + $0x14] ss:$8 sps:$4 sm:$0xff]  }
  0x11   : > { %2616 = vmatprep.mubr.msk.bf16.mxu0 %vm403_vm0, %v3099_v5  ;;  %v3102_v13 = vld [vmem:[%s3254_s12 + $0x10] ss:$8 sps:$4 sm:$0xff]   ;;  %v3103_v14 = vld [vmem:[%s3254_s12 + $0x24] ss:$8 sps:$4 sm:$0xff]   ;;  %v3105_v15 = vld [vmem:[%s3254_s12 + $0x20] ss:$8 sps:$4 sm:$0xff]  }
  0x12   : > { %v3106_v16 = vld [vmem:[%s3254_s12 + $0x34] ss:$8 sps:$4 sm:$0xff]   ;;  %v3108_v17 = vld [vmem:[%s3254_s12 + $0x30] ss:$8 sps:$4 sm:$0xff]   ;;  %548 = vst.msk [vmem:[#allocation2 + $0x44] sm:$0x1] %vm531_vm2, %v3184_v1  ;;  %vm3394_vm9 = vmand %vm529_vm1, %vm665_vm5 }
  0x13   : > { %423 = vmatpush1.bf16.msra.mxu0 %v3091_v4  ;;  %549 = vst.msk [vmem:[#allocation2 + $0x48] sm:$0xf] %vm529_vm1, %v3184_v1  ;;  %v3109_v18 = vld [vmem:[%s3254_s12] ss:$8 sps:$4 sm:$0xff]   ;;  %v3110_v19 = vld [vmem:[%s3254_s12 + $0x10] ss:$8 sps:$4 sm:$0xff]  }
  0x14   : > { %424 = vmatprep.subr.bf16.mxu0 %v3184_v1  ;;  %550 = vst.msk [vmem:[#allocation2 + $0x4c] sm:$0x1] %vm531_vm2, %v3184_v1  ;;  %2379 = vrot.lane.b32.xlu0 %v3109_v18, %s3185_s27  ;;  %v3113_v21 = vld [vmem:[%s3254_s12 + $0x20] ss:$8 sps:$4 sm:$0xff]   ;;  %v3115_v23 = vld [vmem:[%s3254_s12 + $0x30] ss:$8 sps:$4 sm:$0xff]  }
  0x15   : > { %2383 = vrot.lane.b32.xlu1 %v3113_v21, %s3185_s27  ;;  %v3370_v42 = vld [vmem:[#allocation2] sm:$0xf]  ;;  %vm671_vm6 = vsmask.f32 256  ;;  %vm738_vm7 = vsmask.f32 3328 }
  0x16   : > { %v742_v47 = vshrl.u32 %v3370_v42, 16  ;;  %v745_v48 = vshll.u32 %v3370_v42, 16  ;;  %vm739_vm8 = vsmask.f32 7440  ;;  %v667_v18 = vld [vmem:[#allocation2 + $0x8] sm:$0xf]  ;;  %vm3403_vm10 = vmand %vm531_vm2, %vm671_vm6 }
  0x17   : > { %425 = vmatpush1.bf16.msra.mxu0 %v3092_v6  ;;  %v3387_v6 = vld [vmem:[#allocation2 + $0x4] sm:$0x1]  ;;  %vm3430_vm13 = vmor %vm738_vm7, %vm739_vm8  ;;  %vm1094_vm5 = vcmask 1046532  }
  0x18   : > { %426 = vmatprep.subr.bf16.mxu0 %v3184_v1  ;;  %2381 = vrot.lane.b32.xlu0 %v3110_v19, %s3185_s27  ;;  %v744_v53 = vrot.slane %v742_v47, 4  ;;  %v747_v54 = vrot.slane %v745_v48, 5 }
  0x19   : > { %2385 = vrot.lane.b32.xlu1 %v3115_v23, %s3185_s27  ;;  %v673_v23 = vld [vmem:[#allocation2 + $0xc] sm:$0x1] }
  0x1a   : > { %v748_v2 = vor.u32 %v747_v54, %v744_v53 }
  0x1b   : > { %427 = vmatpush1.bf16.msra.mxu0 %v3093_v7 }
  0x1c   : > { %428 = vmatprep.subr.bf16.mxu0 %v3184_v1 }
  0x1f   : > { %429 = vmatpush1.bf16.msra.mxu0 %v3094_v8  ;;  %v751_v8 = vshll.u32 %v3387_v6, 16 }
  0x20   : > { %430 = vmatprep.subr.bf16.mxu0 %v3184_v1 }
  0x23   : > { %431 = vmatpush1.bf16.msra.mxu0 %v3095_v9 }
  0x24   : > { %432 = vmatprep.subr.bf16.mxu0 %v3184_v1 }
  0x27   : > { %433 = vmatpush1.bf16.msra.mxu0 %v3096_v10 }
  0x28   : > { %2872 = vmatprep.subr.bf16.mxu0 %v3116_v24 }
  0x2a   : > { %449 = vmatmul.mubr.bf16.vlgmr.msra.gmra.mrb[0].mxu0 %v3097_v11 }
  0x2b   : > { %2617 = vmatprep.mubr.msk.bf16.mxu0 %vm403_vm0, %v3100_v12  ;;  %2873 = vmatpush3.bf16.msra.mxu0 %v3116_v24 }
  0x2c   : > { %2874 = vmatprep.subr.bf16.mxu0 %v3118_v25 }
  0x2f   : > { %2875 = vmatpush3.bf16.msra.mxu0 %v3118_v25 }
  0x30   : > { %2884 = vmatprep.subr.bf16.mxu0 %v3357_v27 }
  0x32   : > { %457 = vmatmul.mubr.bf16.gmra.mrb[4].mxu0 %v3102_v13  ;;  %v3390_v13 = vrot.slane %v748_v2, 4 }
  0x33   : > { %2618 = vmatprep.mubr.msk.bf16.mxu0 %vm403_vm0, %v3103_v14 }
  0x3a   : > { %465 = vmatmul.mubr.bf16.gmra.mrb[8].mxu0 %v3105_v15 }
  0x3b   : > { %2619 = vmatprep.mubr.msk.bf16.mxu0 %vm403_vm0, %v3106_v16 }
  0x42   : > { %473 = vmatmul.mubr.bf16.gmra.mrb[12].mxu0 %v3108_v17 }
  0xfd   : > { %v450_v29 = vpop.f32.mrb[0].mxu0 }
  0xfe   : > { %v451_v30 = vadd.f32 %v3363_v28, %v450_v29  ;;  %v452_v31 = vpop.f32.mrb[1].mxu0 }
  0xff   : > { %v453_v32 = vpop.f32.mrb[2].mxu0 }
 0x100   : > { %v489_v33 = vmin.f32 %v451_v30, 0.0  ;;  %v454_v34 = vadd.f32 %v3363_v28, %v453_v32  ;;  %v455_v35 = vpop.f32.mrb[3].mxu0  ;;  %vm481_vm3 = vcmp.gt.f32.partialorder %v451_v30, 0.0 }
 0x101   : > { %v676_v35 = vld [vmem:[#allocation2 + $0x10] sm:$0xf] }
 0x102   : > { %v497_v36 = vmul.f32 1.442695, %v489_v33  ;;  %v490_v37 = vmin.f32 %v454_v34, 0.0  ;;  %vm482_vm4 = vcmp.gt.f32.partialorder %v454_v34, 0.0 }
 0x104   : > { %3144 = vpow2.f32 %v497_v36  ;;  %v499_v38 = vmul.f32 1.442695, %v490_v37  ;;  %v679_v36 = vld [vmem:[#allocation2 + $0x14] sm:$0x1] }
 0x105   : > { %v458_v39 = vpop.f32.mrb[4].mxu0 }
 0x106   : > { %3146 = vpow2.f32 %v499_v38  ;;  %v3368_v40 = vadd.f32 %v3363_v28, %v458_v39  ;;  %v460_v41 = vpop.f32.mrb[5].mxu0 }
 0x107   : > { %v461_v43 = vpop.f32.mrb[6].mxu0 }
 0x108   : > { %v491_v44 = vmin.f32 %v3368_v40, 0.0  ;;  %v3374_v45 = vadd.f32 %v3363_v28, %v461_v43  ;;  %v463_v46 = vpop.f32.mrb[7].mxu0  ;;  %vm483_vm11 = vcmp.gt.f32.partialorder %v3368_v40, 0.0 }
 0x10a   : > { %v501_v49 = vmul.f32 1.442695, %v491_v44  ;;  %v492_v50 = vmin.f32 %v3374_v45, 0.0  ;;  %vm484_vm12 = vcmp.gt.f32.partialorder %v3374_v45, 0.0 }
 0x10c   : > { %3148 = vpow2.f32 %v501_v49  ;;  %v503_v51 = vmul.f32 1.442695, %v492_v50  ;;  %v3421_v50 = vrot.slane %v751_v8, 5  ;;  %v688_v8 = vld [vmem:[#allocation2 + $0x20] sm:$0xf] }
 0x10d   : > { %v466_v52 = vpop.f32.mrb[8].mxu0 }
 0x10e   : > { %v3145_v55 = vpop.eup %3144  ;;  %3150 = vpow2.f32 %v503_v51  ;;  %v3380_v56 = vadd.f32 %v3363_v28, %v466_v52  ;;  %v468_v57 = vpop.f32.mrb[9].mxu0 }
 0x10f   : > { %v2620_v58 = vadd.f32 -1.0, %v3145_v55  ;;  %v469_v59 = vpop.f32.mrb[10].mxu0 }
 0x110   : > { %v3147_v60 = vpop.eup %3146  ;;  %v493_v61 = vmin.f32 %v3380_v56, 0.0  ;;  %v3384_v62 = vadd.f32 %v3363_v28, %v469_v59  ;;  %v471_v63 = vpop.f32.mrb[11].mxu0  ;;  %vm485_vm15 = vcmp.gt.f32.partialorder %v3380_v56, 0.0 }
 0x111   : > { %v521_v0 = vsel %vm481_vm3, %v451_v30, %v2620_v58  ;;  %v2621_v1 = vadd.f32 -1.0, %v3147_v60 }
 0x112   : > { %v2805_v3 = vpack.c.bf16 %v521_v0, %v521_v0  ;;  %v505_v4 = vmul.f32 1.442695, %v493_v61  ;;  %v494_v5 = vmin.f32 %v3384_v62, 0.0  ;;  %v682_v61 = vld [vmem:[#allocation2 + $0x18] sm:$0xf]  ;;  %v754_v0 = vsel %vm3430_vm13, %v3390_v13, %v3421_v50 }
 0x113   : > { %v522_v7 = vsel %vm482_vm4, %v454_v34, %v2621_v1  ;;  %v685_v1 = vld [vmem:[#allocation2 + $0x1c] sm:$0x1]  ;;  %vm486_vm1 = vcmp.gt.f32.partialorder %v3384_v62, 0.0  ;;  %vm1093_vm4 = vcmask 1042432  }
 0x114   : > { %v584_v9 = vshrl.u32 %v2805_v3, 16  ;;  %v2806_v10 = vpack.c.bf16 %v522_v7, %v522_v7  ;;  %3152 = vpow2.f32 %v505_v4  ;;  %v507_v11 = vmul.f32 1.442695, %v494_v5  ;;  %vm3641_vm6 = vmor %vm1093_vm4, %vm1094_vm5 }
 0x115   : > { %v474_v12 = vpop.f32.mrb[12].mxu0  ;;  %v587_v16 = vshll.u32 %v2805_v3, 16 }
 0x116   : > { %v3149_v14 = vpop.eup %3148  ;;  %v586_v15 = vrot.slane %v584_v9, 7  ;;  %v592_v19 = vshrl.u32 %v2806_v10, 16  ;;  %v3399_v20 = vadd.f32 %v3363_v28, %v474_v12  ;;  %v476_v21 = vpop.f32.mrb[13].mxu0  ;;  %3154 = vpow2.f32 %v507_v11  ;;  %v691_v9 = vld [vmem:[#allocation2 + $0x24] sm:$0x1] }
 0x117   : > { %v2622_v24 = vadd.f32 -1.0, %v3149_v14  ;;  %v477_v25 = vpop.f32.mrb[14].mxu0  ;;  %v595_v33 = vshll.u32 %v2806_v10, 16 }
 0x118   : > { %v3151_v29 = vpop.eup %3150  ;;  %v589_v30 = vor.u32 %v587_v16, %v586_v15  ;;  %v590_v31 = vrot.slane %v586_v15, 4  ;;  %v594_v32 = vrot.slane %v592_v19, 7  ;;  %v479_v34 = vpop.f32.mrb[15].mxu0  ;;  %v495_v39 = vmin.f32 %v3399_v20, 0.0 }
 0x119   : > { %v523_v37 = vsel %vm483_vm11, %v3368_v40, %v2622_v24  ;;  %v2623_v38 = vadd.f32 -1.0, %v3151_v29  ;;  %v3412_v41 = vadd.f32 %v3363_v28, %v477_v25  ;;  %vm487_vm2 = vcmp.gt.f32.partialorder %v3399_v20, 0.0 }
 0x11a   : > { %v668_v43 = vsel %vm3394_vm9, %v589_v30, %v667_v18  ;;  %v674_v44 = vsel %vm3403_vm10, %v590_v31, %v673_v23  ;;  %v597_v46 = vor.u32 %v595_v33, %v594_v32  ;;  %v598_v47 = vrot.slane %v594_v32, 4  ;;  %v694_v32 = vld [vmem:[#allocation2 + $0x28] sm:$0xf] }
 0x11b   : > { %669 = vst [vmem:[#allocation2 + $0x8] sm:$0xf] %v668_v43  ;;  %675 = vst [vmem:[#allocation2 + $0xc] sm:$0x1] %v674_v44  ;;  %v2807_v48 = vpack.c.bf16 %v523_v37, %v523_v37  ;;  %v524_v40 = vsel %vm484_vm12, %v3374_v45, %v2623_v38  ;;  %v509_v49 = vmul.f32 1.442695, %v495_v39 }
 0x11c   : > { %v677_v28 = vsel %vm3394_vm9, %v597_v46, %v676_v35  ;;  %v680_v51 = vsel %vm3403_vm10, %v598_v47, %v679_v36  ;;  %v2808_v52 = vpack.c.bf16 %v524_v40, %v524_v40  ;;  %v496_v53 = vmin.f32 %v3412_v41, 0.0 }
 0x11d   : > { %678 = vst [vmem:[#allocation2 + $0x10] sm:$0xf] %v677_v28  ;;  %681 = vst [vmem:[#allocation2 + $0x14] sm:$0x1] %v680_v51  ;;  %v600_v45 = vshrl.u32 %v2807_v48, 16  ;;  %3156 = vpow2.f32 %v509_v49  ;;  %v603_v60 = vshll.u32 %v2807_v48, 16 }
 0x11e   : > { %v3153_v55 = vpop.eup %3152  ;;  %v608_v57 = vshrl.u32 %v2808_v52, 16  ;;  %v511_v58 = vmul.f32 1.442695, %v496_v53  ;;  %v611_v3 = vshll.u32 %v2808_v52, 16  ;;  %v697_v48 = vld [vmem:[#allocation2 + $0x2c] sm:$0x1] }
 0x11f   : > { %v602_v59 = vrot.slane %v600_v45, 7  ;;  %v2624_v63 = vadd.f32 -1.0, %v3153_v55  ;;  %vm488_vm3 = vcmp.gt.f32.partialorder %v3412_v41, 0.0 }
 0x120   : > { %v610_v2 = vrot.slane %v608_v57, 7  ;;  %3158 = vpow2.f32 %v511_v58  ;;  %v3155_v4 = vpop.eup %3154 }
 0x121   : > { %v605_v5 = vor.u32 %v603_v60, %v602_v59  ;;  %v606_v7 = vrot.slane %v602_v59, 4  ;;  %v525_v10 = vsel %vm485_vm15, %v3380_v56, %v2624_v63  ;;  %v2625_v15 = vadd.f32 -1.0, %v3155_v4 }
 0x122   : > { %v613_v11 = vor.u32 %v611_v3, %v610_v2  ;;  %v614_v12 = vrot.slane %v610_v2, 4  ;;  %v2809_v14 = vpack.c.bf16 %v525_v10, %v525_v10  ;;  %v3441_v16 = vld [vmem:[#allocation2 + $0x8] sm:$0xf]  ;;  %v3447_v21 = vld [vmem:[#allocation2 + $0xc] sm:$0x1] }
 0x123   : > { %v683_v18 = vsel %vm3394_vm9, %v605_v5, %v682_v61  ;;  %v686_v19 = vsel %vm3403_vm10, %v606_v7, %v685_v1  ;;  %v756_v23 = vshrl.u32 %v3441_v16, 16  ;;  %v759_v56 = vshll.u32 %v3441_v16, 16  ;;  %v700_v1 = vld [vmem:[#allocation2 + $0x30] sm:$0xf]  ;;  %v703_v2 = vld [vmem:[#allocation2 + $0x34] sm:$0x1] }
 0x124   : > { %684 = vst [vmem:[#allocation2 + $0x18] sm:$0xf] %v683_v18  ;;  %687 = vst [vmem:[#allocation2 + $0x1c] sm:$0x1] %v686_v19  ;;  %v689_v24 = vsel %vm3394_vm9, %v613_v11, %v688_v8  ;;  %v692_v25 = vsel %vm3403_vm10, %v614_v12, %v691_v9  ;;  %v616_v29 = vshrl.u32 %v2809_v14, 16  ;;  %v619_v30 = vshll.u32 %v2809_v14, 16 }
 0x125   : > { %v3112_v31 = vld [vmem:[#allocation2 + $0x8] ss:$8 sps:$4 sm:$0xff]   ;;  %690 = vst [vmem:[#allocation2 + $0x20] sm:$0xf] %v689_v24  ;;  %693 = vst [vmem:[#allocation2 + $0x24] sm:$0x1] %v692_v25  ;;  %v526_v33 = vsel %vm486_vm1, %v3384_v62, %v2625_v15 }
 0x126   : > { %v758_v34 = vrot.slane %v756_v23, 4  ;;  %v761_v35 = vrot.slane %v759_v56, 5  ;;  %v765_v36 = vshll.u32 %v3447_v21, 16  ;;  %v3459_v37 = vld [vmem:[#allocation2 + $0x10] sm:$0xf]  ;;  %v618_v38 = vrot.slane %v616_v29, 7  ;;  %2912 = vmatprep.mubr.msk.bf16.mxu1 %vm882_vm14, %v3112_v31 }
 0x127   : > { %v2810_v39 = vpack.c.bf16 %v526_v33, %v526_v33  ;;  %v3462_v43 = vld [vmem:[#allocation2 + $0x14] sm:$0x1]  ;;  %v770_v44 = vshrl.u32 %v3459_v37, 16  ;;  %v773_v46 = vshll.u32 %v3459_v37, 16  ;;  %v3157_v47 = vpop.eup %3156  ;;  %v706_v29 = vld [vmem:[#allocation2 + $0x38] sm:$0xf] }
 0x128   : > { %v762_v62 = vor.u32 %v761_v35, %v758_v34  ;;  %v767_v40 = vrot.slane %v765_v36, 5  ;;  %v621_v49 = vor.u32 %v619_v30, %v618_v38  ;;  %v622_v28 = vrot.slane %v618_v38, 4  ;;  %v3510_v38 = vld [vmem:[%s3849_s3 + $0x50] sm:$0xff]  }
 0x129   : > { %v624_v51 = vshrl.u32 %v2810_v39, 16  ;;  %v779_v52 = vshll.u32 %v3462_v43, 16  ;;  %v2626_v53 = vadd.f32 -1.0, %v3157_v47  ;;  %v772_v55 = vrot.slane %v770_v44, 4 }
 0x12a   : > { %v763_v45 = vrot.slane %v762_v62, 4  ;;  %v775_v57 = vrot.slane %v773_v46, 5  ;;  %v3159_v58 = vpop.eup %3158  ;;  %v695_v59 = vsel %vm3394_vm9, %v621_v49, %v694_v32  ;;  %v698_v60 = vsel %vm3403_vm10, %v622_v28, %v697_v48  ;;  %v715_v49 = vld [vmem:[#allocation2 + $0x44] sm:$0x1] }
 0x12b   : > { %v626_v61 = vrot.slane %v624_v51, 7  ;;  %v627_v63 = vshll.u32 %v2810_v39, 16  ;;  %696 = vst [vmem:[#allocation2 + $0x28] sm:$0xf] %v695_v59  ;;  %699 = vst [vmem:[#allocation2 + $0x2c] sm:$0x1] %v698_v60  ;;  %v527_v3 = vsel %vm487_vm2, %v3399_v20, %v2626_v53 }
 0x12c   : > { %v2627_v4 = vadd.f32 -1.0, %v3159_v58  ;;  %v768_v5 = vsel %vm3430_vm13, %v763_v45, %v767_v40  ;;  %v3478_v7 = vld [vmem:[#allocation2 + $0x18] sm:$0xf]  ;;  %v776_v8 = vor.u32 %v775_v57, %v772_v55  ;;  %v2811_v11 = vpack.c.bf16 %v527_v3, %v527_v3  ;;  %v3121_v20 = vld [vmem:[%s3849_s3 + $0x48] sm:$0xff]   ;;  %v3491_v18 = vld [vmem:[#allocation2 + $0x1c] sm:$0x1] }
 0x12d   : > { %v629_v9 = vor.u32 %v627_v63, %v626_v61  ;;  %v630_v10 = vrot.slane %v626_v61, 4  ;;  %v2640_v12 = vcombine.low %v754_v0, %v768_v5  ;;  %v3117_v14 = vld [vmem:[#allocation2 + $0x18] ss:$8 sps:$4 sm:$0xff]   ;;  %v781_v19 = vrot.slane %v779_v52, 5  ;;  %v709_v39 = vld [vmem:[#allocation2 + $0x3c] sm:$0x1] }
 0x12e   : > { %v528_v15 = vsel %vm488_vm3, %v3412_v41, %v2627_v4  ;;  %v784_v23 = vshrl.u32 %v3478_v7, 16  ;;  %v787_v56 = vshll.u32 %v3478_v7, 16  ;;  %v632_v0 = vshrl.u32 %v2811_v11, 16  ;;  %2913 = vmatmul.mubr.msk.bf16.vlgmr.msra.gmra.mrb[0].mxu1 %vm882_vm14, %v3117_v14  ;;  %v3501_v41 = vld [vmem:[#allocation2 + $0x20] sm:$0xf] }
 0x12f   : > { %v701_v13 = vsel %vm3394_vm9, %v629_v9, %v700_v1  ;;  %v704_v50 = vsel %vm3403_vm10, %v630_v10, %v703_v2  ;;  %2876 = vmatprep.mubr.msk.bf16.mxu0 %vm882_vm14, %v2640_v12  ;;  %v777_v24 = vrot.slane %v776_v8, 4  ;;  %v635_v25 = vshll.u32 %v2811_v11, 16  ;;  %2921 = vmatpush3.bf16.msra.mxu1 %v3351_v26  ;;  %v3512_v48 = vld [vmem:[#allocation2 + $0x24] sm:$0x1]  ;;  %v712_v40 = vld [vmem:[#allocation2 + $0x40] sm:$0xf] }
 0x130   : > { %702 = vst [vmem:[#allocation2 + $0x30] sm:$0xf] %v701_v13  ;;  %705 = vst [vmem:[#allocation2 + $0x34] sm:$0x1] %v704_v50  ;;  %v2812_v30 = vpack.c.bf16 %v528_v15, %v528_v15  ;;  %v786_v31 = vrot.slane %v784_v23, 4  ;;  %v789_v32 = vrot.slane %v787_v56, 5  ;;  %2922 = vmatprep.subr.bf16.mxu1 %v3121_v20 }
 0x131   : > { %v634_v33 = vrot.slane %v632_v0, 7  ;;  %v793_v34 = vshll.u32 %v3491_v18, 16  ;;  %v798_v35 = vshrl.u32 %v3501_v41, 16  ;;  %v801_v36 = vshll.u32 %v3501_v41, 16  ;;  %v3518_v58 = vld [vmem:[#allocation2] sm:$0xe] }
 0x132   : > { %v640_v44 = vshrl.u32 %v2812_v30, 16  ;;  %v643_v46 = vshll.u32 %v2812_v30, 16  ;;  %v790_v47 = vor.u32 %v789_v32, %v786_v31  ;;  %v782_v28 = vsel %vm3430_vm13, %v777_v24, %v781_v19  ;;  %v3516_v52 = vld [vmem:[#allocation2 + $0x28] sm:$0xf]  ;;  %v3524_v61 = vld [vmem:[#allocation2 + $0x2c] sm:$0x1] }
 0x133   : > { %v637_v26 = vor.u32 %v635_v25, %v634_v33  ;;  %v638_v62 = vrot.slane %v634_v33, 4  ;;  %v795_v51 = vrot.slane %v793_v34, 5  ;;  %v800_v55 = vrot.slane %v798_v35, 4  ;;  %2923 = vmatpush3.bf16.msra.mxu1 %v3121_v20  ;;  %v1372_v2 = vld [vmem:[#allocation2 + $0x8] sm:$0xf] }
 0x134   : > { %v642_v53 = vrot.slane %v640_v44, 7  ;;  %v791_v45 = vrot.slane %v790_v47, 4  ;;  %v803_v57 = vrot.slane %v801_v36, 5  ;;  %v807_v63 = vshll.u32 %v3512_v48, 16  ;;  %2932 = vmatprep.subr.bf16.mxu1 %v3510_v38  ;;  %v3531_v9 = vld [vmem:[#allocation2 + $0xc] sm:$0x1] }
 0x135   : > { %v707_v59 = vsel %vm3394_vm9, %v637_v26, %v706_v29  ;;  %v710_v60 = vsel %vm3403_vm10, %v638_v62, %v709_v39  ;;  %v812_v1 = vshrl.u32 %v3516_v52, 16  ;;  %v1374_v10 = vld [vmem:[#allocation2 + $0x10] sm:$0xf]  ;;  %v3126_v11 = vld [vmem:[%s3849_s3 + $0x8] sm:$0xff]   ;;  %v815_v15 = vshll.u32 %v3516_v52, 16  ;;  %v3554_v39 = vld [vmem:[%s3849_s3 + $0x20] sm:$0xff]  }
 0x136   : > { %708 = vst [vmem:[#allocation2 + $0x38] sm:$0xf] %v707_v59  ;;  %711 = vst [vmem:[#allocation2 + $0x3c] sm:$0x1] %v710_v60  ;;  %v645_v3 = vor.u32 %v643_v46, %v642_v53  ;;  %v646_v4 = vrot.slane %v642_v53, 4  ;;  %v796_v5 = vsel %vm3430_vm13, %v791_v45, %v795_v51  ;;  %v804_v8 = vor.u32 %v803_v57, %v800_v55 }
 0x137   : > { %v2641_v12 = vcombine.low %v782_v28, %v796_v5  ;;  %v3120_v14 = vld [vmem:[#allocation2 + $0x28] ss:$8 sps:$4 sm:$0xff]   ;;  %v814_v20 = vrot.slane %v812_v1, 4  ;;  %v821_v56 = vshll.u32 %v3524_v61, 16  ;;  %v3542_v13 = vld [vmem:[#allocation2 + $0x14] sm:$0x1] }
 0x138   : > { %v713_v19 = vsel %vm3394_vm9, %v645_v3, %v712_v40  ;;  %v716_v23 = vsel %vm3403_vm10, %v646_v4, %v715_v49  ;;  %v2660_v50 = vrot.slane %v3518_v58, 9  ;;  %2916 = vmatprep.mubr.msk.bf16.mxu1 %vm882_vm14, %v3120_v14  ;;  %v805_v0 = vrot.slane %v804_v8, 4  ;;  %v3547_v29 = vld [vmem:[#allocation2 + $0x30] sm:$0xf]  ;;  %v3557_v26 = vld [vmem:[#allocation2 + $0x34] sm:$0x1] }
 0x139   : > { %714 = vst [vmem:[#allocation2 + $0x40] sm:$0xf] %v713_v19  ;;  %717 = vst [vmem:[#allocation2 + $0x44] sm:$0x1] %v716_v23  ;;  %2877 = vmatmul.mubr.msk.bf16.vlgmr.msra.gmra.mrb[16].mxu0 %vm882_vm14, %v2641_v12  ;;  %v817_v24 = vrot.slane %v815_v15, 5  ;;  %v1389_v25 = vshrl.u32 %v1372_v2, 16 }
 0x13a   : > { %v1392_v17 = vshll.u32 %v1372_v2, 16  ;;  %v809_v22 = vrot.slane %v807_v63, 5  ;;  %v1398_v30 = vshll.u32 %v3531_v9, 16  ;;  %v1403_v31 = vshrl.u32 %v1374_v10, 16  ;;  %2885 = vmatpush3.bf16.msra.mxu0 %v3357_v27  ;;  %v1376_v59 = vld [vmem:[#allocation2 + $0x18] sm:$0xf] }
 0x13b   : > { %v1406_v32 = vshll.u32 %v1374_v10, 16  ;;  %v818_v33 = vor.u32 %v817_v24, %v814_v20  ;;  %v823_v34 = vrot.slane %v821_v56, 5  ;;  %v1391_v35 = vrot.slane %v1389_v25, 4  ;;  %2886 = vmatprep.subr.bf16.mxu0 %v3126_v11  ;;  %v3575_v15 = vld [vmem:[#allocation2 + $0x1c] sm:$0x1] }
 0x13c   : > { %v1394_v36 = vrot.slane %v1392_v17, 5  ;;  %v1405_v44 = vrot.slane %v1403_v31, 4  ;;  %v1412_v47 = vshll.u32 %v3542_v13, 16  ;;  %v826_v62 = vshrl.u32 %v3547_v29, 16  ;;  %v1378_v19 = vld [vmem:[#allocation2 + $0x20] sm:$0xf] }
 0x13d   : > { %v1408_v46 = vrot.slane %v1406_v32, 5  ;;  %v810_v27 = vsel %vm3430_vm13, %v805_v0, %v809_v22  ;;  %v819_v40 = vrot.slane %v818_v33, 4  ;;  %v3562_v28 = vld [vmem:[#allocation2 + $0x38] sm:$0xf]  ;;  %v829_v51 = vshll.u32 %v3547_v29, 16 }
 0x13e   : > { %v1395_v49 = vor.u32 %v1394_v36, %v1391_v35  ;;  %v1400_v53 = vrot.slane %v1398_v30, 5  ;;  %v1414_v55 = vrot.slane %v1412_v47, 5  ;;  %v828_v57 = vrot.slane %v826_v62, 4  ;;  %2887 = vmatpush3.bf16.msra.mxu0 %v3126_v11  ;;  %v3567_v1 = vld [vmem:[#allocation2 + $0x3c] sm:$0x1] }
 0x13f   : > { %v1409_v45 = vor.u32 %v1408_v46, %v1405_v44  ;;  %v824_v60 = vsel %vm3430_vm13, %v819_v40, %v823_v34  ;;  %v831_v2 = vrot.slane %v829_v51, 5  ;;  %v840_v3 = vshrl.u32 %v3562_v28, 16  ;;  %2896 = vmatprep.subr.bf16.mxu0 %v3554_v39  ;;  %v1380_v30 = vld [vmem:[#allocation2 + $0x28] sm:$0xf]  ;;  %v3583_v32 = vld [vmem:[#allocation2 + $0x24] sm:$0x1] }
 0x140   : > { %v1396_v63 = vrot.slane %v1395_v49, 4  ;;  %v2642_v4 = vcombine.low %v810_v27, %v824_v60  ;;  %v3122_v5 = vld [vmem:[#allocation2 + $0x38] ss:$8 sps:$4 sm:$0xff]   ;;  %v835_v10 = vshll.u32 %v3557_v26, 16  ;;  %v843_v20 = vshll.u32 %v3562_v28, 16 }
 0x141   : > { %v1410_v8 = vrot.slane %v1409_v45, 4  ;;  %v832_v11 = vor.u32 %v831_v2, %v828_v57  ;;  %v842_v14 = vrot.slane %v840_v3, 4  ;;  %2917 = vmatmul.mubr.msk.bf16.gmra.mrb[4].mxu1 %vm882_vm14, %v3122_v5  ;;  %v849_v56 = vshll.u32 %v3567_v1, 16  ;;  %v1382_v27 = vld [vmem:[#allocation2 + $0x30] sm:$0xf] }
 0x142   : > { %v1401_v12 = vsel %vm3430_vm13, %v1396_v63, %v1400_v53  ;;  %2880 = vmatprep.mubr.msk.bf16.mxu0 %vm882_vm14, %v2642_v4  ;;  %v1417_v0 = vshrl.u32 %v1376_v59, 16  ;;  %v1420_v24 = vshll.u32 %v1376_v59, 16  ;;  %v845_v22 = vrot.slane %v843_v20, 5  ;;  %v3589_v53 = vld [vmem:[#allocation2 + $0x2c] sm:$0x1] }
 0x143   : > { %v1415_v23 = vsel %vm3430_vm13, %v1410_v8, %v1414_v55  ;;  %v833_v17 = vrot.slane %v832_v11, 4  ;;  %v1098_v31 = vrot.slane %v3387_v6, 5  ;;  %v1426_v35 = vshll.u32 %v3575_v15, 16  ;;  %v3592_v60 = vld [vmem:[#allocation2 + $0x34] sm:$0x1] }
 0x144   : > { %v2700_v25 = vcombine.low %v1401_v12, %v1415_v23  ;;  %v1419_v33 = vrot.slane %v1417_v0, 4  ;;  %v1422_v34 = vrot.slane %v1420_v24, 5  ;;  %v1431_v36 = vshrl.u32 %v1378_v19, 16  ;;  %v1384_v2 = vld [vmem:[#allocation2 + $0x38] sm:$0xf] }
 0x145   : > { %v837_v44 = vrot.slane %v835_v10, 5  ;;  %v846_v46 = vor.u32 %v845_v22, %v842_v14  ;;  %v2650_v47 = vcombine.low %v3370_v42, %v3441_v16  ;;  %v1434_v62 = vshll.u32 %v1378_v19, 16  ;;  %v1386_v11 = vld [vmem:[#allocation2 + $0x40] sm:$0xf] }
 0x146   : > { %2924 = vmatprep.mubr.msk.bf16.mxu1 %vm882_vm14, %v2700_v25  ;;  %v851_v40 = vrot.slane %v849_v56, 5  ;;  %v1423_v49 = vor.u32 %v1422_v34, %v1419_v33  ;;  %v1433_v51 = vrot.slane %v1431_v36, 4  ;;  %v1445_v45 = vshrl.u32 %v1380_v30, 16  ;;  %v3128_v36 = vld [vmem:[%s3849_s3 + $0x58] sm:$0xff]  }
 0x147   : > { %v847_v55 = vrot.slane %v846_v46, 4  ;;  %v1436_v57 = vrot.slane %v1434_v62, 5  ;;  %v1440_v59 = vshll.u32 %v3583_v32, 16  ;;  %v1448_v63 = vshll.u32 %v1380_v30, 16  ;;  %v3611_v46 = vld [vmem:[#allocation2 + $0x44] sm:$0x1] }
 0x148   : > { %v838_v3 = vsel %vm3430_vm13, %v833_v17, %v837_v44  ;;  %v1428_v42 = vrot.slane %v1426_v35, 5  ;;  %v1447_v16 = vrot.slane %v1445_v45, 4  ;;  %v1459_v4 = vshrl.u32 %v1382_v27, 16  ;;  %v3609_v44 = vld [vmem:[#allocation2 + $0x3c] sm:$0x1] }
 0x149   : > { %v852_v5 = vsel %vm3430_vm13, %v847_v55, %v851_v40  ;;  %v1424_v8 = vrot.slane %v1423_v49, 4  ;;  %v1437_v10 = vor.u32 %v1436_v57, %v1433_v51  ;;  %v1450_v12 = vrot.slane %v1448_v63, 5  ;;  %v1614_v55 = vld [vmem:[#allocation2 + $0x8] sm:$0xe]  ;;  %v1615_v57 = vld [vmem:[#allocation2 + $0x10] sm:$0xe] }
 0x14a   : > { %v2643_v14 = vcombine.low %v838_v3, %v852_v5  ;;  %v1454_v20 = vshll.u32 %v3589_v53, 16  ;;  %v1461_v19 = vrot.slane %v1459_v4, 4  ;;  %v1462_v23 = vshll.u32 %v1382_v27, 16 }
 0x14b   : > { %v1438_v56 = vrot.slane %v1437_v10, 4  ;;  %v1442_v0 = vrot.slane %v1440_v59, 5  ;;  %v1451_v24 = vor.u32 %v1450_v12, %v1447_v16  ;;  %v1473_v25 = vshrl.u32 %v1384_v2, 16 }
 0x14c   : > { %2881 = vmatmul.mubr.msk.bf16.gmra.mrb[20].mxu0 %vm882_vm14, %v2643_v14  ;;  %v1464_v17 = vrot.slane %v1462_v23, 5  ;;  %v1468_v22 = vshll.u32 %v3592_v60, 16  ;;  %v1476_v30 = vshll.u32 %v1384_v2, 16  ;;  %v1487_v33 = vshrl.u32 %v1386_v11, 16  ;;  %v3133_v23 = vld [vmem:[%s3849_s3 + $0x28] sm:$0xff]  }
 0x14d   : > { %2888 = vmatprep.mubr.msk.bf16.mxu0 %vm882_vm14, %v2650_v47  ;;  %v1429_v34 = vsel %vm3430_vm13, %v1424_v8, %v1428_v42  ;;  %v1443_v35 = vsel %vm3430_vm13, %v1438_v56, %v1442_v0  ;;  %v1475_v62 = vrot.slane %v1473_v25, 4  ;;  %v1452_v40 = vrot.slane %v1451_v24, 4  ;;  %v1070_v8 = vld [vmem:[#allocation2 + $0x8] sm:$0xe] }
 0x14e   : > { %v2701_v27 = vcombine.low %v1429_v34, %v1443_v35  ;;  %v1465_v49 = vor.u32 %v1464_v17, %v1461_v19  ;;  %v1478_v51 = vrot.slane %v1476_v30, 5  ;;  %v1489_v47 = vrot.slane %v1487_v33, 4  ;;  %v3629_v19 = vld [vmem:[%s3849_s3 + $0x60] sm:$0xff]   ;;  %v1616_v33 = vld [vmem:[#allocation2 + $0x18] sm:$0xe] }
 0x14f   : > { %v1490_v45 = vshll.u32 %v1386_v11, 16  ;;  %v1456_v59 = vrot.slane %v1454_v20, 5  ;;  %v1470_v2 = vrot.slane %v1468_v22, 5  ;;  %v2651_v42 = vcombine.low %v3459_v37, %v3478_v7  ;;  %v1619_v34 = vld [vmem:[#allocation2 + $0x30] sm:$0xe] }
 0x150   : > { %2925 = vmatmul.mubr.msk.bf16.vlgmr.msra.gmra.mrb[0].mxu1 %vm882_vm14, %v2701_v27  ;;  %v1466_v63 = vrot.slane %v1465_v49, 4  ;;  %v1479_v3 = vor.u32 %v1478_v51, %v1475_v62  ;;  %v1482_v16 = vshll.u32 %v3609_v44, 16  ;;  %v1496_v5 = vshll.u32 %v3611_v46, 16  ;;  %v1072_v27 = vld [vmem:[#allocation2 + $0x18] sm:$0xe] }
 0x151   : > { %2933 = vmatpush3.bf16.msra.mxu1 %v3510_v38  ;;  %v1492_v4 = vrot.slane %v1490_v45, 5  ;;  %v1457_v10 = vsel %vm3430_vm13, %v1452_v40, %v1456_v59  ;;  %v2711_v11 = vrot.slane %v1615_v57, 9  ;;  %v1644_v14 = vrot.slane %v3542_v13, 5  ;;  %v1074_v45 = vld [vmem:[#allocation2 + $0x28] sm:$0xe] }
 0x152   : > { %v1471_v12 = vsel %vm3430_vm13, %v1466_v63, %v1470_v2  ;;  %2934 = vmatprep.subr.bf16.mxu1 %v3128_v36  ;;  %v2652_v37 = vcombine.low %v3501_v41, %v3516_v52  ;;  %v1480_v7 = vrot.slane %v1479_v3, 4  ;;  %v2710_v56 = vrot.slane %v1614_v55, 9  ;;  %v1073_v2 = vld [vmem:[#allocation2 + $0x20] sm:$0xe] }
 0x153   : > { %v2702_v38 = vcombine.low %v1457_v10, %v1471_v12  ;;  %v1493_v20 = vor.u32 %v1492_v4, %v1489_v47  ;;  %v1640_v13 = vrot.slane %v3531_v9, 5  ;;  %v2661_v0 = vrot.slane %v1070_v8, 9  ;;  %v1618_v47 = vld [vmem:[#allocation2 + $0x28] sm:$0xe]  ;;  %v1621_v8 = vld [vmem:[#allocation2 + $0x40] sm:$0xe] }
 0x154   : > { %2889 = vmatmul.mubr.msk.bf16.vlgmr.msra.gmra.mrb[16].mxu0 %vm882_vm14, %v2651_v42  ;;  %v1102_v24 = vrot.slane %v3447_v21, 5  ;;  %v1484_v41 = vrot.slane %v1482_v16, 5  ;;  %v1498_v25 = vrot.slane %v1496_v5, 5  ;;  %v1645_v9 = vsel %vm3641_vm6, %v2711_v11, %v1644_v14  ;;  %v1617_v21 = vld [vmem:[#allocation2 + $0x20] sm:$0xe] }
 0x155   : > { %2928 = vmatprep.mubr.msk.bf16.mxu1 %vm882_vm14, %v2702_v38  ;;  %2892 = vmatprep.mubr.msk.bf16.mxu0 %vm882_vm14, %v2652_v37  ;;  %v1494_v52 = vrot.slane %v1493_v20, 4  ;;  %v2713_v49 = vrot.slane %v1617_v21, 9  ;;  %v1652_v51 = vrot.slane %v3583_v32, 5  ;;  %v2653_v6 = vcombine.low %v3547_v29, %v3562_v28  ;;  %v1620_v10 = vld [vmem:[#allocation2 + $0x38] sm:$0xe] }
 0x156   : > { %2935 = vmatpush3.bf16.msra.mxu1 %v3128_v36  ;;  %2897 = vmatpush3.bf16.msra.mxu0 %v3554_v39  ;;  %v1485_v22 = vsel %vm3430_vm13, %v1480_v7, %v1484_v41  ;;  %v1641_v36 = vsel %vm3641_vm6, %v2710_v56, %v1640_v13  ;;  %v1099_v39 = vsel %vm3641_vm6, %v2660_v50, %v1098_v31  ;;  %v2712_v55 = vrot.slane %v1616_v33, 9  ;;  %v1071_v50 = vld [vmem:[#allocation2 + $0x10] sm:$0xe] }
 0x157   : > { %v1499_v30 = vsel %vm3430_vm13, %v1494_v52, %v1498_v25  ;;  %2944 = vmatprep.subr.bf16.mxu1 %v3629_v19  ;;  %2898 = vmatprep.subr.bf16.mxu0 %v3133_v23  ;;  %v1103_v62 = vsel %vm3641_vm6, %v2661_v0, %v1102_v24  ;;  %v2722_v40 = vcombine.low %v1641_v36, %v1645_v9  ;;  %v2715_v58 = vrot.slane %v1619_v34, 9  ;;  %v1075_v0 = vld [vmem:[#allocation2 + $0x30] sm:$0xe]  ;;  %v1917_v9 = vld [vmem:[#allocation2 + $0x18] sm:$0xf] }
 0x158   : > { %v2703_v35 = vcombine.low %v1485_v22, %v1499_v30  ;;  %v1660_v57 = vrot.slane %v3592_v60, 5  ;;  %v2672_v31 = vcombine.low %v1099_v39, %v1103_v62  ;;  %v1648_v59 = vrot.slane %v3575_v15, 5  ;;  %v3135_v62 = vld [vmem:[#allocation2 + $0x10] ss:$8 sps:$4 sm:$0xff]  }
 0x159   : > { %v2663_v63 = vrot.slane %v1072_v27, 9  ;;  %v1110_v32 = vrot.slane %v3491_v18, 5  ;;  %v2714_v3 = vrot.slane %v1618_v47, 9  ;;  %v1656_v29 = vrot.slane %v3589_v53, 5  ;;  %v1925_v47 = vld [vmem:[#allocation2 + $0x38] sm:$0xf] }
 0x15a   : > { %2929 = vmatmul.mubr.msk.bf16.gmra.mrb[4].mxu1 %vm882_vm14, %v2703_v35  ;;  %2899 = vmatpush3.bf16.msra.mxu0 %v3133_v23  ;;  %v2665_v28 = vrot.slane %v1074_v45, 9  ;;  %v1118_v42 = vrot.slane %v3524_v61, 5  ;;  %v1653_v60 = vsel %vm3641_vm6, %v2713_v49, %v1652_v51  ;;  %v2662_v16 = vrot.slane %v1071_v50, 9  ;;  %v1921_v51 = vld [vmem:[#allocation2 + $0x28] sm:$0xf] }
 0x15b   : > { %2936 = vmatprep.mubr.msk.bf16.mxu1 %vm882_vm14, %v2722_v40  ;;  %v1106_v15 = vrot.slane %v3462_v43, 5  ;;  %v1661_v18 = vsel %vm3641_vm6, %v2715_v58, %v1660_v57  ;;  %v2664_v4 = vrot.slane %v1073_v2, 9  ;;  %v1114_v5 = vrot.slane %v3512_v48, 5  ;;  %v3134_v43 = vld [vmem:[%s3849_s3 + $0x68] sm:$0xff]   ;;  %v1076_v48 = vld [vmem:[#allocation2 + $0x38] sm:$0xe] }
 0x15c   : > { %2893 = vmatmul.mubr.msk.bf16.gmra.mrb[20].mxu0 %vm882_vm14, %v2653_v6  ;;  %v1649_v53 = vsel %vm3641_vm6, %v2712_v55, %v1648_v59  ;;  %v1111_v61 = vsel %vm3641_vm6, %v2663_v63, %v1110_v32  ;;  %v1657_v11 = vsel %vm3641_vm6, %v2714_v3, %v1656_v29  ;;  %v1119_v14 = vsel %vm3641_vm6, %v2665_v28, %v1118_v42  ;;  %v1919_v55 = vld [vmem:[#allocation2 + $0x20] sm:$0xf]  ;;  %v3719_v58 = vld [vmem:[#allocation2 + $0x1c] sm:$0x1]  ;;  %v3721_v2 = vld [vmem:[#allocation2 + $0x14] sm:$0x1] }
 0x15d   : > { %2900 = vmatprep.mubr.msk.bf16.mxu0 %vm882_vm14, %v2672_v31  ;;  %v2723_v12 = vcombine.low %v1649_v53, %v1653_v60  ;;  %v2724_v38 = vcombine.low %v1657_v11, %v1661_v18  ;;  %v1107_v37 = vsel %vm3641_vm6, %v2662_v16, %v1106_v15  ;;  %v2717_v7 = vrot.slane %v1621_v8, 9  ;;  %v1923_v31 = vld [vmem:[#allocation2 + $0x30] sm:$0xf]  ;;  %v1929_v28 = vld [vmem:[#allocation2 + $0x48] sm:$0xf]  ;;  %v3139_v60 = vld [vmem:[%s3849_s3 + $0x78] sm:$0xff]  }
 0x15e   : > { %v1668_v20 = vrot.slane %v3611_v46, 5  ;;  %v2673_v23 = vcombine.low %v1107_v37, %v1111_v61  ;;  %v1115_v56 = vsel %vm3641_vm6, %v2664_v4, %v1114_v5  ;;  %v2716_v13 = vrot.slane %v1620_v10, 9  ;;  %v3136_v46 = vld [vmem:[%s3849_s3 + $0x70] sm:$0xff]   ;;  %v3137_v42 = vld [vmem:[#allocation2 + $0x20] ss:$8 sps:$4 sm:$0xff]  }
 0x15f   : > { %v2674_v24 = vcombine.low %v1115_v56, %v1119_v14  ;;  %v1664_v41 = vrot.slane %v3609_v44, 5  ;;  %v2667_v52 = vrot.slane %v1076_v48, 9  ;;  %v1126_v25 = vrot.slane %v3567_v1, 5  ;;  %v1915_v44 = vld [vmem:[#allocation2 + $0x10] sm:$0xf]  ;;  %v3733_v14 = vld [vmem:[%s3849_s3 + $0x80] sm:$0xff]  }
 0x160   : > { %v2666_v21 = vrot.slane %v1075_v0, 9  ;;  %v1122_v22 = vrot.slane %v3557_v26, 5  ;;  %v1946_v30 = vshrl.u32 %v1917_v9, 16  ;;  %v1949_v33 = vshll.u32 %v1917_v9, 16  ;;  %v3138_v5 = vld [vmem:[#allocation2 + $0x30] ss:$8 sps:$4 sm:$0xff]  }
 0x161   : > { %v1665_v1 = vsel %vm3641_vm6, %v2716_v13, %v1664_v41  ;;  %v1127_v34 = vsel %vm3641_vm6, %v2667_v52, %v1126_v25  ;;  %v1932_v36 = vshrl.u32 %v1915_v44, 16  ;;  %v1935_v39 = vshll.u32 %v1915_v44, 16  ;;  %v3735_v56 = vld [vmem:[#allocation2 + $0x2c] sm:$0x1]  ;;  %v3739_v52 = vld [vmem:[#allocation2 + $0x3c] sm:$0x1] }
 0x162   : > { %2937 = vmatmul.mubr.msk.bf16.vlgmr.msra.gmra.mrb[0].mxu1 %vm882_vm14, %v2723_v12  ;;  %v1123_v27 = vsel %vm3641_vm6, %v2666_v21, %v1122_v22  ;;  %v1948_v40 = vrot.slane %v1946_v30, 4  ;;  %v1951_v49 = vrot.slane %v1949_v33, 5  ;;  %v1974_v57 = vshrl.u32 %v1921_v51, 16  ;;  %v3744_v30 = vld [vmem:[#allocation2 + $0x34] sm:$0x1] }
 0x163   : > { %2945 = vmatpush3.bf16.msra.mxu1 %v3629_v19  ;;  %2940 = vmatprep.mubr.msk.bf16.mxu1 %vm882_vm14, %v2724_v38  ;;  %v1669_v19 = vsel %vm3641_vm6, %v2717_v7, %v1668_v20  ;;  %v2675_v26 = vcombine.low %v1123_v27, %v1127_v34  ;;  %v1934_v45 = vrot.slane %v1932_v36, 4  ;;  %v1937_v6 = vrot.slane %v1935_v39, 5  ;;  %v3140_v34 = vld [vmem:[#allocation2 + $0x40] ss:$8 sps:$4 sm:$0xff]  }
 0x164   : > { %2901 = vmatmul.mubr.msk.bf16.vlgmr.msra.gmra.mrb[16].mxu0 %vm882_vm14, %v2673_v23  ;;  %2946 = vmatprep.subr.bf16.mxu1 %v3134_v43  ;;  %v2725_v35 = vcombine.low %v1665_v1, %v1669_v19  ;;  %v1977_v50 = vshll.u32 %v1921_v51, 16  ;;  %v1952_v59 = vor.u32 %v1951_v49, %v1948_v40  ;;  %v2002_v63 = vshrl.u32 %v1925_v47, 16 }
 0x165   : > { %2904 = vmatprep.mubr.msk.bf16.mxu0 %vm882_vm14, %v2674_v24  ;;  %v2005_v32 = vshll.u32 %v1925_v47, 16  ;;  %v1960_v3 = vshrl.u32 %v1919_v55, 16  ;;  %v1963_v29 = vshll.u32 %v1919_v55, 16  ;;  %v1938_v16 = vor.u32 %v1937_v6, %v1934_v45  ;;  %v3737_v24 = vld [vmem:[#allocation2 + $0x24] sm:$0x1] }
 0x166   : > { %v1955_v15 = vshll.u32 %v3719_v58, 16  ;;  %v1988_v18 = vshrl.u32 %v1923_v31, 16  ;;  %v1991_v4 = vshll.u32 %v1923_v31, 16  ;;  %v1976_v8 = vrot.slane %v1974_v57, 4  ;;  %v3756_v31 = vld [vmem:[#allocation2 + $0x4c] sm:$0x1] }
 0x167   : > { %2947 = vmatpush3.bf16.msra.mxu1 %v3134_v43  ;;  %v1979_v53 = vrot.slane %v1977_v50, 5  ;;  %v1941_v61 = vshll.u32 %v3721_v2, 16  ;;  %v1953_v10 = vrot.slane %v1952_v59, 4  ;;  %v2004_v12 = vrot.slane %v2002_v63, 4  ;;  %v1927_v43 = vld [vmem:[#allocation2 + $0x40] sm:$0xf] }
 0x168   : > { %2956 = vmatprep.subr.bf16.mxu1 %v3136_v46  ;;  %v2007_v11 = vrot.slane %v2005_v32, 5  ;;  %v1962_v48 = vrot.slane %v1960_v3, 4  ;;  %v1965_v38 = vrot.slane %v1963_v29, 5  ;;  %v2030_v37 = vshrl.u32 %v1929_v28, 16  ;;  %v3754_v50 = vld [vmem:[#allocation2 + $0x44] sm:$0x1] }
 0x169   : > { %v2033_v7 = vshll.u32 %v1929_v28, 16  ;;  %v1939_v20 = vrot.slane %v1938_v16, 4  ;;  %v1957_v23 = vrot.slane %v1955_v15, 5  ;;  %v1990_v13 = vrot.slane %v1988_v18, 4  ;;  %v2158_v15 = vld [vmem:[#allocation2 + $0x18] sm:$0xe] }
 0x16a   : > { %2941 = vmatmul.mubr.msk.bf16.gmra.mrb[4].mxu1 %vm882_vm14, %v2725_v35  ;;  %v1993_v0 = vrot.slane %v1991_v4, 5  ;;  %v1980_v41 = vor.u32 %v1979_v53, %v1976_v8  ;;  %v2016_v25 = vshrl.u32 %v1927_v43, 16  ;;  %v2019_v9 = vshll.u32 %v1927_v43, 16 }
 0x16b   : > { %2948 = vmatprep.mubr.msk.bf16.mxu1 %vm882_vm14, %v3135_v62  ;;  %v1958_v19 = vsel %vm3430_vm13, %v1953_v10, %v1957_v23  ;;  %v2008_v21 = vor.u32 %v2007_v11, %v2004_v12  ;;  %v1966_v22 = vor.u32 %v1965_v38, %v1962_v48  ;;  %v1983_v44 = vshll.u32 %v3735_v56, 16  ;;  %v2157_v12 = vld [vmem:[#allocation2 + $0x10] sm:$0xe] }
 0x16c   : > { %2905 = vmatmul.mubr.msk.bf16.gmra.mrb[20].mxu0 %vm882_vm14, %v2675_v26  ;;  %v2032_v33 = vrot.slane %v2030_v37, 4  ;;  %v2035_v1 = vrot.slane %v2033_v7, 5  ;;  %v1969_v36 = vshll.u32 %v3737_v24, 16  ;;  %v1994_v39 = vor.u32 %v1993_v0, %v1990_v13  ;;  %v3143_v7 = vld [vmem:[%s3851_s5] sm:$0xff]   ;;  %v2162_v13 = vld [vmem:[#allocation2 + $0x38] sm:$0xe] }
 0x16d   : > { %v2011_v62 = vshll.u32 %v3739_v52, 16  ;;  %v1981_v26 = vrot.slane %v1980_v41, 4  ;;  %v2018_v40 = vrot.slane %v2016_v25, 4  ;;  %v2021_v49 = vrot.slane %v2019_v9, 5  ;;  %v2159_v41 = vld [vmem:[#allocation2 + $0x20] sm:$0xe] }
 0x16e   : > { %v1997_v51 = vshll.u32 %v3744_v30, 16  ;;  %v2009_v47 = vrot.slane %v2008_v21, 4  ;;  %v1967_v45 = vrot.slane %v1966_v22, 4  ;;  %v1985_v6 = vrot.slane %v1983_v44, 5 }
 0x16f   : > { %v1995_v55 = vrot.slane %v1994_v39, 4  ;;  %v2013_v57 = vrot.slane %v2011_v62, 5  ;;  %v2036_v59 = vor.u32 %v2035_v1, %v2032_v33  ;;  %v1971_v63 = vrot.slane %v1969_v36, 5  ;;  %v2163_v36 = vld [vmem:[#allocation2 + $0x40] sm:$0xe] }
 0x170   : > { %v1986_v32 = vsel %vm3430_vm13, %v1981_v26, %v1985_v6  ;;  %v2022_v3 = vor.u32 %v2021_v49, %v2018_v40  ;;  %v2039_v29 = vshll.u32 %v3756_v31, 16  ;;  %v1999_v28 = vrot.slane %v1997_v51, 5 }
 0x171   : > { %v2025_v16 = vshll.u32 %v3754_v50, 16  ;;  %v2761_v11 = vrot.slane %v2158_v15, 9  ;;  %v2187_v43 = vrot.slane %v3719_v58, 5  ;;  %v2760_v38 = vrot.slane %v2157_v12, 9 }
 0x172   : > { %2949 = vmatmul.mubr.msk.bf16.vlgmr.msra.gmra.mrb[0].mxu1 %vm882_vm14, %v3137_v42  ;;  %v2014_v42 = vsel %vm3430_vm13, %v2009_v47, %v2013_v57  ;;  %v2000_v4 = vsel %vm3430_vm13, %v1995_v55, %v1999_v28  ;;  %v2023_v53 = vrot.slane %v2022_v3, 4  ;;  %v2041_v10 = vrot.slane %v2039_v29, 5  ;;  %v2384_v55 = vpop.permute.xlu1 %2383  ;;  %v2782_v28 = vld [vmem:[%s3850_s4] ss:$0 sm:$0xff] }
 0x173   : > { %2957 = vmatpush3.bf16.msra.mxu1 %v3136_v46  ;;  %2952 = vmatprep.mubr.msk.bf16.mxu1 %vm882_vm14, %v3138_v5  ;;  %v1943_v46 = vrot.slane %v1941_v61, 5  ;;  %v3142_v5 = vld [vmem:[%s3849_s3 + $0x88] sm:$0xff]   ;;  %v2752_v8 = vcombine.low %v2000_v4, %v2014_v42  ;;  %v2037_v61 = vrot.slane %v2036_v59, 4  ;;  %v2027_v48 = vrot.slane %v2025_v16, 5  ;;  %v2783_v16 = vld [vmem:[%s3852_s6] ss:$0 sm:$0xff] }
 0x174   : > { %2958 = vmatprep.subr.bf16.mxu1 %v3139_v60  ;;  %v2183_v37 = vrot.slane %v3721_v2, 5  ;;  %v2188_v58 = vsel %vm3641_vm6, %v2761_v11, %v2187_v43  ;;  %v2765_v54 = vrot.slane %v2162_v13, 9  ;;  %v2203_v21 = vrot.slane %v3739_v52, 5 }
 0x175   : > { %v1944_v35 = vsel %vm3430_vm13, %v1939_v20, %v1943_v46  ;;  %v2028_v20 = vsel %vm3430_vm13, %v2023_v53, %v2027_v48  ;;  %v2042_v23 = vsel %vm3430_vm13, %v2037_v61, %v2041_v10  ;;  %v2195_v46 = vrot.slane %v3735_v56, 5 }
 0x176   : > { %v2750_v27 = vcombine.low %v1944_v35, %v1958_v19  ;;  %v2753_v0 = vcombine.low %v2028_v20, %v2042_v23  ;;  %v2184_v2 = vsel %vm3641_vm6, %v2760_v38, %v2183_v37  ;;  %v2161_v19 = vld [vmem:[#allocation2 + $0x30] sm:$0xe]  ;;  %v2762_v22 = vrot.slane %v2159_v41, 9  ;;  %v2164_v35 = vld [vmem:[#allocation2 + $0x48] sm:$0xe]  ;;  %v2386_v57 = vpop.permute.xlu1 %2385 }
 0x177   : > { %2959 = vmatpush3.bf16.msra.mxu1 %v3139_v60  ;;  %v1972_v60 = vsel %vm3430_vm13, %v1967_v45, %v1971_v63  ;;  %v2772_v25 = vcombine.low %v2184_v2, %v2188_v58  ;;  %v2191_v44 = vrot.slane %v3737_v24, 5  ;;  %v2764_v33 = vrot.slane %v2161_v19, 9  ;;  %v2380_v45 = vpop.permute.xlu0 %2379 }
 0x178   : > { %2968 = vmatprep.subr.bf16.mxu1 %v3733_v14  ;;  %v2751_v18 = vcombine.low %v1972_v60, %v1986_v32  ;;  %v2199_v1 = vrot.slane %v3744_v30, 5  ;;  %v2204_v56 = vsel %vm3641_vm6, %v2765_v54, %v2203_v21  ;;  %v2766_v26 = vrot.slane %v2163_v36, 9 }
 0x179   : > { %v2192_v39 = vsel %vm3641_vm6, %v2762_v22, %v2191_v44  ;;  %v2207_v30 = vrot.slane %v3754_v50, 5  ;;  %v2211_v40 = vrot.slane %v3756_v31, 5 }
 0x17a   : > { %2953 = vmatmul.mubr.msk.bf16.gmra.mrb[4].mxu1 %vm882_vm14, %v3140_v34  ;;  %v2200_v62 = vsel %vm3641_vm6, %v2764_v33, %v2199_v1 }
 0x17b   : > { %2960 = vmatprep.mubr.msk.bf16.mxu1 %vm882_vm14, %v2750_v27  ;;  %v2767_v27 = vrot.slane %v2164_v35, 9  ;;  %v2774_v24 = vcombine.low %v2200_v62, %v2204_v56  ;;  %v2208_v49 = vsel %vm3641_vm6, %v2766_v26, %v2207_v30  ;;  %v2382_v6 = vpop.permute.xlu0 %2381 }
 0x17d   : > { %v2212_v51 = vsel %vm3641_vm6, %v2767_v27, %v2211_v40 }
 0x17e   : > { %v2775_v47 = vcombine.low %v2208_v49, %v2212_v51 }
 0x182   : > { %2961 = vmatmul.mubr.msk.bf16.vlgmr.msra.gmra.mrb[0].mxu1 %vm882_vm14, %v2751_v18 }
 0x183   : > { %2969 = vmatpush3.bf16.msra.mxu1 %v3733_v14  ;;  %2964 = vmatprep.mubr.msk.bf16.mxu1 %vm882_vm14, %v2752_v8  ;;  %v2160_v14 = vld [vmem:[#allocation2 + $0x28] sm:$0xe] }
 0x184   : > { %2970 = vmatprep.subr.bf16.mxu1 %v3142_v5  ;;  %v2763_v9 = vrot.slane %v2160_v14, 9 }
 0x186   : > { %v2196_v34 = vsel %vm3641_vm6, %v2763_v9, %v2195_v46 }
 0x187   : > { %2971 = vmatpush3.bf16.msra.mxu1 %v3142_v5  ;;  %v2773_v52 = vcombine.low %v2192_v39, %v2196_v34 }
 0x188   : > { %2980 = vmatprep.subr.bf16.mxu1 %v3143_v7 }
 0x18a   : > { %2965 = vmatmul.mubr.msk.bf16.gmra.mrb[4].mxu1 %vm882_vm14, %v2753_v0 }
 0x18b   : > { %2972 = vmatprep.mubr.msk.bf16.mxu1 %vm882_vm14, %v2772_v25 }
 0x192   : > { %2973 = vmatmul.mubr.msk.bf16.vlgmr.msra.gmra.mrb[0].mxu1 %vm882_vm14, %v2773_v52 }
 0x193   : > { %2981 = vmatpush3.bf16.msra.mxu1 %v3143_v7  ;;  %2976 = vmatprep.mubr.msk.bf16.mxu1 %vm882_vm14, %v2774_v24 }
 0x19a   : > { %2977 = vmatmul.mubr.msk.bf16.gmra.mrb[4].mxu1 %vm882_vm14, %v2775_v47 }
 0x19b   : > { %2982 = vmatprep.mubr.msk.bf16.mxu1 %vm403_vm0, %v2380_v45 }
 0x1a2   : > { %2983 = vmatmul.mubr.msk.bf16.vlgmr.msra.gmra.mrb[0].mxu1 %vm403_vm0, %v2382_v6 }
 0x1a3   : > { %2986 = vmatprep.mubr.msk.bf16.mxu1 %vm403_vm0, %v2384_v55 }
 0x1aa   : > { %2987 = vmatmul.mubr.msk.bf16.gmra.mrb[4].mxu1 %vm403_vm0, %v2386_v57 }
 0x237   : > { %v2902_v50 = vpop.f32.mrb[16].mxu0 }
 0x238   : > { %v1203_v31 = vpop.f32.mrb[17].mxu0  ;;  %v2990_v15 = vadd.f32 %v2902_v50, %v2782_v28 }
 0x239   : > { %v2903_v59 = vpop.f32.mrb[18].mxu0  ;;  %v2993_v18 = vadd.f32 %v2782_v28, %v1203_v31 }
 0x23a   : > { %v1206_v17 = vpop.f32.mrb[19].mxu0  ;;  %v2996_v42 = vadd.f32 %v2903_v59, %v2782_v28 }
 0x23b   : > { %v2999_v60 = vadd.f32 %v2782_v28, %v1206_v17 }
 0x23c   : > { %v2997_v53 = vadd.f32 %v2996_v42, %v2783_v16 }
 0x23d   : > { %v3000_v12 = vadd.f32 %v2999_v60, %v2783_v16 }
 0x23f   : > { %v2906_v63 = vpop.f32.mrb[20].mxu0 }
 0x240   : > { %v1219_v32 = vpop.f32.mrb[21].mxu0  ;;  %v3002_v11 = vadd.f32 %v2906_v63, %v2782_v28 }
 0x241   : > { %v2907_v3 = vpop.f32.mrb[22].mxu0  ;;  %v3005_v37 = vadd.f32 %v2782_v28, %v1219_v32 }
 0x242   : > { %v1222_v29 = vpop.f32.mrb[23].mxu0  ;;  %v3008_v23 = vadd.f32 %v2907_v3, %v2782_v28  ;;  %v3003_v9 = vadd.f32 %v3002_v11, %v2783_v16 }
 0x243   : > { %v3011_v13 = vadd.f32 %v2782_v28, %v1222_v29  ;;  %v3006_v21 = vadd.f32 %v3005_v37, %v2783_v16 }
 0x244   : > { %v3009_v33 = vadd.f32 %v3008_v23, %v2783_v16 }
 0x245   : > { %v3012_v35 = vadd.f32 %v3011_v13, %v2783_v16 }
 0x275   : > { %v2984_v4 = vpop.f32.mrb[0].mxu1 }
 0x276   : > { %v2991_v5 = vadd.f32 %v2990_v15, %v2984_v4  ;;  %v2439_v8 = vpop.f32.mrb[1].mxu1 }
 0x277   : > { %v2994_v61 = vadd.f32 %v2993_v18, %v2439_v8  ;;  %v2985_v10 = vpop.f32.mrb[2].mxu1 }
 0x278   : > { %v2992_v43 = vadd.f32 %v2991_v5, %v2783_v16  ;;  %v2998_v48 = vadd.f32 %v2997_v53, %v2985_v10  ;;  %v2442_v38 = vpop.f32.mrb[3].mxu1 }
 0x279   : > { %v2995_v7 = vadd.f32 %v2994_v61, %v2783_v16  ;;  %v3001_v20 = vadd.f32 %v3000_v12, %v2442_v38 }
 0x27a   : > { %v2488_v58 = vmin.f32 %v2992_v43, 0.0  ;;  %v2489_v14 = vmin.f32 %v2998_v48, 0.0  ;;  %vm2480_vm0 = vcmp.gt.f32.partialorder %v2992_v43, 0.0  ;;  %vm2481_vm8 = vcmp.gt.f32.partialorder %v2998_v48, 0.0 }
 0x27b   : > { %v2486_v0 = vmin.f32 %v2995_v7, 0.0  ;;  %v2487_v2 = vmin.f32 %v3001_v20, 0.0  ;;  %vm2478_vm7 = vcmp.gt.f32.partialorder %v2995_v7, 0.0  ;;  %vm2479_vm9 = vcmp.gt.f32.partialorder %v3001_v20, 0.0 }
 0x27c   : > { %v2498_v41 = vmul.f32 1.442695, %v2488_v58  ;;  %v2500_v25 = vmul.f32 1.442695, %v2489_v14 }
 0x27d   : > { %v2494_v46 = vmul.f32 1.442695, %v2486_v0  ;;  %v2496_v19 = vmul.f32 1.442695, %v2487_v2  ;;  %v2988_v54 = vpop.f32.mrb[4].mxu1 }
 0x27e   : > { %3160 = vpow2.f32 %v2498_v41  ;;  %v3004_v22 = vadd.f32 %v3003_v9, %v2988_v54  ;;  %v2455_v44 = vpop.f32.mrb[5].mxu1 }
 0x27f   : > { %3162 = vpow2.f32 %v2494_v46  ;;  %v3007_v1 = vadd.f32 %v3006_v21, %v2455_v44  ;;  %v2989_v34 = vpop.f32.mrb[6].mxu1 }
 0x280   : > { %3164 = vpow2.f32 %v2500_v25  ;;  %v2492_v56 = vmin.f32 %v3004_v22, 0.0  ;;  %v3010_v36 = vadd.f32 %v3009_v33, %v2989_v34  ;;  %v2458_v39 = vpop.f32.mrb[7].mxu1  ;;  %vm2484_vm10 = vcmp.gt.f32.partialorder %v3004_v22, 0.0 }
 0x281   : > { %3166 = vpow2.f32 %v2496_v19  ;;  %v2490_v52 = vmin.f32 %v3007_v1, 0.0  ;;  %v3013_v62 = vadd.f32 %v3012_v35, %v2458_v39  ;;  %vm2482_vm11 = vcmp.gt.f32.partialorder %v3007_v1, 0.0 }
 0x282   : > { %v2506_v27 = vmul.f32 1.442695, %v2492_v56  ;;  %v2493_v24 = vmin.f32 %v3010_v36, 0.0  ;;  %vm2485_vm12 = vcmp.gt.f32.partialorder %v3010_v36, 0.0 }
 0x283   : > { %v2502_v26 = vmul.f32 1.442695, %v2490_v52  ;;  %v2491_v30 = vmin.f32 %v3013_v62, 0.0  ;;  %vm2483_vm13 = vcmp.gt.f32.partialorder %v3013_v62, 0.0 }
 0x284   : > { %3168 = vpow2.f32 %v2506_v27  ;;  %v2508_v40 = vmul.f32 1.442695, %v2493_v24 }
 0x285   : > { %3170 = vpow2.f32 %v2502_v26  ;;  %v2504_v49 = vmul.f32 1.442695, %v2491_v30 }
 0x286   : > { %3172 = vpow2.f32 %v2508_v40 }
 0x287   : > { %3174 = vpow2.f32 %v2504_v49 }
 0x288   : > { %v3161_v51 = vpop.eup %3160 }
 0x289   : > { %v3163_v47 = vpop.eup %3162  ;;  %v2795_v45 = vadd.f32 -1.0, %v3161_v51 }
 0x28a   : > { %v3165_v6 = vpop.eup %3164  ;;  %v2793_v55 = vadd.f32 -1.0, %v3163_v47 }
 0x28b   : > { %v3167_v57 = vpop.eup %3166  ;;  %v2520_v50 = vsel %vm2480_vm0, %v2992_v43, %v2795_v45  ;;  %v2796_v31 = vadd.f32 -1.0, %v3165_v6 }
 0x28c   : > { %2528 = vst.msk [vmem:[%s3825_s13 + $0x10] sm:$0xff] %vm882_vm14, %v2520_v50  ;;  %v2518_v59 = vsel %vm2478_vm7, %v2995_v7, %v2793_v55  ;;  %v2794_v17 = vadd.f32 -1.0, %v3167_v57 }
 0x28d   : > { %2526 = vst.msk [vmem:[%s3825_s13] sm:$0xff] %vm882_vm14, %v2518_v59  ;;  %v2521_v63 = vsel %vm2481_vm8, %v2998_v48, %v2796_v31 }
 0x28e   : > { %v3169_v32 = vpop.eup %3168  ;;  %2529 = vst.msk [vmem:[%s3825_s13 + $0x18] sm:$0xff] %vm882_vm14, %v2521_v63  ;;  %v2519_v3 = vsel %vm2479_vm9, %v3001_v20, %v2794_v17 }
 0x28f   : > { %v3171_v29 = vpop.eup %3170  ;;  %2527 = vst.msk [vmem:[%s3825_s13 + $0x8] sm:$0xff] %vm882_vm14, %v2519_v3  ;;  %v2799_v28 = vadd.f32 -1.0, %v3169_v32 }
 0x290   : > { %v3173_v42 = vpop.eup %3172  ;;  %v2797_v60 = vadd.f32 -1.0, %v3171_v29 }
 0x291   : > { %v3175_v16 = vpop.eup %3174  ;;  %v2524_v15 = vsel %vm2484_vm10, %v3004_v22, %v2799_v28  ;;  %v2800_v18 = vadd.f32 -1.0, %v3173_v42 }
 0x292   : > { %2532 = vst.msk [vmem:[%s3825_s13 + $0x30] sm:$0xff] %vm882_vm14, %v2524_v15  ;;  %v2522_v4 = vsel %vm2482_vm11, %v3007_v1, %v2797_v60  ;;  %v2798_v5 = vadd.f32 -1.0, %v3175_v16 }
 0x293   : > { %2530 = vst.msk [vmem:[%s3825_s13 + $0x20] sm:$0xff] %vm882_vm14, %v2522_v4  ;;  %v2525_v8 = vsel %vm2485_vm12, %v3010_v36, %v2800_v18 }
 0x294   : > { %2533 = vst.msk [vmem:[%s3825_s13 + $0x38] sm:$0xff] %vm882_vm14, %v2525_v8  ;;  %v2523_v53 = vsel %vm2483_vm13, %v3013_v62, %v2798_v5 }
 0x295   : > { %2531 = vst.msk [vmem:[%s3825_s13 + $0x28] sm:$0xff] %vm882_vm14, %v2523_v53 }
 0x296 PF: > { %s17_s24 = sadd.s32 1, %s3182_s24  }
 0x297   : > { %p14_p4 = scmp.ge.s32.totalorder %s17_s24, 4  }
 0x299   :  { %16 = sbr.rel (!%p14_p4) target bundleno = 1 (0x1), region = 88 }

// kernel: fwd.3
= control target key start
LH: loop header
LB: loop body
LE: loop exit
PB: predicated region body
PF: predicated region fallthrough
CT: control target
= control target key end

     0   :  { %12 = vsyncpa [#allocation4], 0  ;;  %s4123_s0 = inlined_call_operand.vmem [shape: bf16[2,64,288], index: 0, kind: input, shape index: {}]   ;;  %s4124_s1 = inlined_call_operand.vmem [shape: bf16[288,32], index: 1, kind: input, shape index: {}]   ;;  %s4125_s2 = inlined_call_operand.vmem [shape: f32[1,32], index: 2, kind: input, shape index: {}]   ;;  %s4126_s3 = inlined_call_operand.vmem [shape: bf16[9,32,32], index: 3, kind: input, shape index: {}]   ;;  %s4127_s4 = inlined_call_operand.vmem [shape: f32[1,32], index: 4, kind: input, shape index: {}]   ;;  %s4128_s5 = inlined_call_operand.vmem [shape: bf16[32,32], index: 5, kind: input, shape index: {}]   ;;  %s4129_s6 = inlined_call_operand.vmem [shape: f32[1,32], index: 6, kind: input, shape index: {}]   ;;  %s4130_s7 = inlined_call_operand.hbm [shape: f32[2,64,32], index: 7, kind: output, shape index: {}]  }
   0x1   :  { %14 = vsyncpa [#allocation4 + $0x1], 0  ;;  %s3421_s24 = smov 0   ;;  %s3423_s25 = smov 0  }
   0x2   :  { %s3425_s26 = smov 0   ;;  %s3427_s27 = smov 0  }
   0x3 LB: > { %s3442_s5 = sadd.s32 4294967295, %s3375_s27   ;;  %s2664_s6 = sadd.s32 4294967294, %s3375_s27   ;;  %s3375_s27 = sphi %s3427_s27, %s4144_s27   ;;  %s3371_s26 = sphi %s3425_s26, %s4143_s26   ;;  %s3367_s25 = sphi %s3423_s25, %s4142_s25   ;;  %s3363_s24 = sphi %s3421_s24, %s4141_s24  }
   0x4   : > { %s3446_s28 = sadd.s32 1, %s3375_s27   ;;  %s179_s29 = sadd.s32 1, %s3371_s26 }
   0x5   : > { %s176_s30 = ssub.s32 %s3375_s27, %s3446_s28  ;;  %p189_p0 = scmp.ne.s32.totalorder %s3371_s26, %s3367_s25 }
   0x6   : > { %p177_p1 = scmp.eq.s32.totalorder %s176_s30, 0  ;;  %p190_p2 = scmp.eq.s32.totalorder %s3442_s5, 1 }
   0x7   : > { %p195_p3 = scmp.ne.s32.totalorder %s3367_s25, %s3363_s24  ;;  %p196_p4 = scmp.eq.s32.totalorder %s2664_s6, 1 }
   0x8   : > { %s3457_s8 = scalar_select %p177_p1, %s3371_s26, %s179_s29  }
   0x9   : > { %p3459_p5 = por %p190_p2, %p189_p0  ;;  %p3463_p6 = por %p196_p4, %p195_p3 }
   0xa   : > { %p2667_p7 = scmp.ge.s32.totalorder %s3375_s27, 1  ;;  %p240_p8 = scmp.lt.s32.totalorder %s3375_s27, 3 }
   0xc   : > { %p241_p9 = pnand %p2667_p7, %p240_p8 }
   0xd   : > { %v3217_v0 = vld [vmem:[%s4124_s1 + $0x40] sm:$0xff] (!%p241_p9)   ;;  %v3219_v2 = vld [vmem:[%s4124_s1 + $0x48] sm:$0xff] (!%p241_p9)   ;;  %p272_p10 = scmp.lt.s32.totalorder (!%p241_p9), %s3442_s5, 1  ;;  %v3221_v4 = vld [vmem:[%s4124_s1 + $0x50] sm:$0xff] (!%p241_p9)   ;;  %vm505_vm0 = vcmask (!%p241_p9), 261120   ;;  %vm696_vm1 = vcmask (!%p241_p9), 257024  }
   0xe   : > { %244 = sbr.rel (%p241_p9) target bundleno = 699 (0x2bb), region = 48  ;;  %v3218_v1 = vld [vmem:[%s4124_s1] sm:$0xff] (!%p241_p9)   ;;  %2890 = vmatprep.subr.bf16.mxu0 (!%p241_p9), %v3217_v0  ;;  %v3220_v3 = vld [vmem:[%s4124_s1 + $0x8] sm:$0xff] (!%p241_p9)   ;;  %v3222_v5 = vld [vmem:[%s4124_s1 + $0x10] sm:$0xff] (!%p241_p9)   ;;  %vm698_vm2 = vcmask (!%p241_p9), 253952   ;;  %v3377_v30 = vmov (!%p241_p9), 0  }
   0xf   : > { %2891 = vmatpush3.bf16.msra.mxu0 (!%p241_p9), %v3218_v1  ;;  %v3223_v6 = vld [vmem:[%s4124_s1 + $0x58] sm:$0xff] (!%p241_p9)   ;;  %v3225_v8 = vld [vmem:[%s4124_s1 + $0x60] sm:$0xff] (!%p241_p9)   ;;  %v3227_v10 = vld [vmem:[%s4124_s1 + $0x68] sm:$0xff] (!%p241_p9)   ;;  %704 = vst.msk [vmem:[#allocation2 + $0x18] sm:$0xf] (!%p241_p9), %vm696_vm1, %v3377_v30  ;;  %vm1259_vm7 = vcmask (!%p241_p9), 1042432  }
  0x10   : > { %2892 = vmatprep.subr.bf16.mxu0 (!%p241_p9), %v3219_v2  ;;  %v3224_v7 = vld [vmem:[%s4124_s1 + $0x18] sm:$0xff] (!%p241_p9)   ;;  %v3226_v9 = vld [vmem:[%s4124_s1 + $0x20] sm:$0xff] (!%p241_p9)   ;;  %v3228_v12 = vld [vmem:[%s4124_s1 + $0x28] sm:$0xff] (!%p241_p9)   ;;  %705 = vst.msk [vmem:[#allocation2 + $0x1c] sm:$0x1] (!%p241_p9), %vm698_vm2, %v3377_v30  ;;  %vm1260_vm8 = vcmask (!%p241_p9), 1046532  }
  0x11   : > { %v3229_v13 = vld [vmem:[%s4124_s1 + $0x70] sm:$0xff] (!%p241_p9)   ;;  %v3231_v15 = vld [vmem:[%s4124_s1 + $0x78] sm:$0xff] (!%p241_p9)   ;;  %v3236_v17 = vld [vmem:[%s4124_s1 + $0x80] sm:$0xff] (!%p241_p9)   ;;  %697 = vst.msk [vmem:[#allocation2] sm:$0xf] (!%p241_p9), %vm696_vm1, %v3377_v30  ;;  %s2889_s18 = sshll.u32 (!%p241_p9), %s3442_s5, 10 }
  0x12   : > { %v3230_v14 = vld [vmem:[%s4124_s1 + $0x30] sm:$0xff] (!%p241_p9)   ;;  %v3232_v16 = vld [vmem:[%s4124_s1 + $0x38] sm:$0xff] (!%p241_p9)   ;;  %v3243_v20 = vld [vmem:[%s4124_s1 + $0x88] sm:$0xff] (!%p241_p9)   ;;  %699 = vst.msk [vmem:[#allocation2 + $0x4] sm:$0x1] (!%p241_p9), %vm698_vm2, %v3377_v30  ;;  %s3378_s6 = smov (!%p241_p9), [#allocation3]  }
  0x13   : > { %2893 = vmatpush3.bf16.msra.mxu0 (!%p241_p9), %v3220_v3  ;;  %700 = vst.msk [vmem:[#allocation2 + $0x8] sm:$0xf] (!%p241_p9), %vm696_vm1, %v3377_v30  ;;  %702 = vst.msk [vmem:[#allocation2 + $0x10] sm:$0xf] (!%p241_p9), %vm696_vm1, %v3377_v30  ;;  %v3251_v31 = vld [vmem:[%s4126_s3 + $0x20] sm:$0xff] (!%p241_p9)   ;;  %v3252_v32 = vld [vmem:[%s4126_s3 + $0x28] sm:$0xff] (!%p241_p9)  }
  0x14   : > { %2894 = vmatprep.subr.bf16.mxu0 (!%p241_p9), %v3221_v4  ;;  %701 = vst.msk [vmem:[#allocation2 + $0xc] sm:$0x1] (!%p241_p9), %vm698_vm2, %v3377_v30  ;;  %703 = vst.msk [vmem:[#allocation2 + $0x14] sm:$0x1] (!%p241_p9), %vm698_vm2, %v3377_v30  ;;  %3026 = vmatprep.subr.bf16.mxu1 (!%p241_p9), %v3251_v31  ;;  %v3253_v33 = vld [vmem:[%s4126_s3 + $0x10] sm:$0xff] (!%p241_p9)   ;;  %v3255_v35 = vld [vmem:[%s4126_s3 + $0x18] sm:$0xff] (!%p241_p9)  }
  0x15   : > { %s273_s21 = scalar_select %p272_p10, %s3442_s5, 1  ;;  %706 = vst.msk [vmem:[#allocation2 + $0x20] sm:$0xf] %vm696_vm1, %v3377_v30  ;;  %708 = vst.msk [vmem:[#allocation2 + $0x28] sm:$0xf] %vm696_vm1, %v3377_v30  ;;  %3027 = vmatpush3.bf16.msra.mxu1 %v3251_v31  ;;  %v3578_v34 = vld [vmem:[%s4126_s3 + $0x30] sm:$0xff]  }
  0x16   : > { %707 = vst.msk [vmem:[#allocation2 + $0x24] sm:$0x1] %vm698_vm2, %v3377_v30  ;;  %709 = vst.msk [vmem:[#allocation2 + $0x2c] sm:$0x1] %vm698_vm2, %v3377_v30  ;;  %3028 = vmatprep.subr.bf16.mxu1 %v3252_v32  ;;  %v3587_v36 = vld [vmem:[%s4126_s3] sm:$0xff]   ;;  %s4070_s5 = scalar_lea.hbm %s4130_s7, %s2889_s18  ;;  %s3317_s29 = sshll.u32 %s3378_s6, 4  ;;  %s3318_s29 = int_to_ptr.vmem [resolvable:$false] %s3317_s29 }
  0x17   : > { %s3174_s30 = smul.u32 96, %s273_s21  ;;  %2895 = vmatpush3.bf16.msra.mxu0 %v3222_v5  ;;  %710 = vst.msk [vmem:[#allocation2 + $0x30] sm:$0xf] %vm696_vm1, %v3377_v30  ;;  %712 = vst.msk [vmem:[#allocation2 + $0x38] sm:$0xf] %vm696_vm1, %v3377_v30 }
  0x18   : > { %2896 = vmatprep.subr.bf16.mxu0 %v3223_v6  ;;  %711 = vst.msk [vmem:[#allocation2 + $0x34] sm:$0x1] %vm698_vm2, %v3377_v30  ;;  %713 = vst.msk [vmem:[#allocation2 + $0x3c] sm:$0x1] %vm698_vm2, %v3377_v30  ;;  %v2670_v61 = vld [vmem:[%s4125_s2] ss:$0 sm:$0xff] }
  0x19   : > { %s3501_s17 = scalar_lea.vmem %s4123_s0, %s3174_s30  ;;  %714 = vst.msk [vmem:[#allocation2 + $0x40] sm:$0xf] %vm696_vm1, %v3377_v30  ;;  %716 = vst.msk [vmem:[#allocation2 + $0x48] sm:$0xf] %vm696_vm1, %v3377_v30  ;;  %3029 = vmatpush3.bf16.msra.mxu1 %v3252_v32  ;;  %vm832_vm3 = vsmask.f32 7938 }
  0x1a   : > { %v3235_v11 = vld [vmem:[%s3501_s17 + $0x4] ss:$12 sps:$4 sm:$0xff]   ;;  %v3233_v18 = vld [vmem:[%s3501_s17] ss:$12 sps:$4 sm:$0xff]   ;;  %v3237_v19 = vld [vmem:[%s3501_s17 + $0x1c] ss:$12 sps:$4 sm:$0xff]   ;;  %3038 = vmatprep.subr.bf16.mxu1 %v3578_v34 }
  0x1b   : > { %2897 = vmatpush3.bf16.msra.mxu0 %v3224_v7  ;;  %550 = vmatprep.mubr.bf16.mxu0 %v3235_v11  ;;  %v3239_v21 = vld [vmem:[%s3501_s17 + $0x18] ss:$12 sps:$4 sm:$0xff]   ;;  %v3240_v22 = vld [vmem:[%s3501_s17 + $0x34] ss:$12 sps:$4 sm:$0xff]   ;;  %v3242_v23 = vld [vmem:[%s3501_s17 + $0x30] ss:$12 sps:$4 sm:$0xff]  }
  0x1c   : > { %2898 = vmatprep.subr.bf16.mxu0 %v3225_v8  ;;  %v3244_v24 = vld [vmem:[%s3501_s17 + $0x4c] ss:$12 sps:$4 sm:$0xff]   ;;  %v3246_v25 = vld [vmem:[%s3501_s17 + $0x48] ss:$12 sps:$4 sm:$0xff]   ;;  %v3250_v29 = vld [vmem:[%s3501_s17 + $0x50] ss:$12 sps:$4 sm:$0xff]  }
  0x1d   : > { %v3247_v26 = vld [vmem:[%s3501_s17 + $0x8] ss:$12 sps:$4 sm:$0xff]   ;;  %v3248_v27 = vld [vmem:[%s3501_s17 + $0x20] ss:$12 sps:$4 sm:$0xff]   ;;  %v3249_v28 = vld [vmem:[%s3501_s17 + $0x38] ss:$12 sps:$4 sm:$0xff]  }
  0x1e   : > { %715 = vst.msk [vmem:[#allocation2 + $0x44] sm:$0x1] %vm698_vm2, %v3377_v30  ;;  %717 = vst.msk [vmem:[#allocation2 + $0x4c] sm:$0x1] %vm698_vm2, %v3377_v30  ;;  %vm838_vm4 = vsmask.f32 256 }
  0x1f   : > { %2899 = vmatpush3.bf16.msra.mxu0 %v3226_v9  ;;  %vm905_vm11 = vsmask.f32 3328  ;;  %vm906_vm12 = vsmask.f32 7440  ;;  %vm3644_vm15 = vmand %vm696_vm1, %vm832_vm3  ;;  %s3319_s30 = scalar_lea.vmem %s3318_s29, 2048 }
  0x20   : > { %2900 = vmatprep.subr.bf16.mxu0 %v3227_v10  ;;  %vm3674_vm1 = vmor %vm1259_vm7, %vm1260_vm8 }
  0x21   : > { %vm3685_vm3 = vmor %vm905_vm11, %vm906_vm12 }
  0x23   : > { %2901 = vmatpush3.bf16.msra.mxu0 %v3228_v12 }
  0x24   : > { %2902 = vmatprep.subr.bf16.mxu0 %v3229_v13 }
  0x27   : > { %2903 = vmatpush3.bf16.msra.mxu0 %v3230_v14 }
  0x28   : > { %2904 = vmatprep.subr.bf16.mxu0 %v3231_v15 }
  0x2b   : > { %2905 = vmatpush3.bf16.msra.mxu0 %v3232_v16  ;;  %v3605_v16 = vld [vmem:[#allocation2] sm:$0xf] }
  0x2c   : > { %2990 = vmatprep.subr.bf16.mxu0 %v3236_v17 }
  0x2e   : > { %551 = vmatmul.mubr.bf16.vlgmr.msra.gmra.mrb[0].mxu0 %v3233_v18 }
  0x2f   : > { %2991 = vmatpush3.bf16.msra.mxu0 %v3236_v17  ;;  %558 = vmatprep.mubr.bf16.mxu0 %v3237_v19 }
  0x30   : > { %2992 = vmatprep.subr.bf16.mxu0 %v3243_v20 }
  0x33   : > { %2993 = vmatpush3.bf16.msra.mxu0 %v3243_v20 }
  0x34   : > { %3002 = vmatprep.subr.bf16.mxu0 %v3253_v33 }
  0x36   : > { %559 = vmatmul.mubr.bf16.gmra.mrb[4].mxu0 %v3239_v21 }
  0x37   : > { %566 = vmatprep.mubr.bf16.mxu0 %v3240_v22 }
  0x3e   : > { %567 = vmatmul.mubr.bf16.gmra.mrb[8].mxu0 %v3242_v23 }
  0x3f   : > { %574 = vmatprep.mubr.bf16.mxu0 %v3244_v24 }
  0x46   : > { %575 = vmatmul.mubr.bf16.gmra.mrb[12].mxu0 %v3246_v25  ;;  %v909_v25 = vshrl.u32 %v3605_v16, 16 }
  0x47   : > { %2994 = vmatprep.mubr.msk.bf16.mxu0 %vm505_vm0, %v3247_v26 }
  0x4e   : > { %2995 = vmatmul.mubr.msk.bf16.vlgmr.msra.gmra.mrb[16].mxu0 %vm505_vm0, %v3248_v27 }
  0x4f   : > { %2998 = vmatprep.mubr.msk.bf16.mxu0 %vm505_vm0, %v3249_v28  ;;  %3003 = vmatpush3.bf16.msra.mxu0 %v3253_v33 }
  0x50   : > { %3004 = vmatprep.subr.bf16.mxu0 %v3255_v35 }
  0x53   : > { %3005 = vmatpush3.bf16.msra.mxu0 %v3255_v35 }
  0x54   : > { %3014 = vmatprep.subr.bf16.mxu0 %v3587_v36 }
  0x56   : > { %2999 = vmatmul.mubr.msk.bf16.gmra.mrb[20].mxu0 %vm505_vm0, %v3250_v29  ;;  %v912_v29 = vshll.u32 %v3605_v16, 16 }
 0x101   : > { %v2906_v37 = vpop.f32.mrb[0].mxu0 }
 0x102   : > { %v2907_v38 = vpop.f32.mrb[1].mxu0 }
 0x103   : > { %v2908_v39 = vadd.f32 %v2907_v38, %v2906_v37  ;;  %v2909_v40 = vpop.f32.mrb[2].mxu0 }
 0x104   : > { %v2910_v41 = vpop.f32.mrb[3].mxu0 }
 0x105   : > { %v2911_v42 = vadd.f32 %v2910_v41, %v2909_v40  ;;  %v553_v0 = vadd.f32 %v2908_v39, %v2670_v61  ;;  %v3620_v39 = vld [vmem:[#allocation2 + $0x4] sm:$0x1] }
 0x107   : > { %v556_v6 = vadd.f32 %v2911_v42, %v2670_v61  ;;  %v911_v42 = vrot.slane %v909_v25, 4 }
 0x109   : > { %v2912_v43 = vpop.f32.mrb[4].mxu0 }
 0x10a   : > { %v2913_v44 = vpop.f32.mrb[5].mxu0 }
 0x10b   : > { %v2914_v45 = vadd.f32 %v2913_v44, %v2912_v43  ;;  %v2915_v46 = vpop.f32.mrb[6].mxu0  ;;  %v914_v43 = vrot.slane %v912_v29, 5 }
 0x10c   : > { %v2916_v47 = vpop.f32.mrb[7].mxu0 }
 0x10d   : > { %v2917_v48 = vadd.f32 %v2916_v47, %v2915_v46  ;;  %v561_v62 = vadd.f32 %v2914_v45, %v2670_v61  ;;  %v918_v45 = vshll.u32 %v3620_v39, 16  ;;  %v3624_v46 = vld [vmem:[#allocation2] sm:$0xe] }
 0x10f   : > { %v564_v3 = vadd.f32 %v2917_v48, %v2670_v61 }
 0x111   : > { %v2918_v49 = vpop.f32.mrb[8].mxu0 }
 0x112   : > { %v2919_v50 = vpop.f32.mrb[9].mxu0 }
 0x113   : > { %v2920_v51 = vadd.f32 %v2919_v50, %v2918_v49  ;;  %v2921_v52 = vpop.f32.mrb[10].mxu0 }
 0x114   : > { %v2922_v53 = vpop.f32.mrb[11].mxu0 }
 0x115   : > { %v2923_v54 = vadd.f32 %v2922_v53, %v2921_v52  ;;  %v569_v21 = vadd.f32 %v2920_v51, %v2670_v61  ;;  %v2745_v51 = vrot.slane %v3624_v46, 9  ;;  %v1264_v52 = vrot.slane %v3620_v39, 5 }
 0x116   : > { %v915_v53 = vor.u32 %v914_v43, %v911_v42 }
 0x117   : > { %v572_v28 = vadd.f32 %v2923_v54, %v2670_v61 }
 0x119   : > { %v2924_v55 = vpop.f32.mrb[12].mxu0 }
 0x11a   : > { %v2925_v56 = vpop.f32.mrb[13].mxu0 }
 0x11b   : > { %v2926_v57 = vadd.f32 %v2925_v56, %v2924_v55  ;;  %v2927_v58 = vpop.f32.mrb[14].mxu0  ;;  %v3629_v56 = vrot.slane %v918_v45, 5 }
 0x11c   : > { %v2928_v59 = vpop.f32.mrb[15].mxu0 }
 0x11d   : > { %v2929_v60 = vadd.f32 %v2928_v59, %v2927_v58  ;;  %v577_v18 = vadd.f32 %v2926_v57, %v2670_v61 }
 0x11f   : > { %v580_v24 = vadd.f32 %v2929_v60, %v2670_v61 }
 0x121   : > { %v2996_v63 = vpop.f32.mrb[16].mxu0 }
 0x122   : > { %v3593_v1 = vadd.f32 %v2996_v63, %v561_v62  ;;  %v617_v2 = vpop.f32.mrb[17].mxu0 }
 0x123   : > { %v3595_v4 = vadd.f32 %v617_v2, %v553_v0  ;;  %v2997_v5 = vpop.f32.mrb[18].mxu0 }
 0x124   : > { %v658_v7 = vmin.f32 %v3593_v1, 0.0  ;;  %v3598_v8 = vadd.f32 %v2997_v5, %v564_v3  ;;  %v620_v9 = vpop.f32.mrb[19].mxu0  ;;  %vm650_vm5 = vcmp.gt.f32.partialorder %v3593_v1, 0.0 }
 0x125   : > { %v656_v10 = vmin.f32 %v3595_v4, 0.0  ;;  %v3601_v11 = vadd.f32 %v620_v9, %v556_v6  ;;  %vm648_vm6 = vcmp.gt.f32.partialorder %v3595_v4, 0.0 }
 0x126   : > { %v668_v12 = vmul.f32 1.442695, %v658_v7  ;;  %v659_v13 = vmin.f32 %v3598_v8, 0.0  ;;  %vm651_vm9 = vcmp.gt.f32.partialorder %v3598_v8, 0.0 }
 0x127   : > { %v664_v14 = vmul.f32 1.442695, %v656_v10  ;;  %v657_v15 = vmin.f32 %v3601_v11, 0.0  ;;  %vm649_vm10 = vcmp.gt.f32.partialorder %v3601_v11, 0.0 }
 0x128   : > { %3281 = vpow2.f32 %v668_v12  ;;  %v670_v17 = vmul.f32 1.442695, %v659_v13  ;;  %v852_v13 = vld [vmem:[#allocation2 + $0x1c] sm:$0x1] }
 0x129   : > { %3283 = vpow2.f32 %v664_v14  ;;  %v666_v19 = vmul.f32 1.442695, %v657_v15  ;;  %v3000_v20 = vpop.f32.mrb[20].mxu0 }
 0x12a   : > { %3285 = vpow2.f32 %v670_v17  ;;  %v3607_v22 = vadd.f32 %v3000_v20, %v577_v18  ;;  %v633_v23 = vpop.f32.mrb[21].mxu0  ;;  %v834_v20 = vld [vmem:[#allocation2 + $0x8] sm:$0xf] }
 0x12b   : > { %3287 = vpow2.f32 %v666_v19  ;;  %v3610_v26 = vadd.f32 %v633_v23, %v569_v21  ;;  %v3001_v27 = vpop.f32.mrb[22].mxu0 }
 0x12c   : > { %v662_v30 = vmin.f32 %v3607_v22, 0.0  ;;  %v3614_v31 = vadd.f32 %v3001_v27, %v580_v24  ;;  %v636_v32 = vpop.f32.mrb[23].mxu0  ;;  %vm654_vm13 = vcmp.gt.f32.partialorder %v3607_v22, 0.0 }
 0x12d   : > { %v660_v33 = vmin.f32 %v3610_v26, 0.0  ;;  %v3617_v35 = vadd.f32 %v636_v32, %v572_v28  ;;  %vm652_vm14 = vcmp.gt.f32.partialorder %v3610_v26, 0.0  ;;  %v840_v28 = vld [vmem:[#allocation2 + $0xc] sm:$0x1] }
 0x12e   : > { %v676_v37 = vmul.f32 1.442695, %v662_v30  ;;  %v663_v38 = vmin.f32 %v3614_v31, 0.0 }
 0x12f   : > { %v672_v40 = vmul.f32 1.442695, %v660_v33  ;;  %v661_v41 = vmin.f32 %v3617_v35, 0.0 }
 0x130   : > { %3289 = vpow2.f32 %v676_v37  ;;  %v678_v44 = vmul.f32 1.442695, %v663_v38  ;;  %v855_v37 = vld [vmem:[#allocation2 + $0x20] sm:$0xf]  ;;  %v858_v38 = vld [vmem:[#allocation2 + $0x24] sm:$0x1] }
 0x131   : > { %3291 = vpow2.f32 %v672_v40  ;;  %v674_v47 = vmul.f32 1.442695, %v661_v41 }
 0x132   : > { %v3282_v48 = vpop.eup %3281  ;;  %3293 = vpow2.f32 %v678_v44 }
 0x133   : > { %v3284_v49 = vpop.eup %3283  ;;  %v2707_v50 = vadd.f32 -1.0, %v3282_v48  ;;  %3295 = vpow2.f32 %v674_v47  ;;  %v843_v48 = vld [vmem:[#allocation2 + $0x10] sm:$0xf] }
 0x134   : > { %v3286_v54 = vpop.eup %3285  ;;  %v2705_v55 = vadd.f32 -1.0, %v3284_v49  ;;  %v846_v49 = vld [vmem:[#allocation2 + $0x14] sm:$0x1] }
 0x135   : > { %v3288_v57 = vpop.eup %3287  ;;  %v690_v58 = vsel %vm650_vm5, %v3593_v1, %v2707_v50  ;;  %v2708_v59 = vadd.f32 -1.0, %v3286_v54  ;;  %v3637_v1 = vrot.slane %v915_v53, 4  ;;  %vm3650_vm5 = vmand %vm698_vm2, %vm838_vm4  ;;  %vm655_vm2 = vcmp.gt.f32.partialorder %v3614_v31, 0.0 }
 0x136   : > { %v2883_v60 = vpack.c.bf16 %v690_v58, %v690_v58  ;;  %v688_v61 = vsel %vm648_vm6, %v3595_v4, %v2705_v55  ;;  %v2706_v62 = vadd.f32 -1.0, %v3288_v57  ;;  %v849_v4 = vld [vmem:[#allocation2 + $0x18] sm:$0xf]  ;;  %vm653_vm4 = vcmp.gt.f32.partialorder %v3617_v35, 0.0 }
 0x137   : > { %v2881_v63 = vpack.c.bf16 %v688_v61, %v688_v61  ;;  %v691_v0 = vsel %vm651_vm9, %v3598_v8, %v2708_v59  ;;  %v921_v39 = vsel %vm3685_vm3, %v3637_v1, %v3629_v56 }
 0x138   : > { %v767_v2 = vshrl.u32 %v2883_v60, 16  ;;  %v2884_v3 = vpack.c.bf16 %v691_v0, %v691_v0  ;;  %v689_v5 = vsel %vm649_vm10, %v3601_v11, %v2706_v62  ;;  %v770_v6 = vshll.u32 %v2883_v60, 16 }
 0x139   : > { %v751_v7 = vshrl.u32 %v2881_v63, 16  ;;  %v2882_v9 = vpack.c.bf16 %v689_v5, %v689_v5  ;;  %v754_v14 = vshll.u32 %v2881_v63, 16 }
 0x13a   : > { %v3290_v10 = vpop.eup %3289  ;;  %v769_v8 = vrot.slane %v767_v2, 7  ;;  %v775_v15 = vshrl.u32 %v2884_v3, 16  ;;  %v778_v11 = vshll.u32 %v2884_v3, 16 }
 0x13b   : > { %v3292_v17 = vpop.eup %3291  ;;  %v753_v19 = vrot.slane %v751_v7, 7  ;;  %v759_v21 = vshrl.u32 %v2882_v9, 16  ;;  %v762_v23 = vshll.u32 %v2882_v9, 16  ;;  %v2711_v24 = vadd.f32 -1.0, %v3290_v10 }
 0x13c   : > { %v772_v25 = vor.u32 %v770_v6, %v769_v8  ;;  %v773_v27 = vrot.slane %v769_v8, 4  ;;  %v777_v29 = vrot.slane %v775_v15, 7  ;;  %v2709_v30 = vadd.f32 -1.0, %v3292_v17  ;;  %v3294_v42 = vpop.eup %3293  ;;  %v873_v8 = vld [vmem:[#allocation2 + $0x38] sm:$0xf] }
 0x13d   : > { %v756_v32 = vor.u32 %v754_v14, %v753_v19  ;;  %v757_v33 = vrot.slane %v753_v19, 4  ;;  %v761_v40 = vrot.slane %v759_v21, 7  ;;  %v694_v41 = vsel %vm654_vm13, %v3607_v22, %v2711_v24  ;;  %v3296_v50 = vpop.eup %3295  ;;  %v876_v15 = vld [vmem:[#allocation2 + $0x3c] sm:$0x1] }
 0x13e   : > { %v850_v43 = vsel %vm3644_vm15, %v772_v25, %v849_v4  ;;  %v853_v44 = vsel %vm3650_vm5, %v773_v27, %v852_v13  ;;  %v780_v45 = vor.u32 %v778_v11, %v777_v29  ;;  %v781_v47 = vrot.slane %v777_v29, 4  ;;  %v879_v25 = vld [vmem:[#allocation2 + $0x40] sm:$0xf]  ;;  %v882_v27 = vld [vmem:[#allocation2 + $0x44] sm:$0x1] }
 0x13f   : > { %851 = vst [vmem:[#allocation2 + $0x18] sm:$0xf] %v850_v43  ;;  %854 = vst [vmem:[#allocation2 + $0x1c] sm:$0x1] %v853_v44  ;;  %v835_v53 = vsel %vm3644_vm15, %v756_v32, %v834_v20  ;;  %v841_v22 = vsel %vm3650_vm5, %v757_v33, %v840_v28  ;;  %v764_v54 = vor.u32 %v762_v23, %v761_v40  ;;  %v765_v55 = vrot.slane %v761_v40, 4 }
 0x140   : > { %836 = vst [vmem:[#allocation2 + $0x8] sm:$0xf] %v835_v53  ;;  %842 = vst [vmem:[#allocation2 + $0xc] sm:$0x1] %v841_v22  ;;  %v856_v57 = vsel %vm3644_vm15, %v780_v45, %v855_v37  ;;  %v859_v58 = vsel %vm3650_vm5, %v781_v47, %v858_v38  ;;  %v2887_v59 = vpack.c.bf16 %v694_v41, %v694_v41  ;;  %v2712_v2 = vadd.f32 -1.0, %v3294_v42 }
 0x141   : > { %v692_v60 = vsel %vm652_vm14, %v3610_v26, %v2709_v30  ;;  %857 = vst [vmem:[#allocation2 + $0x20] sm:$0xf] %v856_v57  ;;  %860 = vst [vmem:[#allocation2 + $0x24] sm:$0x1] %v859_v58  ;;  %v844_v62 = vsel %vm3644_vm15, %v764_v54, %v843_v48  ;;  %v847_v63 = vsel %vm3650_vm5, %v765_v55, %v846_v49  ;;  %v2710_v26 = vadd.f32 -1.0, %v3296_v50 }
 0x142   : > { %v2885_v0 = vpack.c.bf16 %v692_v60, %v692_v60  ;;  %845 = vst [vmem:[#allocation2 + $0x10] sm:$0xf] %v844_v62  ;;  %848 = vst [vmem:[#allocation2 + $0x14] sm:$0x1] %v847_v63  ;;  %v799_v3 = vshrl.u32 %v2887_v59, 16  ;;  %v695_v4 = vsel %vm655_vm2, %v3614_v31, %v2712_v2  ;;  %v3697_v7 = vsel %vm3674_vm1, %v2745_v51, %v1264_v52 }
 0x143   : > { %v802_v10 = vshll.u32 %v2887_v59, 16  ;;  %v2888_v13 = vpack.c.bf16 %v695_v4, %v695_v4  ;;  %v693_v14 = vsel %vm653_vm4, %v3617_v35, %v2710_v26  ;;  %v861_v31 = vld [vmem:[#allocation2 + $0x28] sm:$0xf]  ;;  %v864_v51 = vld [vmem:[#allocation2 + $0x2c] sm:$0x1] }
 0x144   : > { %v783_v6 = vshrl.u32 %v2885_v0, 16  ;;  %v801_v9 = vrot.slane %v799_v3, 7  ;;  %v786_v17 = vshll.u32 %v2885_v0, 16  ;;  %v2886_v19 = vpack.c.bf16 %v693_v14, %v693_v14  ;;  %v867_v37 = vld [vmem:[#allocation2 + $0x30] sm:$0xf] }
 0x145   : > { %v807_v52 = vshrl.u32 %v2888_v13, 16  ;;  %v810_v21 = vshll.u32 %v2888_v13, 16  ;;  %v870_v53 = vld [vmem:[#allocation2 + $0x34] sm:$0x1] }
 0x146   : > { %v785_v11 = vrot.slane %v783_v6, 7  ;;  %v804_v46 = vor.u32 %v802_v10, %v801_v9  ;;  %v805_v20 = vrot.slane %v801_v9, 4  ;;  %v791_v35 = vshrl.u32 %v2886_v19, 16  ;;  %v900_v41 = vld [vmem:[#allocation2 + $0x1c] sm:$0x1] }
 0x147   : > { %v794_v28 = vshll.u32 %v2886_v19, 16  ;;  %v898_v29 = vld [vmem:[#allocation2 + $0xc] sm:$0x1]  ;;  %v809_v33 = vrot.slane %v807_v52, 7  ;;  %v1236_v40 = vld [vmem:[#allocation2 + $0x8] sm:$0xe] }
 0x148   : > { %v788_v23 = vor.u32 %v786_v17, %v785_v11  ;;  %v789_v24 = vrot.slane %v785_v11, 4  ;;  %v874_v30 = vsel %vm3644_vm15, %v804_v46, %v873_v8  ;;  %v877_v32 = vsel %vm3650_vm5, %v805_v20, %v876_v15  ;;  %v1238_v60 = vld [vmem:[#allocation2 + $0x18] sm:$0xe]  ;;  %v3720_v3 = vld [vmem:[#allocation2 + $0x8] sm:$0xf] }
 0x149   : > { %v932_v38 = vshll.u32 %v898_v29, 16  ;;  %875 = vst [vmem:[#allocation2 + $0x38] sm:$0xf] %v874_v30  ;;  %878 = vst [vmem:[#allocation2 + $0x3c] sm:$0x1] %v877_v32  ;;  %v793_v44 = vrot.slane %v791_v35, 7  ;;  %v812_v49 = vor.u32 %v810_v21, %v809_v33 }
 0x14a   : > { %v862_v42 = vsel %vm3644_vm15, %v788_v23, %v861_v31  ;;  %v865_v43 = vsel %vm3650_vm5, %v789_v24, %v864_v51  ;;  %v2746_v45 = vrot.slane %v1236_v40, 9  ;;  %v899_v47 = vld [vmem:[#allocation2 + $0x14] sm:$0x1]  ;;  %v1237_v48 = vld [vmem:[#allocation2 + $0x10] sm:$0xe]  ;;  %v813_v50 = vrot.slane %v809_v33, 4 }
 0x14b   : > { %863 = vst [vmem:[#allocation2 + $0x28] sm:$0xf] %v862_v42  ;;  %866 = vst [vmem:[#allocation2 + $0x2c] sm:$0x1] %v865_v43  ;;  %v3712_v22 = vrot.slane %v932_v38, 5  ;;  %v1268_v54 = vrot.slane %v898_v29, 5  ;;  %v796_v55 = vor.u32 %v794_v28, %v793_v44  ;;  %v880_v62 = vsel %vm3644_vm15, %v812_v49, %v879_v25 }
 0x14c   : > { %v797_v57 = vrot.slane %v793_v44, 4  ;;  %v946_v58 = vshll.u32 %v899_v47, 16  ;;  %v960_v59 = vshll.u32 %v900_v41, 16  ;;  %v883_v63 = vsel %vm3650_vm5, %v813_v50, %v882_v27  ;;  %v3722_v26 = vld [vmem:[#allocation2 + $0x10] sm:$0xf]  ;;  %v3256_v29 = vld [vmem:[%s4126_s3 + $0x38] sm:$0xff]  }
 0x14d   : > { %v1269_v0 = vsel %vm3674_vm1, %v2746_v45, %v1268_v54  ;;  %v2747_v2 = vrot.slane %v1237_v48, 9  ;;  %881 = vst [vmem:[#allocation2 + $0x40] sm:$0xf] %v880_v62  ;;  %884 = vst [vmem:[#allocation2 + $0x44] sm:$0x1] %v883_v63  ;;  %v868_v6 = vsel %vm3644_vm15, %v796_v55, %v867_v37  ;;  %v1272_v14 = vrot.slane %v899_v47, 5 }
 0x14e   : > { %v871_v4 = vsel %vm3650_vm5, %v797_v57, %v870_v53  ;;  %v2757_v9 = vcombine.low %v3697_v7, %v1269_v0  ;;  %v3729_v10 = vrot.slane %v946_v58, 5  ;;  %v3731_v8 = vld [vmem:[#allocation2 + $0x18] sm:$0xf]  ;;  %869 = vst [vmem:[#allocation2 + $0x30] sm:$0xf] %v868_v6  ;;  %v3733_v13 = vrot.slane %v960_v59, 5 }
 0x14f   : > { %872 = vst [vmem:[#allocation2 + $0x34] sm:$0x1] %v871_v4  ;;  %v2748_v15 = vrot.slane %v1238_v60, 9  ;;  %v1276_v11 = vrot.slane %v900_v41, 5  ;;  %v3735_v17 = vld [vmem:[#allocation2 + $0x24] sm:$0x1]  ;;  %v1273_v46 = vsel %vm3674_vm1, %v2747_v2, %v1272_v14 }
 0x150   : > { %3030 = vmatprep.mubr.msk.bf16.mxu1 %vm505_vm0, %v2757_v9  ;;  %v923_v12 = vshrl.u32 %v3720_v3, 16  ;;  %v926_v18 = vshll.u32 %v3720_v3, 16  ;;  %v937_v7 = vshrl.u32 %v3722_v26, 16  ;;  %v940_v31 = vshll.u32 %v3722_v26, 16  ;;  %v1239_v19 = vld [vmem:[#allocation2 + $0x20] sm:$0xe] }
 0x151   : > { %v1277_v20 = vsel %vm3674_vm1, %v2748_v15, %v1276_v11  ;;  %v951_v51 = vshrl.u32 %v3731_v8, 16  ;;  %v954_v52 = vshll.u32 %v3731_v8, 16  ;;  %v3748_v21 = vld [vmem:[#allocation2 + $0x3c] sm:$0x1]  ;;  %v1242_v23 = vld [vmem:[#allocation2 + $0x38] sm:$0xe] }
 0x152   : > { %v2758_v24 = vcombine.low %v1273_v46, %v1277_v20  ;;  %v925_v25 = vrot.slane %v923_v12, 4  ;;  %v928_v27 = vrot.slane %v926_v18, 5  ;;  %v939_v35 = vrot.slane %v937_v7, 4  ;;  %v3750_v28 = vld [vmem:[#allocation2 + $0x2c] sm:$0x1]  ;;  %v3765_v50 = vld [vmem:[%s4126_s3 + $0x40] sm:$0xff]  }
 0x153   : > { %v942_v30 = vrot.slane %v940_v31, 5  ;;  %v953_v32 = vrot.slane %v951_v51, 4  ;;  %v956_v33 = vrot.slane %v954_v52, 5  ;;  %v1240_v37 = vld [vmem:[#allocation2 + $0x28] sm:$0xe]  ;;  %v2749_v38 = vrot.slane %v1239_v19, 9 }
 0x154   : > { %3031 = vmatmul.mubr.msk.bf16.vlgmr.msra.gmra.mrb[0].mxu1 %vm505_vm0, %v2758_v24  ;;  %v929_v40 = vor.u32 %v928_v27, %v925_v25  ;;  %v1280_v41 = vrot.slane %v3735_v17, 5  ;;  %v2750_v42 = vrot.slane %v1240_v37, 9  ;;  %v1284_v43 = vrot.slane %v3750_v28, 5  ;;  %v3758_v44 = vld [vmem:[#allocation2 + $0x20] sm:$0xf] }
 0x155   : > { %3039 = vmatpush3.bf16.msra.mxu1 %v3578_v34  ;;  %v943_v45 = vor.u32 %v942_v30, %v939_v35  ;;  %v957_v47 = vor.u32 %v956_v33, %v953_v32  ;;  %v2752_v48 = vrot.slane %v1242_v23, 9  ;;  %v1292_v49 = vrot.slane %v3748_v21, 5  ;;  %v1241_v58 = vld [vmem:[#allocation2 + $0x30] sm:$0xe]  ;;  %v3772_v0 = vld [vmem:[#allocation2 + $0x28] sm:$0xf] }
 0x156   : > { %v930_v53 = vrot.slane %v929_v40, 4  ;;  %v1281_v54 = vsel %vm3674_vm1, %v2749_v38, %v1280_v41  ;;  %v1285_v55 = vsel %vm3674_vm1, %v2750_v42, %v1284_v43  ;;  %v903_v57 = vld [vmem:[#allocation2 + $0x34] sm:$0x1]  ;;  %3040 = vmatprep.subr.bf16.mxu1 %v3256_v29  ;;  %v965_v34 = vshrl.u32 %v3758_v44, 16  ;;  %v3790_v11 = vld [vmem:[#allocation2 + $0x30] sm:$0xf] }
 0x157   : > { %v944_v59 = vrot.slane %v943_v45, 4  ;;  %v958_v60 = vrot.slane %v957_v47, 4  ;;  %v2759_v62 = vcombine.low %v1281_v54, %v1285_v55  ;;  %v2751_v63 = vrot.slane %v1241_v58, 9  ;;  %v3803_v19 = vld [vmem:[#allocation2 + $0x38] sm:$0xf] }
 0x158   : > { %v935_v2 = vsel %vm3685_vm3, %v930_v53, %v3712_v22  ;;  %v1288_v6 = vrot.slane %v903_v57, 5  ;;  %v967_v4 = vrot.slane %v965_v34, 4  ;;  %v968_v22 = vshll.u32 %v3758_v44, 16  ;;  %v1538_v38 = vld [vmem:[#allocation2 + $0x8] sm:$0xf] }
 0x159   : > { %v2725_v9 = vcombine.low %v921_v39, %v935_v2  ;;  %v949_v14 = vsel %vm3685_vm3, %v944_v59, %v3729_v10  ;;  %v963_v15 = vsel %vm3685_vm3, %v958_v60, %v3733_v13  ;;  %3034 = vmatprep.mubr.msk.bf16.mxu1 %vm505_vm0, %v2759_v62  ;;  %3041 = vmatpush3.bf16.msra.mxu1 %v3256_v29  ;;  %v3257_v39 = vld [vmem:[#allocation2 + $0x8] ss:$8 sps:$4 sm:$0xff]   ;;  %v979_v10 = vshrl.u32 %v3772_v0, 16  ;;  %v1542_v62 = vld [vmem:[#allocation2 + $0x18] sm:$0xf] }
 0x15a   : > { %v2726_v12 = vcombine.low %v949_v14, %v963_v15  ;;  %v1289_v56 = vsel %vm3674_vm1, %v2751_v63, %v1288_v6  ;;  %v1293_v1 = vsel %vm3674_vm1, %v2752_v48, %v1292_v49  ;;  %3050 = vmatprep.subr.bf16.mxu1 %v3765_v50  ;;  %v3263_v13 = vld [vmem:[%s4126_s3 + $0x8] sm:$0xff]   ;;  %v970_v7 = vrot.slane %v968_v22, 5  ;;  %v1540_v43 = vld [vmem:[#allocation2 + $0x10] sm:$0xf]  ;;  %v3260_v49 = vld [vmem:[#allocation2 + $0x18] ss:$8 sps:$4 sm:$0xff]  }
 0x15b   : > { %3006 = vmatprep.mubr.msk.bf16.mxu0 %vm505_vm0, %v2725_v9  ;;  %v2760_v18 = vcombine.low %v1289_v56, %v1293_v1  ;;  %v982_v31 = vshll.u32 %v3772_v0, 16  ;;  %v974_v46 = vshll.u32 %v3735_v17, 16  ;;  %v981_v20 = vrot.slane %v979_v10, 4  ;;  %v3831_v14 = vld [vmem:[#allocation2 + $0x1c] sm:$0x1] }
 0x15c   : > { %3007 = vmatmul.mubr.msk.bf16.vlgmr.msra.gmra.mrb[24].mxu0 %vm505_vm0, %v2726_v12  ;;  %v993_v51 = vshrl.u32 %v3790_v11, 16  ;;  %v996_v52 = vshll.u32 %v3790_v11, 16  ;;  %v971_v23 = vor.u32 %v970_v7, %v967_v4  ;;  %v988_v25 = vshll.u32 %v3750_v28, 16  ;;  %v3262_v4 = vld [vmem:[#allocation2 + $0x28] ss:$8 sps:$4 sm:$0xff]  }
 0x15d   : > { %3035 = vmatmul.mubr.msk.bf16.gmra.mrb[4].mxu1 %vm505_vm0, %v2760_v18  ;;  %v984_v24 = vrot.slane %v982_v31, 5  ;;  %v1002_v27 = vshll.u32 %v903_v57, 16  ;;  %3015 = vmatpush3.bf16.msra.mxu0 %v3587_v36  ;;  %v1007_v17 = vshrl.u32 %v3803_v19, 16  ;;  %v1010_v30 = vshll.u32 %v3803_v19, 16  ;;  %v3822_v57 = vld [vmem:[#allocation2 + $0x14] sm:$0x1] }
 0x15e   : > { %3042 = vmatprep.mubr.msk.bf16.mxu1 %vm505_vm0, %v3257_v39  ;;  %v995_v35 = vrot.slane %v993_v51, 4  ;;  %v998_v29 = vrot.slane %v996_v52, 5  ;;  %3016 = vmatprep.subr.bf16.mxu0 %v3263_v13  ;;  %v972_v32 = vrot.slane %v971_v23, 4  ;;  %v1016_v37 = vshll.u32 %v3748_v21, 16  ;;  %v3820_v21 = vld [vmem:[#allocation2 + $0xc] sm:$0x1] }
 0x15f   : > { %v985_v33 = vor.u32 %v984_v24, %v981_v20  ;;  %v976_v40 = vrot.slane %v974_v46, 5  ;;  %v1009_v28 = vrot.slane %v1007_v17, 4  ;;  %v1012_v42 = vrot.slane %v1010_v30, 5  ;;  %v1544_v1 = vld [vmem:[#allocation2 + $0x20] sm:$0xf] }
 0x160   : > { %v999_v41 = vor.u32 %v998_v29, %v995_v35  ;;  %v990_v45 = vrot.slane %v988_v25, 5  ;;  %v1004_v47 = vrot.slane %v1002_v27, 5  ;;  %v2735_v48 = vcombine.low %v3605_v16, %v3720_v3  ;;  %v3267_v16 = vld [vmem:[%s4126_s3 + $0x48] sm:$0xff]   ;;  %v3843_v20 = vld [vmem:[#allocation2 + $0x24] sm:$0x1]  ;;  %v3851_v35 = vld [vmem:[%s4126_s3 + $0x50] sm:$0xff]  }
 0x161   : > { %v986_v36 = vrot.slane %v985_v33, 4  ;;  %3017 = vmatpush3.bf16.msra.mxu0 %v3263_v13  ;;  %v977_v53 = vsel %vm3685_vm3, %v972_v32, %v976_v40  ;;  %v1013_v55 = vor.u32 %v1012_v42, %v1009_v28  ;;  %v1555_v58 = vshrl.u32 %v1538_v38, 16  ;;  %v1546_v52 = vld [vmem:[#allocation2 + $0x28] sm:$0xf] }
 0x162   : > { %v1000_v54 = vrot.slane %v999_v41, 4  ;;  %v1018_v59 = vrot.slane %v1016_v37, 5  ;;  %v1558_v3 = vshll.u32 %v1538_v38, 16  ;;  %v1569_v60 = vshrl.u32 %v1540_v43, 16  ;;  %v1548_v37 = vld [vmem:[#allocation2 + $0x30] sm:$0xf] }
 0x163   : > { %v991_v34 = vsel %vm3685_vm3, %v986_v36, %v990_v45  ;;  %v1014_v6 = vrot.slane %v1013_v55, 4  ;;  %v1557_v9 = vrot.slane %v1555_v58, 4  ;;  %v2736_v15 = vcombine.low %v3722_v26, %v3731_v8 }
 0x164   : > { %v2727_v63 = vcombine.low %v977_v53, %v991_v34  ;;  %v1005_v2 = vsel %vm3685_vm3, %v1000_v54, %v1004_v47  ;;  %v1560_v22 = vrot.slane %v1558_v3, 5  ;;  %v1571_v12 = vrot.slane %v1569_v60, 4  ;;  %v3861_v47 = vld [vmem:[#allocation2 + $0x34] sm:$0x1]  ;;  %v1550_v34 = vld [vmem:[#allocation2 + $0x38] sm:$0xf] }
 0x165   : > { %3043 = vmatmul.mubr.msk.bf16.vlgmr.msra.gmra.mrb[0].mxu1 %vm505_vm0, %v3260_v49  ;;  %v1572_v56 = vshll.u32 %v1540_v43, 16  ;;  %v1019_v39 = vsel %vm3685_vm3, %v1014_v6, %v1018_v59  ;;  %v1564_v10 = vshll.u32 %v3820_v21, 16  ;;  %v1578_v13 = vshll.u32 %v3822_v57, 16  ;;  %v3856_v43 = vld [vmem:[#allocation2 + $0x2c] sm:$0x1] }
 0x166   : > { %3010 = vmatprep.mubr.msk.bf16.mxu0 %vm505_vm0, %v2727_v63  ;;  %3046 = vmatprep.mubr.msk.bf16.mxu1 %vm505_vm0, %v3262_v4  ;;  %v1583_v18 = vshrl.u32 %v1542_v62, 16  ;;  %v2728_v7 = vcombine.low %v1005_v2, %v1019_v39  ;;  %v1561_v31 = vor.u32 %v1560_v22, %v1557_v9  ;;  %v1586_v51 = vshll.u32 %v1542_v62, 16  ;;  %v1552_v59 = vld [vmem:[#allocation2 + $0x40] sm:$0xf] }
 0x167   : > { %3051 = vmatpush3.bf16.msra.mxu1 %v3765_v50  ;;  %v1574_v46 = vrot.slane %v1572_v56, 5  ;;  %v2737_v23 = vcombine.low %v3758_v44, %v3772_v0  ;;  %v1592_v25 = vshll.u32 %v3831_v14, 16  ;;  %v1597_v27 = vshrl.u32 %v1544_v1, 16  ;;  %v3266_v50 = vld [vmem:[#allocation2 + $0x38] ss:$8 sps:$4 sm:$0xff]  }
 0x168   : > { %3052 = vmatprep.subr.bf16.mxu1 %v3267_v16  ;;  %v1585_v24 = vrot.slane %v1583_v18, 4  ;;  %3011 = vmatmul.mubr.msk.bf16.gmra.mrb[28].mxu0 %vm505_vm0, %v2728_v7  ;;  %v1562_v29 = vrot.slane %v1561_v31, 4  ;;  %v1588_v30 = vrot.slane %v1586_v51, 5  ;;  %v1600_v32 = vshll.u32 %v1544_v1, 16  ;;  %v1781_v51 = vld [vmem:[#allocation2 + $0x10] sm:$0xe] }
 0x169   : > { %v1575_v17 = vor.u32 %v1574_v46, %v1571_v12  ;;  %3018 = vmatprep.mubr.msk.bf16.mxu0 %vm505_vm0, %v2735_v48  ;;  %v1566_v44 = vrot.slane %v1564_v10, 5  ;;  %v1599_v0 = vrot.slane %v1597_v27, 4  ;;  %v1606_v33 = vshll.u32 %v3843_v20, 16  ;;  %v3869_v12 = vld [vmem:[#allocation2 + $0x3c] sm:$0x1] }
 0x16a   : > { %v1611_v38 = vshrl.u32 %v1546_v52, 16  ;;  %v1580_v41 = vrot.slane %v1578_v13, 5  ;;  %v1589_v28 = vor.u32 %v1588_v30, %v1585_v24  ;;  %v1602_v42 = vrot.slane %v1600_v32, 5  ;;  %v3877_v10 = vld [vmem:[#allocation2 + $0x44] sm:$0x1] }
 0x16b   : > { %3053 = vmatpush3.bf16.msra.mxu1 %v3267_v16  ;;  %v1576_v40 = vrot.slane %v1575_v17, 4  ;;  %v1567_v36 = vsel %vm3685_vm3, %v1562_v29, %v1566_v44  ;;  %v1594_v45 = vrot.slane %v1592_v25, 5  ;;  %v1614_v49 = vshll.u32 %v1546_v52, 16  ;;  %v1780_v32 = vld [vmem:[#allocation2 + $0x8] sm:$0xe] }
 0x16c   : > { %3062 = vmatprep.subr.bf16.mxu1 %v3851_v35  ;;  %v1613_v48 = vrot.slane %v1611_v38, 4  ;;  %v1603_v54 = vor.u32 %v1602_v42, %v1599_v0  ;;  %v1608_v55 = vrot.slane %v1606_v33, 5  ;;  %v1625_v58 = vshrl.u32 %v1548_v37, 16  ;;  %v3271_v42 = vld [vmem:[%s4126_s3 + $0x60] sm:$0xff]  }
 0x16d   : > { %3047 = vmatmul.mubr.msk.bf16.gmra.mrb[4].mxu1 %vm505_vm0, %v3266_v50  ;;  %v1581_v53 = vsel %vm3685_vm3, %v1576_v40, %v1580_v41  ;;  %v1590_v3 = vrot.slane %v1589_v28, 4  ;;  %v1616_v60 = vrot.slane %v1614_v49, 5  ;;  %v1628_v62 = vshll.u32 %v1548_v37, 16 }
 0x16e   : > { %v2785_v16 = vcombine.low %v1567_v36, %v1581_v53  ;;  %v1604_v63 = vrot.slane %v1603_v54, 4  ;;  %v1620_v2 = vshll.u32 %v3856_v43, 16  ;;  %v1627_v6 = vrot.slane %v1625_v58, 4  ;;  %v1782_v58 = vld [vmem:[#allocation2 + $0x18] sm:$0xe] }
 0x16f   : > { %v1634_v4 = vshll.u32 %v3861_v47, 16  ;;  %v1617_v9 = vor.u32 %v1616_v60, %v1613_v48  ;;  %v1630_v22 = vrot.slane %v1628_v62, 5  ;;  %v1639_v56 = vshrl.u32 %v1550_v34, 16 }
 0x170   : > { %3054 = vmatprep.mubr.msk.bf16.mxu1 %vm505_vm0, %v2785_v16  ;;  %v1642_v1 = vshll.u32 %v1550_v34, 16  ;;  %3019 = vmatmul.mubr.msk.bf16.vlgmr.msra.gmra.mrb[24].mxu0 %vm505_vm0, %v2736_v15  ;;  %v1609_v39 = vsel %vm3685_vm3, %v1604_v63, %v1608_v55  ;;  %v1653_v13 = vshrl.u32 %v1552_v59, 16  ;;  %v1595_v18 = vsel %vm3685_vm3, %v1590_v3, %v1594_v45  ;;  %v3270_v15 = vld [vmem:[%s4126_s3 + $0x58] sm:$0xff]   ;;  %v1784_v3 = vld [vmem:[#allocation2 + $0x28] sm:$0xe] }
 0x171   : > { %3022 = vmatprep.mubr.msk.bf16.mxu0 %vm505_vm0, %v2737_v23  ;;  %v1618_v7 = vrot.slane %v1617_v9, 4  ;;  %v1631_v31 = vor.u32 %v1630_v22, %v1627_v6  ;;  %v1641_v46 = vrot.slane %v1639_v56, 4  ;;  %v2786_v52 = vcombine.low %v1595_v18, %v1609_v39  ;;  %v1787_v22 = vld [vmem:[#allocation2 + $0x40] sm:$0xe]  ;;  %v1786_v39 = vld [vmem:[#allocation2 + $0x38] sm:$0xe] }
 0x172   : > { %v1644_v24 = vrot.slane %v1642_v1, 5  ;;  %v1655_v26 = vrot.slane %v1653_v13, 4  ;;  %v1656_v8 = vshll.u32 %v1552_v59, 16  ;;  %v1622_v25 = vrot.slane %v1620_v2, 5 }
 0x173   : > { %v1632_v27 = vrot.slane %v1631_v31, 4  ;;  %v1636_v50 = vrot.slane %v1634_v4, 5  ;;  %v1648_v29 = vshll.u32 %v3869_v12, 16  ;;  %v1662_v30 = vshll.u32 %v3877_v10, 16 }
 0x174   : > { %v1645_v23 = vor.u32 %v1644_v24, %v1641_v46  ;;  %v1658_v17 = vrot.slane %v1656_v8, 5  ;;  %v1623_v44 = vsel %vm3685_vm3, %v1618_v7, %v1622_v25  ;;  %v2796_v33 = vrot.slane %v1781_v51, 9  ;;  %v2081_v46 = vld [vmem:[#allocation2 + $0x10] sm:$0xf]  ;;  %v2083_v24 = vld [vmem:[#allocation2 + $0x18] sm:$0xf] }
 0x175   : > { %3055 = vmatmul.mubr.msk.bf16.vlgmr.msra.gmra.mrb[0].mxu1 %vm505_vm0, %v2786_v52  ;;  %v1637_v0 = vsel %vm3685_vm3, %v1632_v27, %v1636_v50  ;;  %v1810_v37 = vrot.slane %v3822_v57, 5  ;;  %v2738_v38 = vcombine.low %v3790_v11, %v3803_v19  ;;  %v2795_v36 = vrot.slane %v1780_v32, 9  ;;  %v1783_v19 = vld [vmem:[#allocation2 + $0x20] sm:$0xe]  ;;  %v3275_v51 = vld [vmem:[%s4126_s3 + $0x70] sm:$0xff]  }
 0x176   : > { %3063 = vmatpush3.bf16.msra.mxu1 %v3851_v35  ;;  %v2787_v40 = vcombine.low %v1623_v44, %v1637_v0  ;;  %v1646_v41 = vrot.slane %v1645_v23, 4  ;;  %v1659_v28 = vor.u32 %v1658_v17, %v1655_v26  ;;  %v1806_v45 = vrot.slane %v3820_v21, 5  ;;  %v1785_v21 = vld [vmem:[#allocation2 + $0x30] sm:$0xe]  ;;  %v2085_v44 = vld [vmem:[#allocation2 + $0x20] sm:$0xf] }
 0x177   : > { %3064 = vmatprep.subr.bf16.mxu1 %v3270_v15  ;;  %v1650_v35 = vrot.slane %v1648_v29, 5  ;;  %v1664_v48 = vrot.slane %v1662_v30, 5  ;;  %v1811_v11 = vsel %vm3674_vm1, %v2796_v33, %v1810_v37  ;;  %v2798_v59 = vrot.slane %v1783_v19, 9  ;;  %v3273_v27 = vld [vmem:[#allocation2 + $0x10] ss:$8 sps:$4 sm:$0xff]  }
 0x178   : > { %3023 = vmatmul.mubr.msk.bf16.gmra.mrb[28].mxu0 %vm505_vm0, %v2738_v38  ;;  %3058 = vmatprep.mubr.msk.bf16.mxu1 %vm505_vm0, %v2787_v40  ;;  %v1660_v57 = vrot.slane %v1659_v28, 4  ;;  %v1807_v55 = vsel %vm3674_vm1, %v2795_v36, %v1806_v45  ;;  %v1818_v16 = vrot.slane %v3843_v20, 5  ;;  %v2800_v60 = vrot.slane %v1785_v21, 9  ;;  %v2087_v29 = vld [vmem:[#allocation2 + $0x28] sm:$0xf] }
 0x179   : > { %v1651_v49 = vsel %vm3685_vm3, %v1646_v41, %v1650_v35  ;;  %v2807_v34 = vcombine.low %v1807_v55, %v1811_v11  ;;  %v1826_v62 = vrot.slane %v3861_v47, 5  ;;  %v2797_v63 = vrot.slane %v1782_v58, 9  ;;  %v2089_v17 = vld [vmem:[#allocation2 + $0x30] sm:$0xf]  ;;  %v3940_v0 = vld [vmem:[#allocation2 + $0x14] sm:$0x1] }
 0x17a   : > { %3065 = vmatpush3.bf16.msra.mxu1 %v3270_v15  ;;  %v1665_v53 = vsel %vm3685_vm3, %v1660_v57, %v1664_v48  ;;  %v1814_v2 = vrot.slane %v3831_v14, 5  ;;  %v2799_v6 = vrot.slane %v1784_v3, 9  ;;  %v1822_v4 = vrot.slane %v3856_v43, 5  ;;  %v3272_v14 = vld [vmem:[%s4126_s3 + $0x68] sm:$0xff]   ;;  %v2091_v38 = vld [vmem:[#allocation2 + $0x38] sm:$0xf] }
 0x17b   : > { %3074 = vmatprep.subr.bf16.mxu1 %v3271_v42  ;;  %v2788_v54 = vcombine.low %v1651_v49, %v1665_v53  ;;  %v1819_v9 = vsel %vm3674_vm1, %v2798_v59, %v1818_v16  ;;  %v1827_v20 = vsel %vm3674_vm1, %v2800_v60, %v1826_v62  ;;  %v2802_v13 = vrot.slane %v1787_v22, 9  ;;  %v2095_v35 = vld [vmem:[#allocation2 + $0x48] sm:$0xf]  ;;  %v3278_v48 = vld [vmem:[%s4126_s3 + $0x78] sm:$0xff]   ;;  %v2093_v3 = vld [vmem:[#allocation2 + $0x40] sm:$0xf] }
 0x17c   : > { %v1815_v56 = vsel %vm3674_vm1, %v2797_v63, %v1814_v2  ;;  %v1823_v47 = vsel %vm3674_vm1, %v2799_v6, %v1822_v4  ;;  %v1834_v18 = vrot.slane %v3877_v10, 5  ;;  %v2801_v7 = vrot.slane %v1786_v39, 9  ;;  %v3274_v57 = vld [vmem:[#allocation2 + $0x20] ss:$8 sps:$4 sm:$0xff]   ;;  %v3276_v21 = vld [vmem:[#allocation2 + $0x30] ss:$8 sps:$4 sm:$0xff]  }
 0x17d   : > { %3059 = vmatmul.mubr.msk.bf16.gmra.mrb[4].mxu1 %vm505_vm0, %v2788_v54  ;;  %v2808_v1 = vcombine.low %v1815_v56, %v1819_v9  ;;  %v2809_v43 = vcombine.low %v1823_v47, %v1827_v20  ;;  %v1830_v31 = vrot.slane %v3869_v12, 5  ;;  %v2098_v26 = vshrl.u32 %v2081_v46, 16  ;;  %v3954_v63 = vld [vmem:[%s4126_s3 + $0x80] sm:$0xff]   ;;  %v3956_v20 = vld [vmem:[#allocation2 + $0x2c] sm:$0x1] }
 0x17e   : > { %3066 = vmatprep.mubr.msk.bf16.mxu1 %vm505_vm0, %v2807_v34  ;;  %v1835_v52 = vsel %vm3674_vm1, %v2802_v13, %v1834_v18  ;;  %v2101_v10 = vshll.u32 %v2081_v46, 16  ;;  %v2112_v25 = vshrl.u32 %v2083_v24, 16  ;;  %v2115_v12 = vshll.u32 %v2083_v24, 16  ;;  %v3960_v39 = vld [vmem:[#allocation2 + $0x34] sm:$0x1] }
 0x17f   : > { %v1831_v8 = vsel %vm3674_vm1, %v2801_v7, %v1830_v31  ;;  %v2100_v50 = vrot.slane %v2098_v26, 4  ;;  %v2140_v33 = vshrl.u32 %v2087_v29, 16  ;;  %v2143_v37 = vshll.u32 %v2087_v29, 16  ;;  %v3277_v26 = vld [vmem:[#allocation2 + $0x40] ss:$8 sps:$4 sm:$0xff]  }
 0x180   : > { %v2810_v15 = vcombine.low %v1831_v8, %v1835_v52  ;;  %v2103_v23 = vrot.slane %v2101_v10, 5  ;;  %v2114_v30 = vrot.slane %v2112_v25, 4  ;;  %v2117_v32 = vrot.slane %v2115_v12, 5 }
 0x181   : > { %v2154_v41 = vshrl.u32 %v2089_v17, 16  ;;  %v2157_v28 = vshll.u32 %v2089_v17, 16  ;;  %v2126_v36 = vshrl.u32 %v2085_v44, 16  ;;  %v2129_v45 = vshll.u32 %v2085_v44, 16 }
 0x182   : > { %v2104_v40 = vor.u32 %v2103_v23, %v2100_v50  ;;  %v2107_v11 = vshll.u32 %v3940_v0, 16  ;;  %v2118_v19 = vor.u32 %v2117_v32, %v2114_v30  ;;  %v2168_v49 = vshrl.u32 %v2091_v38, 16 }
 0x183   : > { %v2171_v53 = vshll.u32 %v2091_v38, 16  ;;  %v2142_v54 = vrot.slane %v2140_v33, 4  ;;  %v2145_v55 = vrot.slane %v2143_v37, 5  ;;  %v2156_v59 = vrot.slane %v2154_v41, 4  ;;  %v3975_v37 = vld [vmem:[#allocation2 + $0x44] sm:$0x1] }
 0x184   : > { %v2105_v58 = vrot.slane %v2104_v40, 4  ;;  %v2159_v16 = vrot.slane %v2157_v28, 5  ;;  %v2128_v60 = vrot.slane %v2126_v36, 4  ;;  %v2131_v62 = vrot.slane %v2129_v45, 5  ;;  %v3977_v38 = vld [vmem:[#allocation2 + $0x4c] sm:$0x1] }
 0x185   : > { %3067 = vmatmul.mubr.msk.bf16.vlgmr.msra.gmra.mrb[0].mxu1 %vm505_vm0, %v2808_v1  ;;  %v2196_v2 = vshrl.u32 %v2095_v35, 16  ;;  %v2199_v6 = vshll.u32 %v2095_v35, 16  ;;  %v2109_v4 = vrot.slane %v2107_v11, 5  ;;  %v2119_v9 = vrot.slane %v2118_v19, 4  ;;  %v3958_v1 = vld [vmem:[#allocation2 + $0x24] sm:$0x1] }
 0x186   : > { %3070 = vmatprep.mubr.msk.bf16.mxu1 %vm505_vm0, %v2809_v43  ;;  %3075 = vmatpush3.bf16.msra.mxu1 %v3271_v42  ;;  %v3942_v42 = vld [vmem:[#allocation2 + $0x1c] sm:$0x1]  ;;  %v2170_v22 = vrot.slane %v2168_v49, 4  ;;  %v2173_v56 = vrot.slane %v2171_v53, 5  ;;  %v2146_v47 = vor.u32 %v2145_v55, %v2142_v54  ;;  %v2185_v43 = vshll.u32 %v2093_v3, 16 }
 0x187   : > { %3076 = vmatprep.subr.bf16.mxu1 %v3272_v14  ;;  %v2121_v34 = vshll.u32 %v3942_v42, 16  ;;  %v2110_v13 = vsel %vm3685_vm3, %v2105_v58, %v2109_v4  ;;  %v2160_v7 = vor.u32 %v2159_v16, %v2156_v59  ;;  %v2132_v31 = vor.u32 %v2131_v62, %v2128_v60  ;;  %v2323_v19 = vld [vmem:[#allocation2 + $0x10] sm:$0xe]  ;;  %v2324_v59 = vld [vmem:[#allocation2 + $0x18] sm:$0xe] }
 0x188   : > { %v2149_v46 = vshll.u32 %v3956_v20, 16  ;;  %v2198_v52 = vrot.slane %v2196_v2, 4  ;;  %v2201_v24 = vrot.slane %v2199_v6, 5  ;;  %v2135_v8 = vshll.u32 %v3958_v1, 16 }
 0x189   : > { %v2123_v18 = vrot.slane %v2121_v34, 5  ;;  %v2174_v25 = vor.u32 %v2173_v56, %v2170_v22  ;;  %v2187_v23 = vrot.slane %v2185_v43, 5  ;;  %v2161_v29 = vrot.slane %v2160_v7, 4  ;;  %v2326_v22 = vld [vmem:[#allocation2 + $0x28] sm:$0xe] }
 0x18a   : > { %3077 = vmatpush3.bf16.msra.mxu1 %v3272_v14  ;;  %v2182_v14 = vshrl.u32 %v2093_v3, 16  ;;  %v2133_v30 = vrot.slane %v2132_v31, 4  ;;  %v2151_v32 = vrot.slane %v2149_v46, 5  ;;  %v2202_v40 = vor.u32 %v2201_v24, %v2198_v52 }
 0x18b   : > { %3086 = vmatprep.subr.bf16.mxu1 %v3275_v51  ;;  %v2124_v10 = vsel %vm3685_vm3, %v2119_v9, %v2123_v18  ;;  %v2175_v33 = vrot.slane %v2174_v25, 4  ;;  %v2137_v41 = vrot.slane %v2135_v8, 5  ;;  %v2205_v45 = vshll.u32 %v3977_v38, 16 }
 0x18c   : > { %v2835_v12 = vcombine.low %v2110_v13, %v2124_v10  ;;  %v2184_v50 = vrot.slane %v2182_v14, 4  ;;  %v2191_v11 = vshll.u32 %v3975_v37, 16  ;;  %v2203_v58 = vrot.slane %v2202_v40, 4  ;;  %v2328_v13 = vld [vmem:[#allocation2 + $0x38] sm:$0xe] }
 0x18d   : > { %3071 = vmatmul.mubr.msk.bf16.gmra.mrb[4].mxu1 %vm505_vm0, %v2810_v15  ;;  %v2163_v15 = vshll.u32 %v3960_v39, 16  ;;  %v2207_v34 = vrot.slane %v2205_v45, 5  ;;  %v2845_v16 = vrot.slane %v2323_v19, 9  ;;  %v2349_v3 = vrot.slane %v3940_v0, 5  ;;  %v2327_v0 = vld [vmem:[#allocation2 + $0x30] sm:$0xe] }
 0x18e   : > { %3078 = vmatprep.mubr.msk.bf16.mxu1 %vm505_vm0, %v3273_v27  ;;  %v2147_v27 = vrot.slane %v2146_v47, 4  ;;  %v2188_v36 = vor.u32 %v2187_v23, %v2184_v50  ;;  %v2193_v60 = vrot.slane %v2191_v11, 5  ;;  %v2846_v62 = vrot.slane %v2324_v59, 9  ;;  %v2325_v47 = vld [vmem:[#allocation2 + $0x20] sm:$0xe] }
 0x18f   : > { %v2165_v44 = vrot.slane %v2163_v15, 5  ;;  %v2353_v2 = vrot.slane %v3942_v42, 5  ;;  %v2208_v4 = vsel %vm3685_vm3, %v2203_v58, %v2207_v34  ;;  %v2350_v9 = vsel %vm3674_vm1, %v2845_v16, %v2349_v3  ;;  %v2329_v10 = vld [vmem:[#allocation2 + $0x40] sm:$0xe]  ;;  %v2511_v45 = vld [vmem:[%s3501_s17 + $0x10] ss:$24 sps:$4 sm:$0xff]  }
 0x190   : > { %v2152_v28 = vsel %vm3685_vm3, %v2147_v27, %v2151_v32  ;;  %v2189_v55 = vrot.slane %v2188_v36, 4  ;;  %v2848_v43 = vrot.slane %v2326_v22, 9  ;;  %v2361_v42 = vrot.slane %v3956_v20, 5  ;;  %v2867_v36 = vld [vmem:[%s4127_s4] ss:$0 sm:$0xff] }
 0x191   : > { %v2166_v35 = vsel %vm3685_vm3, %v2161_v29, %v2165_v44  ;;  %v2849_v5 = vrot.slane %v2327_v0, 9  ;;  %v2365_v18 = vrot.slane %v3960_v39, 5  ;;  %v2847_v7 = vrot.slane %v2325_v47, 9  ;;  %v2514_v3 = vld [vmem:[%s3501_s17 + $0x34] ss:$24 sps:$4 sm:$0xff]  }
 0x192   : > { %v2194_v6 = vsel %vm3685_vm3, %v2189_v55, %v2193_v60  ;;  %v2357_v31 = vrot.slane %v3958_v1, 5  ;;  %v2850_v46 = vrot.slane %v2328_v13, 9  ;;  %v2362_v24 = vsel %vm3674_vm1, %v2848_v43, %v2361_v42 }
 0x193   : > { %v2838_v56 = vcombine.low %v2194_v6, %v2208_v4  ;;  %v2366_v20 = vsel %vm3674_vm1, %v2849_v5, %v2365_v18  ;;  %v2377_v27 = vrot.slane %v3977_v38, 5  ;;  %v2517_v34 = vunpack.c.l.bf16 %v2511_v45 }
 0x194   : > { %v2358_v8 = vsel %vm3674_vm1, %v2847_v7, %v2357_v31 }
 0x195   : > { %3079 = vmatmul.mubr.msk.bf16.vlgmr.msra.gmra.mrb[0].mxu1 %vm505_vm0, %v3274_v57  ;;  %v2858_v39 = vcombine.low %v2358_v8, %v2362_v24 }
 0x196   : > { %3082 = vmatprep.mubr.msk.bf16.mxu1 %vm505_vm0, %v3276_v21  ;;  %3087 = vmatpush3.bf16.msra.mxu1 %v3275_v51  ;;  %v3965_v51 = vld [vmem:[#allocation2 + $0x3c] sm:$0x1]  ;;  %v3280_v21 = vld [vmem:[%s4126_s3 + $0x88] sm:$0xff]  }
 0x197   : > { %3088 = vmatprep.subr.bf16.mxu1 %v3278_v48  ;;  %v2177_v17 = vshll.u32 %v3965_v51, 16  ;;  %v2369_v52 = vrot.slane %v3965_v51, 5  ;;  %v2373_v51 = vrot.slane %v3975_v37, 5 }
 0x199   : > { %v2179_v57 = vrot.slane %v2177_v17, 5  ;;  %v2370_v15 = vsel %vm3674_vm1, %v2850_v46, %v2369_v52 }
 0x19a   : > { %3089 = vmatpush3.bf16.msra.mxu1 %v3278_v48  ;;  %v2138_v48 = vsel %vm3685_vm3, %v2133_v30, %v2137_v41  ;;  %v2859_v1 = vcombine.low %v2366_v20, %v2370_v15  ;;  %v2510_v41 = vld [vmem:[%s3501_s17 + $0x4] ss:$24 sps:$4 sm:$0xff]  }
 0x19b   : > { %3098 = vmatprep.subr.bf16.mxu1 %v3954_v63  ;;  %v2836_v49 = vcombine.low %v2138_v48, %v2152_v28  ;;  %v2180_v53 = vsel %vm3685_vm3, %v2175_v33, %v2179_v57  ;;  %v2516_v11 = vunpack.c.l.bf16 %v2510_v41 }
 0x19c   : > { %v2837_v54 = vcombine.low %v2166_v35, %v2180_v53  ;;  %v2518_v35 = vunpack.c.h.bf16 %v2510_v41 }
 0x19d   : > { %3083 = vmatmul.mubr.msk.bf16.gmra.mrb[4].mxu1 %vm505_vm0, %v3277_v26  ;;  %v2330_v26 = vld [vmem:[#allocation2 + $0x48] sm:$0xe] }
 0x19e   : > { %3090 = vmatprep.mubr.msk.bf16.mxu1 %vm505_vm0, %v2835_v12  ;;  %v2852_v25 = vrot.slane %v2330_v26, 9  ;;  %v2851_v12 = vrot.slane %v2329_v10, 9 }
 0x1a0   : > { %v2374_v50 = vsel %vm3674_vm1, %v2851_v12, %v2373_v51  ;;  %v2378_v23 = vsel %vm3674_vm1, %v2852_v25, %v2377_v27 }
 0x1a1   : > { %v2860_v29 = vcombine.low %v2374_v50, %v2378_v23 }
 0x1a5   : > { %3091 = vmatmul.mubr.msk.bf16.vlgmr.msra.gmra.mrb[0].mxu1 %vm505_vm0, %v2836_v49 }
 0x1a6   : > { %3094 = vmatprep.mubr.msk.bf16.mxu1 %vm505_vm0, %v2837_v54  ;;  %3099 = vmatpush3.bf16.msra.mxu1 %v3954_v63  ;;  %v2354_v63 = vsel %vm3674_vm1, %v2846_v62, %v2353_v2  ;;  %v2515_v2 = vld [vmem:[%s3501_s17 + $0x40] ss:$24 sps:$4 sm:$0xff]   ;;  %s269_s17 = sand.u32 1, %s3367_s25  }
 0x1a7   : > { %3100 = vmatprep.subr.bf16.mxu1 %v3280_v21  ;;  %v2857_v14 = vcombine.low %v2350_v9, %v2354_v63  ;;  %v2520_v63 = vunpack.c.l.bf16 %v2514_v3  ;;  %v2523_v13 = vunpack.c.h.bf16 %v2515_v2  ;;  %v2521_v46 = vunpack.c.l.bf16 %v2515_v2  ;;  %s2668_s15 = sshll.u32 %s269_s17, 6  ;;  %s4082_s22 = scalar_lea.sflag [#allocation4], %s269_s17 }
 0x1a8   : > { %s4048_s16 = scalar_lea.vmem [#allocation3], %s2668_s15 }
 0x1a9   : > { %s2602_s19 = sshll.u32 %s4048_s16, 4  ;;  %s4072_s19 = int_to_ptr.vmem [resolvable:$true] %s2602_s19 }
 0x1aa   : > { %3101 = vmatpush3.bf16.msra.mxu1 %v3280_v21  ;;  %v2519_v21 = vunpack.c.h.bf16 %v2511_v45  ;;  %s3313_s23 = scalar_lea.vmem %s4072_s19, 1024  ;;  %p3320_p0 = scmp.lt.s32.totalorder %s4072_s19, %s3318_s29 }
 0x1ab   : > { %p3314_p11 = scmp.ne.s32.totalorder %s4072_s19, %s3313_s23  ;;  %p3321_p1 = scmp.lt.s32.totalorder %s3319_s30, %s3313_s23 }
 0x1ad   : > { %3095 = vmatmul.mubr.msk.bf16.gmra.mrb[4].mxu1 %vm505_vm0, %v2838_v56  ;;  %v2522_v56 = vunpack.c.h.bf16 %v2514_v3  ;;  %p3315_p12 = pnand %p3314_p11, %p3459_p5  ;;  %p3322_p2 = por %p3321_p1, %p3320_p0 }
 0x1ae   : > { %3102 = vmatprep.mubr.msk.bf16.mxu1 %vm505_vm0, %v2857_v14 }
 0x1af   : > { %p3316_p13 = pneg %p3315_p12 }
 0x1b1   : > { %p3323_p3 = pnand %p3322_p2, %p3316_p13 }
 0x1b5   : > { %3103 = vmatmul.mubr.msk.bf16.vlgmr.msra.gmra.mrb[0].mxu1 %vm505_vm0, %v2858_v39 }
 0x1b6   : > { %3106 = vmatprep.mubr.msk.bf16.mxu1 %vm505_vm0, %v2859_v1 }
 0x1bd   : > { %3107 = vmatmul.mubr.msk.bf16.gmra.mrb[4].mxu1 %vm505_vm0, %v2860_v29 }
 0x243   : > { %v3020_v17 = vpop.f32.mrb[24].mxu0 }
 0x244   : > { %v1204_v30 = vpop.f32.mrb[25].mxu0 }
 0x245   : > { %v3021_v32 = vpop.f32.mrb[26].mxu0 }
 0x246   : > { %v1207_v44 = vpop.f32.mrb[27].mxu0 }
 0x24b   : > { %v3024_v33 = vpop.f32.mrb[28].mxu0 }
 0x24c   : > { %v1220_v37 = vpop.f32.mrb[29].mxu0 }
 0x24d   : > { %v3025_v38 = vpop.f32.mrb[30].mxu0 }
 0x24e   : > { %v1223_v40 = vpop.f32.mrb[31].mxu0 }
 0x288   : > { %v3104_v28 = vpop.f32.mrb[0].mxu1 }
 0x289   : > { %v3110_v61 = vadd.f32 %v3104_v28, %v3020_v17  ;;  %v2454_v57 = vpop.f32.mrb[1].mxu1 }
 0x28a   : > { %v3111_v48 = vadd.f32 %v2454_v57, %v1204_v30  ;;  %v3105_v19 = vpop.f32.mrb[2].mxu1 }
 0x28b   : > { %v2502_v49 = vadd.f32 %v3110_v61, %v2867_v36  ;;  %v3112_v53 = vadd.f32 %v3105_v19, %v3021_v32  ;;  %v2457_v54 = vpop.f32.mrb[3].mxu1 }
 0x28c   : > { %v2500_v55 = vadd.f32 %v3111_v48, %v2867_v36  ;;  %v3113_v58 = vadd.f32 %v2457_v54, %v1207_v44 }
 0x28d   : > { %v2526_v59 = vadd.f32 %v2518_v35, %v2502_v49  ;;  %v2503_v16 = vadd.f32 %v3112_v53, %v2867_v36 }
 0x28e   : > { %v4034_v60 = vadd.f32 %v2516_v11, %v2500_v55  ;;  %v2501_v62 = vadd.f32 %v3113_v58, %v2867_v36 }
 0x28f   : > { %v2542_v6 = vmin.f32 %v2526_v59, 0.0  ;;  %v4037_v4 = vadd.f32 %v2519_v21, %v2503_v16  ;;  %vm2534_vm6 = vcmp.gt.f32.partialorder %v2526_v59, 0.0 }
 0x290   : > { %v2540_v9 = vmin.f32 %v4034_v60, 0.0  ;;  %v4040_v22 = vadd.f32 %v2517_v34, %v2501_v62  ;;  %v3108_v0 = vpop.f32.mrb[4].mxu1  ;;  %vm2532_vm7 = vcmp.gt.f32.partialorder %v4034_v60, 0.0 }
 0x291   : > { %v2552_v47 = vmul.f32 1.442695, %v2542_v6  ;;  %v2543_v14 = vmin.f32 %v4037_v4, 0.0  ;;  %v3114_v43 = vadd.f32 %v3108_v0, %v3024_v33  ;;  %v2470_v42 = vpop.f32.mrb[5].mxu1  ;;  %vm2535_vm8 = vcmp.gt.f32.partialorder %v4037_v4, 0.0 }
 0x292   : > { %v2548_v5 = vmul.f32 1.442695, %v2540_v9  ;;  %v2541_v18 = vmin.f32 %v4040_v22, 0.0  ;;  %v3115_v7 = vadd.f32 %v2470_v42, %v1220_v37  ;;  %v3109_v31 = vpop.f32.mrb[6].mxu1  ;;  %vm2533_vm9 = vcmp.gt.f32.partialorder %v4040_v22, 0.0 }
 0x293   : > { %3297 = vpow2.f32 %v2552_v47  ;;  %v2554_v52 = vmul.f32 1.442695, %v2543_v14  ;;  %v2506_v24 = vadd.f32 %v3114_v43, %v2867_v36  ;;  %v3116_v26 = vadd.f32 %v3109_v31, %v3025_v38  ;;  %v2473_v20 = vpop.f32.mrb[7].mxu1 }
 0x294   : > { %3299 = vpow2.f32 %v2548_v5  ;;  %v2550_v10 = vmul.f32 1.442695, %v2541_v18  ;;  %v2504_v8 = vadd.f32 %v3115_v7, %v2867_v36  ;;  %v3117_v39 = vadd.f32 %v2473_v20, %v1223_v40 }
 0x295   : > { %3301 = vpow2.f32 %v2554_v52  ;;  %v2530_v15 = vadd.f32 %v2522_v56, %v2506_v24  ;;  %v2507_v25 = vadd.f32 %v3116_v26, %v2867_v36 }
 0x296   : > { %3303 = vpow2.f32 %v2550_v10  ;;  %v2528_v1 = vadd.f32 %v2520_v63, %v2504_v8  ;;  %v2505_v12 = vadd.f32 %v3117_v39, %v2867_v36 }
 0x297   : > { %v2546_v51 = vmin.f32 %v2530_v15, 0.0  ;;  %v2531_v27 = vadd.f32 %v2523_v13, %v2507_v25  ;;  %vm2538_vm10 = vcmp.gt.f32.partialorder %v2530_v15, 0.0 }
 0x298   : > { %v2544_v50 = vmin.f32 %v2528_v1, 0.0  ;;  %v2529_v23 = vadd.f32 %v2521_v46, %v2505_v12  ;;  %vm2536_vm11 = vcmp.gt.f32.partialorder %v2528_v1, 0.0 }
 0x299   : > { %v2560_v29 = vmul.f32 1.442695, %v2546_v51  ;;  %v2547_v17 = vmin.f32 %v2531_v27, 0.0  ;;  %vm2539_vm12 = vcmp.gt.f32.partialorder %v2531_v27, 0.0 }
 0x29a   : > { %v2556_v30 = vmul.f32 1.442695, %v2544_v50  ;;  %v2545_v32 = vmin.f32 %v2529_v23, 0.0  ;;  %vm2537_vm13 = vcmp.gt.f32.partialorder %v2529_v23, 0.0 }
 0x29b   : > { %3305 = vpow2.f32 %v2560_v29  ;;  %v2562_v44 = vmul.f32 1.442695, %v2547_v17 }
 0x29c   : > { %3307 = vpow2.f32 %v2556_v30  ;;  %v2558_v33 = vmul.f32 1.442695, %v2545_v32 }
 0x29d   : > { %v3298_v37 = vpop.eup %3297  ;;  %3309 = vpow2.f32 %v2562_v44 }
 0x29e   : > { %v3300_v38 = vpop.eup %3299  ;;  %v2870_v40 = vadd.f32 -1.0, %v3298_v37  ;;  %3311 = vpow2.f32 %v2558_v33 }
 0x29f   : > { %v3302_v41 = vpop.eup %3301  ;;  %v2868_v28 = vadd.f32 -1.0, %v3300_v38 }
 0x2a0   : > { %v3304_v36 = vpop.eup %3303  ;;  %v2574_v45 = vsel %vm2534_vm6, %v2526_v59, %v2870_v40  ;;  %v2871_v61 = vadd.f32 -1.0, %v3302_v41 }
 0x2a1   : > { %2582 = vst.msk [vmem:[%s4048_s16 + $0x10] sm:$0xff] %vm505_vm0, %v2574_v45  ;;  %v2572_v35 = vsel %vm2532_vm7, %v4034_v60, %v2868_v28  ;;  %v2869_v57 = vadd.f32 -1.0, %v3304_v36 }
 0x2a2   : > { %2580 = vst.msk [vmem:[%s4048_s16] sm:$0xff] %vm505_vm0, %v2572_v35  ;;  %v2575_v48 = vsel %vm2535_vm8, %v4037_v4, %v2871_v61 }
 0x2a3   : > { %2583 = vst.msk [vmem:[%s4048_s16 + $0x18] sm:$0xff] %vm505_vm0, %v2575_v48  ;;  %v2573_v11 = vsel %vm2533_vm9, %v4040_v22, %v2869_v57 }
 0x2a4   : > { %2581 = vst.msk [vmem:[%s4048_s16 + $0x8] sm:$0xff] %vm505_vm0, %v2573_v11 }
 0x2a5   : > { %v3306_v19 = vpop.eup %3305 }
 0x2a6   : > { %v3308_v49 = vpop.eup %3307  ;;  %v2874_v53 = vadd.f32 -1.0, %v3306_v19 }
 0x2a7   : > { %v3310_v21 = vpop.eup %3309  ;;  %v2872_v54 = vadd.f32 -1.0, %v3308_v49 }
 0x2a8   : > { %v3312_v55 = vpop.eup %3311  ;;  %v2578_v58 = vsel %vm2538_vm10, %v2530_v15, %v2874_v53  ;;  %v2875_v34 = vadd.f32 -1.0, %v3310_v21 }
 0x2a9   : > { %2586 = vst.msk [vmem:[%s4048_s16 + $0x30] sm:$0xff] %vm505_vm0, %v2578_v58  ;;  %v2576_v59 = vsel %vm2536_vm11, %v2528_v1, %v2872_v54  ;;  %v2873_v16 = vadd.f32 -1.0, %v3312_v55 }
 0x2aa   : > { %2584 = vst.msk [vmem:[%s4048_s16 + $0x20] sm:$0xff] %vm505_vm0, %v2576_v59  ;;  %v2579_v3 = vsel %vm2539_vm12, %v2531_v27, %v2875_v34 }
 0x2ab   : > { %2587 = vst.msk [vmem:[%s4048_s16 + $0x38] sm:$0xff] %vm505_vm0, %v2579_v3  ;;  %v2577_v60 = vsel %vm2537_vm13, %v2529_v23, %v2873_v16 }
 0x2ac   : > { %2585 = vst.msk [vmem:[%s4048_s16 + $0x28] sm:$0xff] %vm505_vm0, %v2577_v60 }
 0x2ad   : > { %3326 = shalt.err (!%p3323_p3)
}
 0x2ae   : > { %s3327_s11 = scalar_lea.hbm %s4070_s5, 1024  ;;  %s3331_s14 = scalar_lea.hbm %s4130_s7, 2048 }
 0x2af   : > { %p3328_p4 = scmp.ne.s32.totalorder %s4070_s5, %s3327_s11  ;;  %p3332_p9 = scmp.lt.u32.totalorder %s4070_s5, %s4130_s7 }
 0x2b0   : > { %p3333_p10 = scmp.lt.u32.totalorder %s3331_s14, %s3327_s11  ;;  %p3335_p12 = scmp.lt.u32.totalorder %s3327_s11, %s4070_s5 }
 0x2b1   : > { %p3329_p7 = pnand %p3328_p4, %p3459_p5 }
 0x2b2   : > { %p3334_p11 = por %p3333_p10, %p3332_p9 }
 0x2b3   : > { %p3330_p8 = pneg %p3329_p7 }
 0x2b4   : > { %p3336_p13 = por %p3335_p12, %p3334_p11 }
 0x2b6   : > { %p3337_p0 = pnand %p3336_p13, %p3330_p8 }
 0x2b8   : > { %3340 = shalt.err (!%p3337_p0)
}
 0x2b9   : > { %s3379_s16 = smov 128   ;;  %s3380_s18 = smov 8  }
 0x2ba   : > { %3175 = dma.vmem_to_hbm [thread:$0]  (%p3459_p5), %s4072_s19, 1024, %s4070_s5, %s4082_s22, %s3379_s16, %s3379_s16, %s3380_s18  }
 0x2bb PF: > { %p3181_p1 = scmp.ge.s32.totalorder %s3375_s27, 2  ;;  %s2617_s20 = sand.u32 1, %s3363_s24  }
 0x2bc   : > { %s2618_s21 = scalar_lea.sflag [#allocation4], %s2617_s20 }
 0x2bd   : > { %p3178_p2 = pnand %p3181_p1, %p3463_p6 }
 0x2bf   : > { %3358 = dma.done.wait (!%p3178_p2), %s2618_s21, 1024  }
 0x2c0   : > { %3360 = vsyncadd (!%p3178_p2), %s2618_s21, 4294966272  ;;  %p17_p3 = scmp.ge.s32.totalorder %s3446_s28, 4   ;;  %s4141_s24 = smov %s3367_s25 }
 0x2c1   : > { %s4142_s25 = smov %s3371_s26  ;;  %s4143_s26 = smov %s3457_s8 }
 0x2c2   : > { %s4144_s27 = smov %s3446_s28  ;;  %19 = sbr.rel (!%p17_p3) target bundleno = 3 (0x3), region = 93 }
 0x2c9   :  { %2623 = vsyncpa [#allocation4], 1 }
 0x2ca   :  { %2625 = vsyncpa [#allocation4 + $0x1], 1 }

</bundles_post_ra>
